<compile_context>
chip_gen: v5e
topology: v5e:2x2
jax: 0.10.0
libtpu: 0.0.40
codegen_flags: <defaults>
</compile_context>

<pallas_src>
import functools

import jax
import jax.numpy as jnp
from jax.experimental import pallas as pl
from jax.experimental.pallas import tpu as pltpu

# ---------------- ViT-tiny configuration ----------------
PATCH = 16
EMBED_DIM = 192
NUM_HEADS = 3
HEAD_DIM = EMBED_DIM // NUM_HEADS          # 64
DEPTH = 12
MLP_DIM = 4 * EMBED_DIM                    # 768
NUM_CLASSES = 2
HEAD_PAD = 128                             # classifier output padded to 128 lanes
LN_EPS = 1e-6
ATTN_SCALE = HEAD_DIM ** -0.5
NEG_INF = -1e30


def _round_up(n, m):
    return ((n + m - 1) // m) * m


def _pad_tokens(n):
    # multiple of 16: bf16 sublane-pack friendly; 197 tokens -> 208 (not 256).
    return _round_up(n, 16)


def _pick_bt(b):
    # Amortize per-layer weight DMA over up to 4 images per grid step while
    # keeping >= 2 batch grid steps when possible (v7x megacore sharding).
    for bt in (4, 3, 2):
        if b % bt == 0 and b // bt >= 2:
            return bt
    return 1


# ---------------- shared in-kernel helpers ----------------
def _ln(v, g, b):
    mu = jnp.mean(v, axis=-1, keepdims=True)
    c = v - mu
    var = jnp.mean(c * c, axis=-1, keepdims=True)
    return c * jax.lax.rsqrt(var + LN_EPS) * g + b


def _gelu(x):
    # TODO(synk): timm's nn.GELU is the exact erf variant; tanh-approx GELU is
    # used here because erf may not lower through Mosaic (max abs diff ~1e-3).
    return jax.nn.gelu(x, approximate=True)


# ---------------- patch embed + cls + pos-embed kernel ----------------
def _embed_kernel(p_ref, w_ref, add_ref, o_ref, *, n_patches):
    # add_ref (n_pad, D): row 0 = cls + pos[0]; rows 1..Np = pos[i] + patch_b;
    # padded rows = 0.  p_ref holds only the Np real patch rows (bf16).
    base = add_ref[...]
    o_ref[...] = base
    emb = jnp.dot(p_ref[0], w_ref[...],
                  preferred_element_type=jnp.float32)          # (Np, D) f32
    o_ref[1:1 + n_patches, :] = base[1:1 + n_patches, :] + emb


def patch_embed(patches, w, add_slab, n_pad):
    b, n_patches, pk = patches.shape
    d = w.shape[1]
    kern = functools.partial(_embed_kernel, n_patches=n_patches)
    return pl.pallas_call(
        kern,
        grid=(b,),
        in_specs=[pl.BlockSpec((1, n_patches, pk), lambda i: (i, 0, 0)),
                  pl.BlockSpec((pk, d), lambda i: (0, 0)),
                  pl.BlockSpec((n_pad, d), lambda i: (0, 0))],
        out_specs=pl.BlockSpec((n_pad, d), lambda i: (i, 0)),
        out_shape=jax.ShapeDtypeStruct((b * n_pad, d), jnp.float32),
        compiler_params=pltpu.CompilerParams(
            dimension_semantics=("parallel",)),
    )(patches, w, add_slab)


# ---------------- fused depth-loop transformer kernel ----------------
def _block_kernel(x_ref, kb_ref,
                  ln1g_ref, ln1b_ref,
                  wqkv_ref, bqkv_ref, wproj_ref, bproj_ref,
                  ln2g_ref, ln2b_ref,
                  w1_ref, b1_ref, w2_ref, b2_ref,
                  o_ref, *, bt, n_pad):
    layer = pl.program_id(1)

    # layer 0: copy embedded tokens into the resident activation buffer
    @pl.when(layer == 0)
    def _():
        o_ref[...] = x_ref[...]

    x = o_ref[...]                               # (bt*n_pad, D) f32 residual
    key_bias = kb_ref[...]                       # (1, n_pad): 0 real, -1e30 pad

    # ---- multi-head self-attention ----
    h = _ln(x, ln1g_ref[0], ln1b_ref[0]).astype(jnp.bfloat16)
    # one fused QKV matmul: (R,192) x (192,576) -> (R,576). ATTN_SCALE folded
    # into the Q columns of wqkv / bqkv at parameter-setup time.
    qkv = (jnp.dot(h, wqkv_ref[0], preferred_element_type=jnp.float32)
           + bqkv_ref[0])
    q = qkv[:, 0:EMBED_DIM].astype(jnp.bfloat16)
    k = qkv[:, EMBED_DIM:2 * EMBED_DIM].astype(jnp.bfloat16)
    v = qkv[:, 2 * EMBED_DIM:3 * EMBED_DIM].astype(jnp.bfloat16)

    ctx_imgs = []
    for img in range(bt):
        r0 = img * n_pad
        per_head = []
        for hd in range(NUM_HEADS):
            c0 = hd * HEAD_DIM
            qh = q[r0:r0 + n_pad, c0:c0 + HEAD_DIM]      # (n, 64) bf16
            kh = k[r0:r0 + n_pad, c0:c0 + HEAD_DIM]
            vh = v[r0:r0 + n_pad, c0:c0 + HEAD_DIM]
            s = jax.lax.dot_general(qh, kh, (((1,), (1,)), ((), ())),
                                    preferred_element_type=jnp.float32)  # (n,n)
            s = s + key_bias                     # mask padded key columns
            s = s - jnp.max(s, axis=-1, keepdims=True)
            p = jnp.exp(s)
            denom = jnp.sum(p, axis=-1, keepdims=True)   # (n,1)
            # deferred normalization: scale the (n,64) context, not the (n,n) probs
            ctx = jnp.dot(p.astype(jnp.bfloat16), vh,
                          preferred_element_type=jnp.float32)            # (n,64)
            ctx = ctx * pl.reciprocal(denom, approx=True)
            per_head.append(ctx)
        ctx_imgs.append(jnp.concatenate(per_head, axis=-1))             # (n,192)
    ctx_all = ctx_imgs[0] if bt == 1 else jnp.concatenate(ctx_imgs, axis=0)

    x = x + (jnp.dot(ctx_all.astype(jnp.bfloat16), wproj_ref[0],
                     preferred_element_type=jnp.float32) + bproj_ref[0])

    # ---- MLP ----
    h2 = _ln(x, ln2g_ref[0], ln2b_ref[0]).astype(jnp.bfloat16)
    m = jnp.dot(h2, w1_ref[0], preferred_element_type=jnp.float32) + b1_ref[0]
    m = _gelu(m).astype(jnp.bfloat16)
    x = x + (jnp.dot(m, w2_ref[0], preferred_element_type=jnp.float32)
             + b2_ref[0])

    o_ref[...] = x


_BLOCK_WEIGHT_NAMES = ('ln1_g', 'ln1_b', 'wqkv', 'bqkv', 'wproj', 'bproj',
                       'ln2_g', 'ln2_b', 'w1', 'b1', 'w2', 'b2')


def _wspec(w):
    tail = (0,) * (w.ndim - 1)
    return pl.BlockSpec((1,) + w.shape[1:],
                        lambda bi, li, _t=tail: (li,) + _t)


def transformer_stack(tok2d, key_bias, blocks, bt, n_pad):
    rows, d = tok2d.shape
    b = rows // n_pad
    nb = b // bt
    weights = [blocks[name] for name in _BLOCK_WEIGHT_NAMES]
    kern = functools.partial(_block_kernel, bt=bt, n_pad=n_pad)

    return pl.pallas_call(
        kern,
        grid=(nb, DEPTH),
        in_specs=[pl.BlockSpec((bt * n_pad, d), lambda bi, li: (bi, 0)),
                  pl.BlockSpec((1, n_pad), lambda bi, li: (0, 0))]
                 + [_wspec(w) for w in weights],
        out_specs=pl.BlockSpec((bt * n_pad, d), lambda bi, li: (bi, 0)),
        out_shape=jax.ShapeDtypeStruct((rows, d), jnp.float32),
        input_output_aliases={0: 0},   # residual stream shares HBM with the output
        compiler_params=pltpu.CompilerParams(
            dimension_semantics=("parallel", "arbitrary"),
            vmem_limit_bytes=48 * 1024 * 1024),
    )(tok2d, key_bias, *weights)


# ---------------- final LayerNorm (cls only) + classifier head ----------------
def _head_kernel(x_ref, g_ref, b_ref, w_ref, hb_ref, o_ref):
    h = _ln(x_ref[...], g_ref[...], b_ref[...])
    o_ref[...] = (jnp.dot(h, w_ref[...], preferred_element_type=jnp.float32)
                  + hb_ref[...])


def cls_head(cls_tok, norm_g, norm_b, head_w, head_b):
    b, d = cls_tok.shape
    n_out = head_w.shape[1]
    return pl.pallas_call(
        _head_kernel,
        grid=(1,),
        in_specs=[pl.BlockSpec((b, d), lambda i: (0, 0)),
                  pl.BlockSpec((1, d), lambda i: (0, 0)),
                  pl.BlockSpec((1, d), lambda i: (0, 0)),
                  pl.BlockSpec((d, n_out), lambda i: (0, 0)),
                  pl.BlockSpec((1, n_out), lambda i: (0, 0))],
        out_specs=pl.BlockSpec((b, n_out), lambda i: (0, 0)),
        out_shape=jax.ShapeDtypeStruct((b, n_out), jnp.float32),
        compiler_params=pltpu.CompilerParams(
            dimension_semantics=("arbitrary",)),
    )(cls_tok, norm_g, norm_b, head_w, head_b)


# ---------------- parameter init (deterministic, synthetic) ----------------
def init_params(key, img_size):
    num_patches = (img_size // PATCH) ** 2
    n_tokens = num_patches + 1
    kit = iter(jax.random.split(key, 8 * DEPTH + 8))

    def nrm(shape, std=0.02):
        return (std * jax.random.normal(next(kit), shape)).astype(jnp.float32)

    def ones(shape):
        return jnp.ones(shape, jnp.float32)

    def zeros(shape):
        return jnp.zeros(shape, jnp.float32)

    blocks = []
    for _ in range(DEPTH):
        # fused QKV weight: columns [Q(192) | K(192) | V(192)], each 192-wide
        # group laid out head-major (64 columns per head).  ATTN_SCALE is folded
        # into the Q columns / Q bias (bias is zero in this synthetic init; when
        # loading pretrained weights the real q-bias must be scaled too).
        wq = nrm((EMBED_DIM, EMBED_DIM)) * ATTN_SCALE
        wk = nrm((EMBED_DIM, EMBED_DIM))
        wv = nrm((EMBED_DIM, EMBED_DIM))
        wqkv = jnp.concatenate([wq, wk, wv], axis=1).astype(jnp.bfloat16)
        blocks.append({
            'ln1_g': ones((1, EMBED_DIM)), 'ln1_b': zeros((1, EMBED_DIM)),
            'wqkv': wqkv,
            'bqkv': zeros((1, 3 * EMBED_DIM)),
            'wproj': nrm((EMBED_DIM, EMBED_DIM)).astype(jnp.bfloat16),
            'bproj': zeros((1, EMBED_DIM)),
            'ln2_g': ones((1, EMBED_DIM)), 'ln2_b': zeros((1, EMBED_DIM)),
            'w1': nrm((EMBED_DIM, MLP_DIM)).astype(jnp.bfloat16),
            'b1': zeros((1, MLP_DIM)),
            'w2': nrm((MLP_DIM, EMBED_DIM)).astype(jnp.bfloat16),
            'b2': zeros((1, EMBED_DIM)),
        })
    # stack block params on a leading DEPTH axis -> one pallas_call over layers
    blocks_stacked = jax.tree_util.tree_map(lambda *xs: jnp.stack(xs, 0), *blocks)

    head_w = jnp.zeros((EMBED_DIM, HEAD_PAD), jnp.float32)
    head_w = head_w.at[:, :NUM_CLASSES].set(nrm((EMBED_DIM, NUM_CLASSES)))

    return {
        'patch_w': nrm((3 * PATCH * PATCH, EMBED_DIM)).astype(jnp.bfloat16),
        'patch_b': zeros((1, EMBED_DIM)),
        'cls': nrm((1, 1, EMBED_DIM)),
        'pos': nrm((1, n_tokens, EMBED_DIM)),
        'blocks': blocks_stacked,
        'norm_g': ones((1, EMBED_DIM)), 'norm_b': zeros((1, EMBED_DIM)),
        'head_w': head_w, 'head_b': zeros((1, HEAD_PAD)),
    }


# ---------------- forward pass ----------------
def patchify(x):
    # NCHW -> (B, Np, 3*16*16) bf16; patch vector ordered (c, ph, pw) to match
    # PyTorch's conv weight layout (O, C, kH, kW) flattened the same way.
    # No zero-padded (B, n_pad, 768) scatter: only real patch rows are emitted.
    b, c, hh, ww = x.shape
    gh, gw = hh // PATCH, ww // PATCH
    p = x.reshape(b, c, gh, PATCH, gw, PATCH).transpose(0, 2, 4, 1, 3, 5)
    p = p.reshape(b, gh * gw, c * PATCH * PATCH)
    return p.astype(jnp.bfloat16), gh * gw


@jax.jit
def vit_tiny_forward(params, x):
    b = x.shape[0]
    num_patches = (x.shape[2] // PATCH) * (x.shape[3] // PATCH)
    n_real = num_patches + 1
    n_pad = _pad_tokens(n_real)

    patches, _ = patchify(x)                                 # (B, Np, 768) bf16

    # per-token additive slab fused into the embed kernel:
    #   row 0        -> cls + pos[0]
    #   rows 1..Np   -> pos[i] + patch_b
    #   padded rows  -> 0
    add = jnp.zeros((n_pad, EMBED_DIM), jnp.float32)
    add = add.at[0].set(params['cls'][0, 0] + params['pos'][0, 0])
    add = add.at[1:n_real].set(params['pos'][0, 1:n_real] + params['patch_b'])

    # patch embedding + cls + pos-embed (single Pallas kernel)
    tok = patch_embed(patches, params['patch_w'], add, n_pad)  # (B*n_pad, 192) f32

    # additive key mask for padded key columns
    key_idx = jnp.arange(n_pad, dtype=jnp.int32)[None, :]
    key_bias = jnp.where(key_idx < n_real, 0.0, NEG_INF).astype(jnp.float32)

    # all 12 transformer blocks in one pallas_call; Bt images per grid step
    bt = _pick_bt(b)
    tok = transformer_stack(tok, key_bias, params['blocks'], bt, n_pad)

    # final LayerNorm on the cls token only + classifier head (one kernel)
    cls_tok = tok.reshape(b, n_pad, EMBED_DIM)[:, 0, :]        # (B, 192)
    logits = cls_head(cls_tok, params['norm_g'], params['norm_b'],
                      params['head_w'], params['head_b'])
    return logits[:, :NUM_CLASSES]


if __name__ == "__main__":
    key = jax.random.PRNGKey(0)
    kp, kx = jax.random.split(key)
    img = 32                                  # 2x2 patch grid -> 5 tokens, padded to 16
    params = init_params(kp, img)
    x = jax.random.normal(kx, (2, 3, img, img), dtype=jnp.float32)  # NCHW
    out = vit_tiny_forward(params, x)
    out = jax.block_until_ready(out)
    assert out.shape == (2, NUM_CLASSES) and out.dtype == jnp.float32
    print("KERNEL_OK")
</pallas_src>

<mosaic_0001>
module attributes {stable_mosaic.version = 11 : i64} {
  func.func @_embed_kernel(%arg0: i32, %arg1: memref<1x4x768xbf16, #tpu.memory_space<vmem>>, %arg2: memref<768x192xbf16, #tpu.memory_space<vmem>>, %arg3: memref<16x192xf32, #tpu.memory_space<vmem>>, %arg4: memref<16x192xf32, #tpu.memory_space<vmem>>) attributes {dimension_semantics = [#tpu.dimension_semantics<parallel>], iteration_bounds = array<i64: 2>, scalar_prefetch = 0 : i64, scratch_operands = 0 : i64, tpu.core_type = #tpu.core_type<tc>, window_params = [{transform_indices = @transform_0, window_bounds = array<i64: 1, 4, 768>}, {pipeline_mode = #tpu.pipeline_mode<synchronous>, transform_indices = @transform_1, window_bounds = array<i64: 768, 192>}, {pipeline_mode = #tpu.pipeline_mode<synchronous>, transform_indices = @transform_2, window_bounds = array<i64: 16, 192>}, {transform_indices = @transform_3, window_bounds = array<i64: 16, 192>}]} {
    %c0 = arith.constant 0 : index
    %c0_0 = arith.constant 0 : index
    %0 = vector.load %arg3[%c0, %c0_0] : memref<16x192xf32, #tpu.memory_space<vmem>>, vector<16x192xf32>
    %c0_1 = arith.constant 0 : index
    %c0_2 = arith.constant 0 : index
    %1 = vector.load %arg4[%c0_1, %c0_2] : memref<16x192xf32, #tpu.memory_space<vmem>>, vector<16x192xf32>
    tpu.vector_store %arg4[%c0_1, %c0_2], %0 {strides = array<i32>} : memref<16x192xf32, #tpu.memory_space<vmem>>, vector<16x192xf32>,
    %c0_3 = arith.constant 0 : index
    %c0_4 = arith.constant 0 : index
    %c0_5 = arith.constant 0 : index
    %2 = vector.load %arg1[%c0_3, %c0_4, %c0_5] : memref<1x4x768xbf16, #tpu.memory_space<vmem>>, vector<1x4x768xbf16>
    %3 = vector.shape_cast %2 : vector<1x4x768xbf16> to vector<4x768xbf16>
    %c0_6 = arith.constant 0 : index
    %c0_7 = arith.constant 0 : index
    %4 = vector.load %arg2[%c0_6, %c0_7] : memref<768x192xbf16, #tpu.memory_space<vmem>>, vector<768x192xbf16>
    %cst = arith.constant dense<0.000000e+00> : vector<4x192xf32>
    %5 = tpu.matmul %3, %4, %cst {dimension_numbers = #tpu.dot_dimension_numbers<[1], [0], [0], [1], [0, 0, 1, 1], [], []>} : vector<4x768xbf16>, vector<768x192xbf16>, vector<4x192xf32> -> vector<4x192xf32>
    %6 = vector.extract_strided_slice %0 {offsets = [1, 0], sizes = [4, 192], strides = [1, 1]} : vector<16x192xf32> to vector<4x192xf32>
    %7 = arith.addf %6, %5 : vector<4x192xf32>
    %c1 = arith.constant 1 : index
    %c0_8 = arith.constant 0 : index
    %8 = vector.load %arg4[%c1, %c0_8] : memref<16x192xf32, #tpu.memory_space<vmem>>, vector<4x192xf32>
    tpu.vector_store %arg4[%c1, %c0_8], %7 {strides = array<i32>} : memref<16x192xf32, #tpu.memory_space<vmem>>, vector<4x192xf32>,
    return
  }
  func.func @transform_0(%arg0: i32) -> (i32, i32, i32) {
    %c0_i32 = arith.constant 0 : i32
    %c0_i32_0 = arith.constant 0 : i32
    %c0_i32_1 = arith.constant 0 : i32
    return %arg0, %c0_i32, %c0_i32_0 : i32, i32, i32
  }
  func.func @transform_1(%arg0: i32) -> (i32, i32) {
    %c0_i32 = arith.constant 0 : i32
    %c0_i32_0 = arith.constant 0 : i32
    %c0_i32_1 = arith.constant 0 : i32
    return %c0_i32, %c0_i32_0 : i32, i32
  }
  func.func @transform_2(%arg0: i32) -> (i32, i32) {
    %c0_i32 = arith.constant 0 : i32
    %c0_i32_0 = arith.constant 0 : i32
    %c0_i32_1 = arith.constant 0 : i32
    return %c0_i32, %c0_i32_0 : i32, i32
  }
  func.func @transform_3(%arg0: i32) -> (i32, i32) {
    %c0_i32 = arith.constant 0 : i32
    %c0_i32_0 = arith.constant 0 : i32
    return %arg0, %c0_i32 : i32, i32
  }
}

module attributes {stable_mosaic.version = 11 : i64} {
  func.func @_block_kernel(%arg0: i32, %arg1: i32, %arg2: memref<16x192xf32, #tpu.memory_space<vmem>>, %arg3: memref<1x16xf32, #tpu.memory_space<vmem>>, %arg4: memref<1x1x192xf32, #tpu.memory_space<vmem>>, %arg5: memref<1x1x192xf32, #tpu.memory_space<vmem>>, %arg6: memref<1x192x576xbf16, #tpu.memory_space<vmem>>, %arg7: memref<1x1x576xf32, #tpu.memory_space<vmem>>, %arg8: memref<1x192x192xbf16, #tpu.memory_space<vmem>>, %arg9: memref<1x1x192xf32, #tpu.memory_space<vmem>>, %arg10: memref<1x1x192xf32, #tpu.memory_space<vmem>>, %arg11: memref<1x1x192xf32, #tpu.memory_space<vmem>>, %arg12: memref<1x192x768xbf16, #tpu.memory_space<vmem>>, %arg13: memref<1x1x768xf32, #tpu.memory_space<vmem>>, %arg14: memref<1x768x192xbf16, #tpu.memory_space<vmem>>, %arg15: memref<1x1x192xf32, #tpu.memory_space<vmem>>, %arg16: memref<16x192xf32, #tpu.memory_space<vmem>>) attributes {dimension_semantics = [#tpu.dimension_semantics<parallel>, #tpu.dimension_semantics<arbitrary>], iteration_bounds = array<i64: 2, 12>, scalar_prefetch = 0 : i64, scratch_operands = 0 : i64, tpu.core_type = #tpu.core_type<tc>, window_params = [{transform_indices = @transform_0, window_bounds = array<i64: 16, 192>}, {pipeline_mode = #tpu.pipeline_mode<synchronous>, transform_indices = @transform_1, window_bounds = array<i64: 1, 16>}, {transform_indices = @transform_2, window_bounds = array<i64: 1, 1, 192>}, {transform_indices = @transform_3, window_bounds = array<i64: 1, 1, 192>}, {transform_indices = @transform_4, window_bounds = array<i64: 1, 192, 576>}, {transform_indices = @transform_5, window_bounds = array<i64: 1, 1, 576>}, {transform_indices = @transform_6, window_bounds = array<i64: 1, 192, 192>}, {transform_indices = @transform_7, window_bounds = array<i64: 1, 1, 192>}, {transform_indices = @transform_8, window_bounds = array<i64: 1, 1, 192>}, {transform_indices = @transform_9, window_bounds = array<i64: 1, 1, 192>}, {transform_indices = @transform_10, window_bounds = array<i64: 1, 192, 768>}, {transform_indices = @transform_11, window_bounds = array<i64: 1, 1, 768>}, {transform_indices = @transform_12, window_bounds = array<i64: 1, 768, 192>}, {transform_indices = @transform_13, window_bounds = array<i64: 1, 1, 192>}, {transform_indices = @transform_14, window_bounds = array<i64: 16, 192>}]} {
    %c0_i32 = arith.constant 0 : i32
    %0 = arith.cmpi eq, %arg1, %c0_i32 : i32
    %1 = arith.extui %0 : i1 to i32
    %c0_i32_0 = arith.constant 0 : i32
    %2 = arith.cmpi ne, %1, %c0_i32_0 : i32
    scf.if %2 {
      %c0_71 = arith.constant 0 : index
      %c0_72 = arith.constant 0 : index
      %162 = vector.load %arg2[%c0_71, %c0_72] : memref<16x192xf32, #tpu.memory_space<vmem>>, vector<16x192xf32>
      %c0_73 = arith.constant 0 : index
      %c0_74 = arith.constant 0 : index
      %163 = vector.load %arg16[%c0_73, %c0_74] : memref<16x192xf32, #tpu.memory_space<vmem>>, vector<16x192xf32>
      tpu.vector_store %arg16[%c0_73, %c0_74], %162 {strides = array<i32>} : memref<16x192xf32, #tpu.memory_space<vmem>>, vector<16x192xf32>,
    } else {
    }
    %c0 = arith.constant 0 : index
    %c0_1 = arith.constant 0 : index
    %3 = vector.load %arg16[%c0, %c0_1] : memref<16x192xf32, #tpu.memory_space<vmem>>, vector<16x192xf32>
    %c0_2 = arith.constant 0 : index
    %c0_3 = arith.constant 0 : index
    %4 = vector.load %arg3[%c0_2, %c0_3] : memref<1x16xf32, #tpu.memory_space<vmem>>, vector<1x16xf32>
    %c0_4 = arith.constant 0 : index
    %c0_5 = arith.constant 0 : index
    %c0_6 = arith.constant 0 : index
    %5 = vector.load %arg4[%c0_4, %c0_5, %c0_6] : memref<1x1x192xf32, #tpu.memory_space<vmem>>, vector<1x1x192xf32>
    %6 = vector.shape_cast %5 : vector<1x1x192xf32> to vector<1x192xf32>
    %c0_7 = arith.constant 0 : index
    %c0_8 = arith.constant 0 : index
    %c0_9 = arith.constant 0 : index
    %7 = vector.load %arg5[%c0_7, %c0_8, %c0_9] : memref<1x1x192xf32, #tpu.memory_space<vmem>>, vector<1x1x192xf32>
    %8 = vector.shape_cast %7 : vector<1x1x192xf32> to vector<1x192xf32>
    %cst = arith.constant dense<0.000000e+00> : vector<16xf32>
    %9 = vector.multi_reduction <add>, %3, %cst [1] : vector<16x192xf32> to vector<16xf32>
    %10 = vector.shape_cast %9 : vector<16xf32> to vector<16x1xf32>
    %cst_10 = arith.constant 1.920000e+02 : f32
    %11 = vector.broadcast %cst_10 : f32 to vector<16x1xf32>
    %12 = arith.divf %10, %11 : vector<16x1xf32>
    %13 = vector.broadcast %12 : vector<16x1xf32> to vector<16x192xf32>
    %14 = arith.subf %3, %13 : vector<16x192xf32>
    %15 = arith.mulf %14, %14 : vector<16x192xf32>
    %cst_11 = arith.constant dense<0.000000e+00> : vector<16xf32>
    %16 = vector.multi_reduction <add>, %15, %cst_11 [1] : vector<16x192xf32> to vector<16xf32>
    %17 = vector.shape_cast %16 : vector<16xf32> to vector<16x1xf32>
    %cst_12 = arith.constant 1.920000e+02 : f32
    %18 = vector.broadcast %cst_12 : f32 to vector<16x1xf32>
    %19 = arith.divf %17, %18 : vector<16x1xf32>
    %cst_13 = arith.constant 9.99999997E-7 : f32
    %20 = vector.broadcast %cst_13 : f32 to vector<16x1xf32>
    %21 = arith.addf %19, %20 : vector<16x1xf32>
    %22 = math.rsqrt %21 : vector<16x1xf32>
    %23 = vector.broadcast %22 : vector<16x1xf32> to vector<16x192xf32>
    %24 = arith.mulf %14, %23 : vector<16x192xf32>
    %25 = vector.broadcast %6 : vector<1x192xf32> to vector<16x192xf32>
    %26 = arith.mulf %24, %25 : vector<16x192xf32>
    %27 = vector.broadcast %8 : vector<1x192xf32> to vector<16x192xf32>
    %28 = arith.addf %26, %27 : vector<16x192xf32>
    %29 = arith.truncf %28 : vector<16x192xf32> to vector<16x192xbf16>
    %c0_14 = arith.constant 0 : index
    %c0_15 = arith.constant 0 : index
    %c0_16 = arith.constant 0 : index
    %30 = vector.load %arg6[%c0_14, %c0_15, %c0_16] : memref<1x192x576xbf16, #tpu.memory_space<vmem>>, vector<1x192x576xbf16>
    %31 = vector.shape_cast %30 : vector<1x192x576xbf16> to vector<192x576xbf16>
    %cst_17 = arith.constant dense<0.000000e+00> : vector<16x576xf32>
    %32 = tpu.matmul %29, %31, %cst_17 {dimension_numbers = #tpu.dot_dimension_numbers<[1], [0], [0], [1], [0, 0, 1, 1], [], []>} : vector<16x192xbf16>, vector<192x576xbf16>, vector<16x576xf32> -> vector<16x576xf32>
    %c0_18 = arith.constant 0 : index
    %c0_19 = arith.constant 0 : index
    %c0_20 = arith.constant 0 : index
    %33 = vector.load %arg7[%c0_18, %c0_19, %c0_20] : memref<1x1x576xf32, #tpu.memory_space<vmem>>, vector<1x1x576xf32>
    %34 = vector.shape_cast %33 : vector<1x1x576xf32> to vector<1x576xf32>
    %35 = vector.broadcast %34 : vector<1x576xf32> to vector<16x576xf32>
    %36 = arith.addf %32, %35 : vector<16x576xf32>
    %37 = vector.extract_strided_slice %36 {offsets = [0, 0], sizes = [16, 192], strides = [1, 1]} : vector<16x576xf32> to vector<16x192xf32>
    %38 = arith.truncf %37 : vector<16x192xf32> to vector<16x192xbf16>
    %39 = vector.extract_strided_slice %36 {offsets = [0, 192], sizes = [16, 192], strides = [1, 1]} : vector<16x576xf32> to vector<16x192xf32>
    %40 = arith.truncf %39 : vector<16x192xf32> to vector<16x192xbf16>
    %41 = vector.extract_strided_slice %36 {offsets = [0, 384], sizes = [16, 192], strides = [1, 1]} : vector<16x576xf32> to vector<16x192xf32>
    %42 = arith.truncf %41 : vector<16x192xf32> to vector<16x192xbf16>
    %43 = vector.extract_strided_slice %38 {offsets = [0, 0], sizes = [16, 64], strides = [1, 1]} : vector<16x192xbf16> to vector<16x64xbf16>
    %44 = vector.extract_strided_slice %40 {offsets = [0, 0], sizes = [16, 64], strides = [1, 1]} : vector<16x192xbf16> to vector<16x64xbf16>
    %45 = vector.extract_strided_slice %42 {offsets = [0, 0], sizes = [16, 64], strides = [1, 1]} : vector<16x192xbf16> to vector<16x64xbf16>
    %cst_21 = arith.constant dense<0.000000e+00> : vector<16x16xf32>
    %46 = tpu.matmul %43, %44, %cst_21 {dimension_numbers = #tpu.dot_dimension_numbers<[1], [1], [0], [0], [0, 0, 1, 0], [], []>} : vector<16x64xbf16>, vector<16x64xbf16>, vector<16x16xf32> -> vector<16x16xf32>
    %47 = vector.broadcast %4 : vector<1x16xf32> to vector<16x16xf32>
    %48 = arith.addf %46, %47 : vector<16x16xf32>
    %cst_22 = arith.constant dense<0xFF800000> : vector<16xf32>
    %49 = vector.multi_reduction <maximumf>, %48, %cst_22 [1] : vector<16x16xf32> to vector<16xf32>
    %50 = vector.shape_cast %49 : vector<16xf32> to vector<16x1xf32>
    %51 = vector.broadcast %50 : vector<16x1xf32> to vector<16x16xf32>
    %52 = arith.subf %48, %51 : vector<16x16xf32>
    %53 = math.exp %52 : vector<16x16xf32>
    %cst_23 = arith.constant dense<0.000000e+00> : vector<16xf32>
    %54 = vector.multi_reduction <add>, %53, %cst_23 [1] : vector<16x16xf32> to vector<16xf32>
    %55 = vector.shape_cast %54 : vector<16xf32> to vector<16x1xf32>
    %56 = arith.truncf %53 : vector<16x16xf32> to vector<16x16xbf16>
    %cst_24 = arith.constant dense<0.000000e+00> : vector<16x64xf32>
    %57 = tpu.matmul %56, %45, %cst_24 {dimension_numbers = #tpu.dot_dimension_numbers<[1], [0], [0], [1], [0, 0, 1, 1], [], []>} : vector<16x16xbf16>, vector<16x64xbf16>, vector<16x64xf32> -> vector<16x64xf32>
    %58 = tpu.reciprocal %55 {approx = true} : vector<16x1xf32> -> vector<16x1xf32>
    %59 = vector.broadcast %58 : vector<16x1xf32> to vector<16x64xf32>
    %60 = arith.mulf %57, %59 : vector<16x64xf32>
    %61 = vector.extract_strided_slice %38 {offsets = [0, 64], sizes = [16, 64], strides = [1, 1]} : vector<16x192xbf16> to vector<16x64xbf16>
    %62 = vector.extract_strided_slice %40 {offsets = [0, 64], sizes = [16, 64], strides = [1, 1]} : vector<16x192xbf16> to vector<16x64xbf16>
    %63 = vector.extract_strided_slice %42 {offsets = [0, 64], sizes = [16, 64], strides = [1, 1]} : vector<16x192xbf16> to vector<16x64xbf16>
    %cst_25 = arith.constant dense<0.000000e+00> : vector<16x16xf32>
    %64 = tpu.matmul %61, %62, %cst_25 {dimension_numbers = #tpu.dot_dimension_numbers<[1], [1], [0], [0], [0, 0, 1, 0], [], []>} : vector<16x64xbf16>, vector<16x64xbf16>, vector<16x16xf32> -> vector<16x16xf32>
    %65 = vector.broadcast %4 : vector<1x16xf32> to vector<16x16xf32>
    %66 = arith.addf %64, %65 : vector<16x16xf32>
    %cst_26 = arith.constant dense<0xFF800000> : vector<16xf32>
    %67 = vector.multi_reduction <maximumf>, %66, %cst_26 [1] : vector<16x16xf32> to vector<16xf32>
    %68 = vector.shape_cast %67 : vector<16xf32> to vector<16x1xf32>
    %69 = vector.broadcast %68 : vector<16x1xf32> to vector<16x16xf32>
    %70 = arith.subf %66, %69 : vector<16x16xf32>
    %71 = math.exp %70 : vector<16x16xf32>
    %cst_27 = arith.constant dense<0.000000e+00> : vector<16xf32>
    %72 = vector.multi_reduction <add>, %71, %cst_27 [1] : vector<16x16xf32> to vector<16xf32>
    %73 = vector.shape_cast %72 : vector<16xf32> to vector<16x1xf32>
    %74 = arith.truncf %71 : vector<16x16xf32> to vector<16x16xbf16>
    %cst_28 = arith.constant dense<0.000000e+00> : vector<16x64xf32>
    %75 = tpu.matmul %74, %63, %cst_28 {dimension_numbers = #tpu.dot_dimension_numbers<[1], [0], [0], [1], [0, 0, 1, 1], [], []>} : vector<16x16xbf16>, vector<16x64xbf16>, vector<16x64xf32> -> vector<16x64xf32>
    %76 = tpu.reciprocal %73 {approx = true} : vector<16x1xf32> -> vector<16x1xf32>
    %77 = vector.broadcast %76 : vector<16x1xf32> to vector<16x64xf32>
    %78 = arith.mulf %75, %77 : vector<16x64xf32>
    %79 = vector.extract_strided_slice %38 {offsets = [0, 128], sizes = [16, 64], strides = [1, 1]} : vector<16x192xbf16> to vector<16x64xbf16>
    %80 = vector.extract_strided_slice %40 {offsets = [0, 128], sizes = [16, 64], strides = [1, 1]} : vector<16x192xbf16> to vector<16x64xbf16>
    %81 = vector.extract_strided_slice %42 {offsets = [0, 128], sizes = [16, 64], strides = [1, 1]} : vector<16x192xbf16> to vector<16x64xbf16>
    %cst_29 = arith.constant dense<0.000000e+00> : vector<16x16xf32>
    %82 = tpu.matmul %79, %80, %cst_29 {dimension_numbers = #tpu.dot_dimension_numbers<[1], [1], [0], [0], [0, 0, 1, 0], [], []>} : vector<16x64xbf16>, vector<16x64xbf16>, vector<16x16xf32> -> vector<16x16xf32>
    %83 = vector.broadcast %4 : vector<1x16xf32> to vector<16x16xf32>
    %84 = arith.addf %82, %83 : vector<16x16xf32>
    %cst_30 = arith.constant dense<0xFF800000> : vector<16xf32>
    %85 = vector.multi_reduction <maximumf>, %84, %cst_30 [1] : vector<16x16xf32> to vector<16xf32>
    %86 = vector.shape_cast %85 : vector<16xf32> to vector<16x1xf32>
    %87 = vector.broadcast %86 : vector<16x1xf32> to vector<16x16xf32>
    %88 = arith.subf %84, %87 : vector<16x16xf32>
    %89 = math.exp %88 : vector<16x16xf32>
    %cst_31 = arith.constant dense<0.000000e+00> : vector<16xf32>
    %90 = vector.multi_reduction <add>, %89, %cst_31 [1] : vector<16x16xf32> to vector<16xf32>
    %91 = vector.shape_cast %90 : vector<16xf32> to vector<16x1xf32>
    %92 = arith.truncf %89 : vector<16x16xf32> to vector<16x16xbf16>
    %cst_32 = arith.constant dense<0.000000e+00> : vector<16x64xf32>
    %93 = tpu.matmul %92, %81, %cst_32 {dimension_numbers = #tpu.dot_dimension_numbers<[1], [0], [0], [1], [0, 0, 1, 1], [], []>} : vector<16x16xbf16>, vector<16x64xbf16>, vector<16x64xf32> -> vector<16x64xf32>
    %94 = tpu.reciprocal %91 {approx = true} : vector<16x1xf32> -> vector<16x1xf32>
    %95 = vector.broadcast %94 : vector<16x1xf32> to vector<16x64xf32>
    %96 = arith.mulf %93, %95 : vector<16x64xf32>
    %97 = tpu.concatenate %60, %78, %96 in 1 : vector<16x64xf32>, vector<16x64xf32>, vector<16x64xf32> -> vector<16x192xf32>
    %98 = arith.truncf %97 : vector<16x192xf32> to vector<16x192xbf16>
    %c0_33 = arith.constant 0 : index
    %c0_34 = arith.constant 0 : index
    %c0_35 = arith.constant 0 : index
    %99 = vector.load %arg8[%c0_33, %c0_34, %c0_35] : memref<1x192x192xbf16, #tpu.memory_space<vmem>>, vector<1x192x192xbf16>
    %100 = vector.shape_cast %99 : vector<1x192x192xbf16> to vector<192x192xbf16>
    %cst_36 = arith.constant dense<0.000000e+00> : vector<16x192xf32>
    %101 = tpu.matmul %98, %100, %cst_36 {dimension_numbers = #tpu.dot_dimension_numbers<[1], [0], [0], [1], [0, 0, 1, 1], [], []>} : vector<16x192xbf16>, vector<192x192xbf16>, vector<16x192xf32> -> vector<16x192xf32>
    %c0_37 = arith.constant 0 : index
    %c0_38 = arith.constant 0 : index
    %c0_39 = arith.constant 0 : index
    %102 = vector.load %arg9[%c0_37, %c0_38, %c0_39] : memref<1x1x192xf32, #tpu.memory_space<vmem>>, vector<1x1x192xf32>
    %103 = vector.shape_cast %102 : vector<1x1x192xf32> to vector<1x192xf32>
    %104 = vector.broadcast %103 : vector<1x192xf32> to vector<16x192xf32>
    %105 = arith.addf %101, %104 : vector<16x192xf32>
    %106 = arith.addf %3, %105 : vector<16x192xf32>
    %c0_40 = arith.constant 0 : index
    %c0_41 = arith.constant 0 : index
    %c0_42 = arith.constant 0 : index
    %107 = vector.load %arg10[%c0_40, %c0_41, %c0_42] : memref<1x1x192xf32, #tpu.memory_space<vmem>>, vector<1x1x192xf32>
    %108 = vector.shape_cast %107 : vector<1x1x192xf32> to vector<1x192xf32>
    %c0_43 = arith.constant 0 : index
    %c0_44 = arith.constant 0 : index
    %c0_45 = arith.constant 0 : index
    %109 = vector.load %arg11[%c0_43, %c0_44, %c0_45] : memref<1x1x192xf32, #tpu.memory_space<vmem>>, vector<1x1x192xf32>
    %110 = vector.shape_cast %109 : vector<1x1x192xf32> to vector<1x192xf32>
    %cst_46 = arith.constant dense<0.000000e+00> : vector<16xf32>
    %111 = vector.multi_reduction <add>, %106, %cst_46 [1] : vector<16x192xf32> to vector<16xf32>
    %112 = vector.shape_cast %111 : vector<16xf32> to vector<16x1xf32>
    %cst_47 = arith.constant 1.920000e+02 : f32
    %113 = vector.broadcast %cst_47 : f32 to vector<16x1xf32>
    %114 = arith.divf %112, %113 : vector<16x1xf32>
    %115 = vector.broadcast %114 : vector<16x1xf32> to vector<16x192xf32>
    %116 = arith.subf %106, %115 : vector<16x192xf32>
    %117 = arith.mulf %116, %116 : vector<16x192xf32>
    %cst_48 = arith.constant dense<0.000000e+00> : vector<16xf32>
    %118 = vector.multi_reduction <add>, %117, %cst_48 [1] : vector<16x192xf32> to vector<16xf32>
    %119 = vector.shape_cast %118 : vector<16xf32> to vector<16x1xf32>
    %cst_49 = arith.constant 1.920000e+02 : f32
    %120 = vector.broadcast %cst_49 : f32 to vector<16x1xf32>
    %121 = arith.divf %119, %120 : vector<16x1xf32>
    %cst_50 = arith.constant 9.99999997E-7 : f32
    %122 = vector.broadcast %cst_50 : f32 to vector<16x1xf32>
    %123 = arith.addf %121, %122 : vector<16x1xf32>
    %124 = math.rsqrt %123 : vector<16x1xf32>
    %125 = vector.broadcast %124 : vector<16x1xf32> to vector<16x192xf32>
    %126 = arith.mulf %116, %125 : vector<16x192xf32>
    %127 = vector.broadcast %108 : vector<1x192xf32> to vector<16x192xf32>
    %128 = arith.mulf %126, %127 : vector<16x192xf32>
    %129 = vector.broadcast %110 : vector<1x192xf32> to vector<16x192xf32>
    %130 = arith.addf %128, %129 : vector<16x192xf32>
    %131 = arith.truncf %130 : vector<16x192xf32> to vector<16x192xbf16>
    %c0_51 = arith.constant 0 : index
    %c0_52 = arith.constant 0 : index
    %c0_53 = arith.constant 0 : index
    %132 = vector.load %arg12[%c0_51, %c0_52, %c0_53] : memref<1x192x768xbf16, #tpu.memory_space<vmem>>, vector<1x192x768xbf16>
    %133 = vector.shape_cast %132 : vector<1x192x768xbf16> to vector<192x768xbf16>
    %cst_54 = arith.constant dense<0.000000e+00> : vector<16x768xf32>
    %134 = tpu.matmul %131, %133, %cst_54 {dimension_numbers = #tpu.dot_dimension_numbers<[1], [0], [0], [1], [0, 0, 1, 1], [], []>} : vector<16x192xbf16>, vector<192x768xbf16>, vector<16x768xf32> -> vector<16x768xf32>
    %c0_55 = arith.constant 0 : index
    %c0_56 = arith.constant 0 : index
    %c0_57 = arith.constant 0 : index
    %135 = vector.load %arg13[%c0_55, %c0_56, %c0_57] : memref<1x1x768xf32, #tpu.memory_space<vmem>>, vector<1x1x768xf32>
    %136 = vector.shape_cast %135 : vector<1x1x768xf32> to vector<1x768xf32>
    %137 = vector.broadcast %136 : vector<1x768xf32> to vector<16x768xf32>
    %138 = arith.addf %134, %137 : vector<16x768xf32>
    %139 = arith.mulf %138, %138 : vector<16x768xf32>
    %140 = arith.mulf %138, %139 : vector<16x768xf32>
    %cst_58 = arith.constant 4.471500e-02 : f32
    %141 = vector.broadcast %cst_58 : f32 to vector<16x768xf32>
    %142 = arith.mulf %141, %140 : vector<16x768xf32>
    %143 = arith.addf %138, %142 : vector<16x768xf32>
    %cst_59 = arith.constant 0.797884583 : f32
    %144 = vector.broadcast %cst_59 : f32 to vector<16x768xf32>
    %145 = arith.mulf %144, %143 : vector<16x768xf32>
    %146 = math.tanh %145 : vector<16x768xf32>
    %cst_60 = arith.constant 1.000000e+00 : f32
    %147 = vector.broadcast %cst_60 : f32 to vector<16x768xf32>
    %148 = arith.addf %147, %146 : vector<16x768xf32>
    %cst_61 = arith.constant 5.000000e-01 : f32
    %149 = vector.broadcast %cst_61 : f32 to vector<16x768xf32>
    %150 = arith.mulf %149, %148 : vector<16x768xf32>
    %151 = arith.mulf %138, %150 : vector<16x768xf32>
    %152 = arith.truncf %151 : vector<16x768xf32> to vector<16x768xbf16>
    %c0_62 = arith.constant 0 : index
    %c0_63 = arith.constant 0 : index
    %c0_64 = arith.constant 0 : index
    %153 = vector.load %arg14[%c0_62, %c0_63, %c0_64] : memref<1x768x192xbf16, #tpu.memory_space<vmem>>, vector<1x768x192xbf16>
    %154 = vector.shape_cast %153 : vector<1x768x192xbf16> to vector<768x192xbf16>
    %cst_65 = arith.constant dense<0.000000e+00> : vector<16x192xf32>
    %155 = tpu.matmul %152, %154, %cst_65 {dimension_numbers = #tpu.dot_dimension_numbers<[1], [0], [0], [1], [0, 0, 1, 1], [], []>} : vector<16x768xbf16>, vector<768x192xbf16>, vector<16x192xf32> -> vector<16x192xf32>
    %c0_66 = arith.constant 0 : index
    %c0_67 = arith.constant 0 : index
    %c0_68 = arith.constant 0 : index
    %156 = vector.load %arg15[%c0_66, %c0_67, %c0_68] : memref<1x1x192xf32, #tpu.memory_space<vmem>>, vector<1x1x192xf32>
    %157 = vector.shape_cast %156 : vector<1x1x192xf32> to vector<1x192xf32>
    %158 = vector.broadcast %157 : vector<1x192xf32> to vector<16x192xf32>
    %159 = arith.addf %155, %158 : vector<16x192xf32>
    %160 = arith.addf %106, %159 : vector<16x192xf32>
    %c0_69 = arith.constant 0 : index
    %c0_70 = arith.constant 0 : index
    %161 = vector.load %arg16[%c0_69, %c0_70] : memref<16x192xf32, #tpu.memory_space<vmem>>, vector<16x192xf32>
    tpu.vector_store %arg16[%c0_69, %c0_70], %160 {strides = array<i32>} : memref<16x192xf32, #tpu.memory_space<vmem>>, vector<16x192xf32>,
    return
  }
  func.func @transform_0(%arg0: i32, %arg1: i32) -> (i32, i32) {
    %c0_i32 = arith.constant 0 : i32
    %c0_i32_0 = arith.constant 0 : i32
    return %arg0, %c0_i32 : i32, i32
  }
  func.func @transform_1(%arg0: i32, %arg1: i32) -> (i32, i32) {
    %c0_i32 = arith.constant 0 : i32
    %c0_i32_0 = arith.constant 0 : i32
    %c0_i32_1 = arith.constant 0 : i32
    return %c0_i32, %c0_i32_0 : i32, i32
  }
  func.func @transform_2(%arg0: i32, %arg1: i32) -> (i32, i32, i32) {
    %c0_i32 = arith.constant 0 : i32
    %c0_i32_0 = arith.constant 0 : i32
    %c0_i32_1 = arith.constant 0 : i32
    return %arg1, %c0_i32, %c0_i32_0 : i32, i32, i32
  }
  func.func @transform_3(%arg0: i32, %arg1: i32) -> (i32, i32, i32) {
    %c0_i32 = arith.constant 0 : i32
    %c0_i32_0 = arith.constant 0 : i32
    %c0_i32_1 = arith.constant 0 : i32
    return %arg1, %c0_i32, %c0_i32_0 : i32, i32, i32
  }
  func.func @transform_4(%arg0: i32, %arg1: i32) -> (i32, i32, i32) {
    %c0_i32 = arith.constant 0 : i32
    %c0_i32_0 = arith.constant 0 : i32
    %c0_i32_1 = arith.constant 0 : i32
    return %arg1, %c0_i32, %c0_i32_0 : i32, i32, i32
  }
  func.func @transform_5(%arg0: i32, %arg1: i32) -> (i32, i32, i32) {
    %c0_i32 = arith.constant 0 : i32
    %c0_i32_0 = arith.constant 0 : i32
    %c0_i32_1 = arith.constant 0 : i32
    return %arg1, %c0_i32, %c0_i32_0 : i32, i32, i32
  }
  func.func @transform_6(%arg0: i32, %arg1: i32) -> (i32, i32, i32) {
    %c0_i32 = arith.constant 0 : i32
    %c0_i32_0 = arith.constant 0 : i32
    %c0_i32_1 = arith.constant 0 : i32
    return %arg1, %c0_i32, %c0_i32_0 : i32, i32, i32
  }
  func.func @transform_7(%arg0: i32, %arg1: i32) -> (i32, i32, i32) {
    %c0_i32 = arith.constant 0 : i32
    %c0_i32_0 = arith.constant 0 : i32
    %c0_i32_1 = arith.constant 0 : i32
    return %arg1, %c0_i32, %c0_i32_0 : i32, i32, i32
  }
  func.func @transform_8(%arg0: i32, %arg1: i32) -> (i32, i32, i32) {
    %c0_i32 = arith.constant 0 : i32
    %c0_i32_0 = arith.constant 0 : i32
    %c0_i32_1 = arith.constant 0 : i32
    return %arg1, %c0_i32, %c0_i32_0 : i32, i32, i32
  }
  func.func @transform_9(%arg0: i32, %arg1: i32) -> (i32, i32, i32) {
    %c0_i32 = arith.constant 0 : i32
    %c0_i32_0 = arith.constant 0 : i32
    %c0_i32_1 = arith.constant 0 : i32
    return %arg1, %c0_i32, %c0_i32_0 : i32, i32, i32
  }
  func.func @transform_10(%arg0: i32, %arg1: i32) -> (i32, i32, i32) {
    %c0_i32 = arith.constant 0 : i32
    %c0_i32_0 = arith.constant 0 : i32
    %c0_i32_1 = arith.constant 0 : i32
    return %arg1, %c0_i32, %c0_i32_0 : i32, i32, i32
  }
  func.func @transform_11(%arg0: i32, %arg1: i32) -> (i32, i32, i32) {
    %c0_i32 = arith.constant 0 : i32
    %c0_i32_0 = arith.constant 0 : i32
    %c0_i32_1 = arith.constant 0 : i32
    return %arg1, %c0_i32, %c0_i32_0 : i32, i32, i32
  }
  func.func @transform_12(%arg0: i32, %arg1: i32) -> (i32, i32, i32) {
    %c0_i32 = arith.constant 0 : i32
    %c0_i32_0 = arith.constant 0 : i32
    %c0_i32_1 = arith.constant 0 : i32
    return %arg1, %c0_i32, %c0_i32_0 : i32, i32, i32
  }
  func.func @transform_13(%arg0: i32, %arg1: i32) -> (i32, i32, i32) {
    %c0_i32 = arith.constant 0 : i32
    %c0_i32_0 = arith.constant 0 : i32
    %c0_i32_1 = arith.constant 0 : i32
    return %arg1, %c0_i32, %c0_i32_0 : i32, i32, i32
  }
  func.func @transform_14(%arg0: i32, %arg1: i32) -> (i32, i32) {
    %c0_i32 = arith.constant 0 : i32
    %c0_i32_0 = arith.constant 0 : i32
    return %arg0, %c0_i32 : i32, i32
  }
}

module attributes {stable_mosaic.version = 11 : i64} {
  func.func @_head_kernel(%arg0: i32, %arg1: memref<2x192xf32, #tpu.memory_space<vmem>>, %arg2: memref<1x192xf32, #tpu.memory_space<vmem>>, %arg3: memref<1x192xf32, #tpu.memory_space<vmem>>, %arg4: memref<192x128xf32, #tpu.memory_space<vmem>>, %arg5: memref<1x128xf32, #tpu.memory_space<vmem>>, %arg6: memref<2x128xf32, #tpu.memory_space<vmem>>) attributes {dimension_semantics = [#tpu.dimension_semantics<arbitrary>], iteration_bounds = array<i64: 1>, scalar_prefetch = 0 : i64, scratch_operands = 0 : i64, tpu.core_type = #tpu.core_type<tc>, window_params = [{pipeline_mode = #tpu.pipeline_mode<synchronous>, transform_indices = @transform_0, window_bounds = array<i64: 2, 192>}, {pipeline_mode = #tpu.pipeline_mode<synchronous>, transform_indices = @transform_1, window_bounds = array<i64: 1, 192>}, {pipeline_mode = #tpu.pipeline_mode<synchronous>, transform_indices = @transform_2, window_bounds = array<i64: 1, 192>}, {pipeline_mode = #tpu.pipeline_mode<synchronous>, transform_indices = @transform_3, window_bounds = array<i64: 192, 128>}, {pipeline_mode = #tpu.pipeline_mode<synchronous>, transform_indices = @transform_4, window_bounds = array<i64: 1, 128>}, {pipeline_mode = #tpu.pipeline_mode<synchronous>, transform_indices = @transform_5, window_bounds = array<i64: 2, 128>}]} {
    %c0 = arith.constant 0 : index
    %c0_0 = arith.constant 0 : index
    %0 = vector.load %arg1[%c0, %c0_0] : memref<2x192xf32, #tpu.memory_space<vmem>>, vector<2x192xf32>
    %c0_1 = arith.constant 0 : index
    %c0_2 = arith.constant 0 : index
    %1 = vector.load %arg2[%c0_1, %c0_2] : memref<1x192xf32, #tpu.memory_space<vmem>>, vector<1x192xf32>
    %c0_3 = arith.constant 0 : index
    %c0_4 = arith.constant 0 : index
    %2 = vector.load %arg3[%c0_3, %c0_4] : memref<1x192xf32, #tpu.memory_space<vmem>>, vector<1x192xf32>
    %cst = arith.constant dense<0.000000e+00> : vector<2xf32>
    %3 = vector.multi_reduction <add>, %0, %cst [1] : vector<2x192xf32> to vector<2xf32>
    %4 = vector.shape_cast %3 : vector<2xf32> to vector<2x1xf32>
    %cst_5 = arith.constant 1.920000e+02 : f32
    %5 = vector.broadcast %cst_5 : f32 to vector<2x1xf32>
    %6 = arith.divf %4, %5 : vector<2x1xf32>
    %7 = vector.broadcast %6 : vector<2x1xf32> to vector<2x192xf32>
    %8 = arith.subf %0, %7 : vector<2x192xf32>
    %9 = arith.mulf %8, %8 : vector<2x192xf32>
    %cst_6 = arith.constant dense<0.000000e+00> : vector<2xf32>
    %10 = vector.multi_reduction <add>, %9, %cst_6 [1] : vector<2x192xf32> to vector<2xf32>
    %11 = vector.shape_cast %10 : vector<2xf32> to vector<2x1xf32>
    %cst_7 = arith.constant 1.920000e+02 : f32
    %12 = vector.broadcast %cst_7 : f32 to vector<2x1xf32>
    %13 = arith.divf %11, %12 : vector<2x1xf32>
    %cst_8 = arith.constant 9.99999997E-7 : f32
    %14 = vector.broadcast %cst_8 : f32 to vector<2x1xf32>
    %15 = arith.addf %13, %14 : vector<2x1xf32>
    %16 = math.rsqrt %15 : vector<2x1xf32>
    %17 = vector.broadcast %16 : vector<2x1xf32> to vector<2x192xf32>
    %18 = arith.mulf %8, %17 : vector<2x192xf32>
    %19 = vector.broadcast %1 : vector<1x192xf32> to vector<2x192xf32>
    %20 = arith.mulf %18, %19 : vector<2x192xf32>
    %21 = vector.broadcast %2 : vector<1x192xf32> to vector<2x192xf32>
    %22 = arith.addf %20, %21 : vector<2x192xf32>
    %c0_9 = arith.constant 0 : index
    %c0_10 = arith.constant 0 : index
    %23 = vector.load %arg4[%c0_9, %c0_10] : memref<192x128xf32, #tpu.memory_space<vmem>>, vector<192x128xf32>
    %cst_11 = arith.constant dense<0.000000e+00> : vector<2x128xf32>
    %24 = tpu.matmul %22, %23, %cst_11 {dimension_numbers = #tpu.dot_dimension_numbers<[1], [0], [0], [1], [0, 0, 1, 1], [], []>} : vector<2x192xf32>, vector<192x128xf32>, vector<2x128xf32> -> vector<2x128xf32>
    %c0_12 = arith.constant 0 : index
    %c0_13 = arith.constant 0 : index
    %25 = vector.load %arg5[%c0_12, %c0_13] : memref<1x128xf32, #tpu.memory_space<vmem>>, vector<1x128xf32>
    %26 = vector.broadcast %25 : vector<1x128xf32> to vector<2x128xf32>
    %27 = arith.addf %24, %26 : vector<2x128xf32>
    %c0_14 = arith.constant 0 : index
    %c0_15 = arith.constant 0 : index
    %28 = vector.load %arg6[%c0_14, %c0_15] : memref<2x128xf32, #tpu.memory_space<vmem>>, vector<2x128xf32>
    tpu.vector_store %arg6[%c0_14, %c0_15], %27 {strides = array<i32>} : memref<2x128xf32, #tpu.memory_space<vmem>>, vector<2x128xf32>,
    return
  }
  func.func @transform_0(%arg0: i32) -> (i32, i32) {
    %c0_i32 = arith.constant 0 : i32
    %c0_i32_0 = arith.constant 0 : i32
    %c0_i32_1 = arith.constant 0 : i32
    return %c0_i32, %c0_i32_0 : i32, i32
  }
  func.func @transform_1(%arg0: i32) -> (i32, i32) {
    %c0_i32 = arith.constant 0 : i32
    %c0_i32_0 = arith.constant 0 : i32
    %c0_i32_1 = arith.constant 0 : i32
    return %c0_i32, %c0_i32_0 : i32, i32
  }
  func.func @transform_2(%arg0: i32) -> (i32, i32) {
    %c0_i32 = arith.constant 0 : i32
    %c0_i32_0 = arith.constant 0 : i32
    %c0_i32_1 = arith.constant 0 : i32
    return %c0_i32, %c0_i32_0 : i32, i32
  }
  func.func @transform_3(%arg0: i32) -> (i32, i32) {
    %c0_i32 = arith.constant 0 : i32
    %c0_i32_0 = arith.constant 0 : i32
    %c0_i32_1 = arith.constant 0 : i32
    return %c0_i32, %c0_i32_0 : i32, i32
  }
  func.func @transform_4(%arg0: i32) -> (i32, i32) {
    %c0_i32 = arith.constant 0 : i32
    %c0_i32_0 = arith.constant 0 : i32
    %c0_i32_1 = arith.constant 0 : i32
    return %c0_i32, %c0_i32_0 : i32, i32
  }
  func.func @transform_5(%arg0: i32) -> (i32, i32) {
    %c0_i32 = arith.constant 0 : i32
    %c0_i32_0 = arith.constant 0 : i32
    %c0_i32_1 = arith.constant 0 : i32
    return %c0_i32, %c0_i32_0 : i32, i32
  }
}

</mosaic_0001>

<bundles_post_ra>
// kernel: vit_tiny_forward.5
= control target key start
LH: loop header
LB: loop body
LE: loop exit
PB: predicated region body
PF: predicated region fallthrough
CT: control target
= control target key end

     0   :  { %s363_s0 = inlined_call_operand.vmem [shape: f32[2,192], index: 0, kind: input, shape index: {}]   ;;  %s364_s1 = inlined_call_operand.vmem [shape: f32[1,192], index: 1, kind: input, shape index: {}]   ;;  %s365_s2 = inlined_call_operand.vmem [shape: f32[1,192], index: 2, kind: input, shape index: {}]   ;;  %s366_s3 = inlined_call_operand.vmem [shape: f32[192,128], index: 3, kind: input, shape index: {}]   ;;  %s367_s4 = inlined_call_operand.vmem [shape: f32[1,128], index: 4, kind: input, shape index: {}]   ;;  %s368_s5 = inlined_call_operand.hbm [shape: f32[2,128], index: 5, kind: output, shape index: {}]  }
   0x1   :  { %v21_v0 = vld [vmem:[%s363_s0] sm:$0xf] }
   0x2   :  { %25 = vst [vmem:[#allocation1] ss:$4 sm:$0xff] %v21_v0 }
   0x3   :  { %10 = vsyncpa [#allocation3], 0  ;;  %vm30_vm0 = vcmask 1041408   ;;  %vm32_vm1 = vcmask 517120   ;;  %v225_v6 = vmov 192.0   ;;  %v112_v26 = vld [vmem:[%s366_s3 + $0x78] sm:$0xff] }
   0x4   :  { %195 = vrcp.f32 %v225_v6  ;;  %v226_v12 = vmov 269488144   ;;  %133 = vmatpush.msra.mxu0 %v112_v26  ;;  %v111_v27 = vld [vmem:[%s366_s3 + $0x70] sm:$0xff]  ;;  %v110_v28 = vld [vmem:[%s366_s3 + $0x68] sm:$0xff]  ;;  %v109_v29 = vld [vmem:[%s366_s3 + $0x60] sm:$0xff]  ;;  %vm130_vm6 = vcmask 523264  }
   0x5   :  { %v263_v13 = vunpack.c.l.s4 %v226_v12  ;;  %v108_v30 = vld [vmem:[%s366_s3 + $0x58] sm:$0xff]  ;;  %v107_v31 = vld [vmem:[%s366_s3 + $0x50] sm:$0xff]  ;;  %v106_v32 = vld [vmem:[%s366_s3 + $0x48] sm:$0xff]  ;;  %s181_s22 = sshll.u32 %s368_s5, 4  ;;  %s182_s22 = int_to_ptr.hbm [resolvable:$true] %s181_s22 }
   0x6   :  { %134 = vmatpush.msra.mxu0 %v111_v27  ;;  %v105_v33 = vld [vmem:[%s366_s3 + $0x40] sm:$0xff]  ;;  %v104_v34 = vld [vmem:[%s366_s3 + $0x38] sm:$0xff]  ;;  %v103_v36 = vld [vmem:[%s366_s3 + $0x30] sm:$0xff] }
   0x7   :  { %v48_v15 = vunpack.c.0.s8 %v263_v13  ;;  %v120_v35 = vld [vmem:[%s366_s3 + $0xb8] sm:$0xff]  ;;  %v119_v37 = vld [vmem:[%s366_s3 + $0xb0] sm:$0xff]  ;;  %v102_v38 = vld [vmem:[%s366_s3 + $0x28] sm:$0xff] }
   0x8   :  { %135 = vmatpush.msra.mxu0 %v110_v28  ;;  %161 = vmatpush.msra.mxu1 %v120_v35  ;;  %v118_v39 = vld [vmem:[%s366_s3 + $0xa8] sm:$0xff]  ;;  %v101_v40 = vld [vmem:[%s366_s3 + $0x20] sm:$0xff]  ;;  %v100_v42 = vld [vmem:[%s366_s3 + $0x18] sm:$0xff] }
   0x9   :  { %v26_v1 = vld.sshfl [vmem:[#allocation1] sm:$0xff pattern:$0x73625140]  ;;  %v27_v2 = vld.sshfl [vmem:[#allocation1 + $0x8] sm:$0xff pattern:$0x73625140] }
   0xa   :  { %v31_v3 = vsel %vm30_vm0, %v26_v1, 0.0  ;;  %v33_v4 = vsel %vm32_vm1, %v27_v2, 0.0  ;;  %v196_v7 = vpop.eup %195  ;;  %136 = vmatpush.msra.mxu0 %v109_v29  ;;  %162 = vmatpush.msra.mxu1 %v119_v37  ;;  %v117_v41 = vld [vmem:[%s366_s3 + $0xa0] sm:$0xff]  ;;  %v116_v43 = vld [vmem:[%s366_s3 + $0x98] sm:$0xff]  ;;  %v99_v44 = vld [vmem:[%s366_s3 + $0x10] sm:$0xff] }
   0xb   :  { %v34_v5 = vadd.f32 %v33_v4, %v31_v3  ;;  %v38_v8 = vmul.f32 192.0, %v196_v7  ;;  %vm42_vm2 = vweird.f32 %v196_v7  ;;  %v115_v46 = vld [vmem:[%s366_s3 + $0x90] sm:$0xff]  ;;  %v98_v48 = vld [vmem:[%s366_s3 + $0x8] sm:$0xff]  ;;  %v97_v51 = vld [vmem:[%s366_s3] sm:$0xff] }
   0xc   :  { %137 = vmatpush.msra.mxu0 %v108_v30  ;;  %163 = vmatpush.msra.mxu1 %v118_v39  ;;  %v114_v49 = vld [vmem:[%s366_s3 + $0x88] sm:$0xff]  ;;  %v113_v52 = vld [vmem:[%s366_s3 + $0x80] sm:$0xff]  ;;  %s227_s3 = smov [#allocation2]  }
   0xd   :  { %35 = vadd.xlane.f32.xlu0 %v34_v5  ;;  %v39_v9 = vsub.f32 1.0, %v38_v8  ;;  %v22_v55 = vld [vmem:[%s364_s1] sm:$0x3]  ;;  %s179_s0 = sshll.u32 %s227_s3, 4  ;;  %s180_s0 = int_to_ptr.vmem [resolvable:$true] %s179_s0 }
   0xe   :  { %138 = vmatpush.msra.mxu0 %v107_v31  ;;  %164 = vmatpush.msra.mxu1 %v117_v41  ;;  %v23_v57 = vld [vmem:[%s365_s2] sm:$0x3]  ;;  %v85_v58 = vperm.slane %v22_v55, 1  ;;  %v84_v62 = vperm.slane %v22_v55, 0 }
   0xf   :  { %v40_v10 = vmul.f32 %v196_v7, %v39_v9  ;;  %v92_v60 = vperm.slane %v23_v57, 1  ;;  %v91_v1 = vperm.slane %v23_v57, 0  ;;  %v194_v12 = vld [vmem:[%s367_s4] ss:$0 sm:$0xff] }
  0x10   :  { %139 = vmatpush.msra.mxu0 %v106_v32  ;;  %165 = vmatpush.msra.mxu1 %v116_v43  ;;  %v86_v63 = vrot.slane %v85_v58, 6 }
  0x11   :  { %v41_v11 = vadd.f32 %v196_v7, %v40_v10  ;;  %v93_v2 = vrot.slane %v92_v60, 6 }
  0x12   :  { %140 = vmatpush.msra.mxu0 %v105_v33  ;;  %166 = vmatpush.msra.mxu1 %v115_v46  ;;  %v87_v5 = vsel %vm30_vm0, %v84_v62, %v86_v63 }
  0x13   :  { %v43_v14 = vsel %vm42_vm2, %v196_v7, %v41_v11  ;;  %v94_v7 = vsel %vm30_vm0, %v91_v1, %v93_v2 }
  0x14   :  { %141 = vmatpush.msra.mxu0 %v104_v34  ;;  %167 = vmatpush.msra.mxu1 %v114_v49 }
  0x16   :  { %142 = vmatpush.msra.mxu0 %v103_v36  ;;  %168 = vmatpush.msra.mxu1 %v113_v52 }
  0x18   :  { %143 = vmatpush.msra.mxu0 %v102_v38 }
  0x1a   :  { %144 = vmatpush.msra.mxu0 %v101_v40 }
  0x1c   :  { %145 = vmatpush.msra.mxu0 %v100_v42 }
  0x1e   :  { %146 = vmatpush.msra.mxu0 %v99_v44 }
  0x20   :  { %147 = vmatpush.msra.mxu0 %v98_v48 }
  0x22   :  { %148 = vmatpush.msra.mxu0 %v97_v51 }
  0x80   :  { %v36_v16 = vpop.xlane.xlu0 %35 }
  0x81   :  { %v44_v17 = vmul.f32 %v43_v14, %v36_v16 }
  0x83   :  { %v49_v18 = vperm.slane %v44_v17, %v48_v15 }
  0x85   :  { %v268_v19 = vsub.f32 %v21_v0, %v49_v18 }
  0x87   :  { %v52_v20 = vmul.f32 %v268_v19, %v268_v19 }
  0x89   :  { %54 = vst [vmem:[#allocation1] ss:$4 sm:$0xff] %v52_v20 }
  0x90   :  { %v55_v21 = vld.sshfl [vmem:[#allocation1] sm:$0xff pattern:$0x73625140]  ;;  %v56_v22 = vld.sshfl [vmem:[#allocation1 + $0x8] sm:$0xff pattern:$0x73625140] }
  0x91   :  { %v59_v23 = vsel %vm30_vm0, %v55_v21, 0.0  ;;  %v60_v24 = vsel %vm32_vm1, %v56_v22, 0.0 }
  0x92   :  { %v61_v25 = vadd.f32 %v60_v24, %v59_v23 }
  0x94   :  { %62 = vadd.xlane.f32.xlu0 %v61_v25 }
 0x107   :  { %v63_v45 = vpop.xlane.xlu0 %62 }
 0x108   :  { %v64_v47 = vmul.f32 %v63_v45, %v43_v14 }
 0x10a   :  { %v65_v50 = vadd.f32 1e-06, %v64_v47 }
 0x10c   :  { %197 = vrsqrt.f32 %v65_v50  ;;  %vm72_vm4 = vweird.f32 %v65_v50 }
 0x112   :  { %v198_v53 = vpop.eup %197 }
 0x113   :  { %v67_v54 = vmul.f32 %v198_v53, %v65_v50  ;;  %vm73_vm3 = vweird.f32 %v198_v53 }
 0x114   :  { %vm74_vm5 = vmor %vm72_vm4, %vm73_vm3 }
 0x115   :  { %v68_v56 = vmul.f32 %v198_v53, %v67_v54 }
 0x117   :  { %v69_v59 = vmul.f32 0.5, %v68_v56 }
 0x119   :  { %v70_v61 = vsub.f32 1.5, %v69_v59 }
 0x11b   :  { %v71_v0 = vmul.f32 %v198_v53, %v70_v61 }
 0x11d   :  { %v75_v3 = vsel %vm74_vm5, %v198_v53, %v71_v0 }
 0x11e   :  { %v80_v4 = vperm.slane %v75_v3, %v48_v15 }
 0x120   :  { %v82_v6 = vmul.f32 %v80_v4, %v268_v19 }
 0x122   :  { %v89_v8 = vmul.f32 %v87_v5, %v82_v6 }
 0x124   :  { %v96_v9 = vadd.f32 %v94_v7, %v89_v8 }
 0x126   :  { %126 = vst [vmem:[#allocation1] ss:$4 sm:$0xff] %v96_v9 }
 0x12d   :  { %v127_v10 = vld.sshfl [vmem:[#allocation1] sm:$0xff pattern:$0x73625140]  ;;  %v128_v11 = vld.sshfl [vmem:[#allocation1 + $0x8] sm:$0xff pattern:$0x73625140] }
 0x12e   :  { %149 = vmatmul.f32.vlgmr.msra.gmra.mxu0 %v127_v10  ;;  %190 = vmatmul.msk.f32.vlgmr.msra.gmra.mxu1 %vm130_vm6, %v128_v11 }
 0x1ab   :  { %v150_v13 = vpop.f32.mrf.mxu0  ;;  %v170_v15 = vpop.f32.mrf.mxu1 }
 0x1ac   :  { %v151_v14 = vadd.f32 %v194_v12, %v150_v13 }
 0x1ae   :  { %v171_v16 = vadd.f32 %v170_v15, %v151_v14 }
 0x1b0   :  { %173 = vst [vmem:[#allocation2] sm:$0x3] %v171_v16 }
 0x1b1   :  { %184 = dma.vmem_to_hbm [thread:$0]  %s180_s0, 32, %s182_s22, [#allocation3]  }
 0x1b2   :  { %223 = dma.done.wait [#allocation3], 32  }
 0x1b3   :  { %224 = vsyncadd [#allocation3], 4294967264 }
 0x1b4   :  { %189 = vsyncpa [#allocation3], 1 }

// kernel: vit_tiny_forward.3
= control target key start
LH: loop header
LB: loop body
LE: loop exit
PB: predicated region body
PF: predicated region fallthrough
CT: control target
= control target key end

     0   :  { %s1532_s12 = smov 0   ;;  %s2178_s0 = inlined_call_operand.vmem [shape: bf16[2,4,768], index: 0, kind: input, shape index: {}]   ;;  %s2179_s1 = inlined_call_operand.vmem [shape: bf16[768,192], index: 1, kind: input, shape index: {}]   ;;  %s2180_s2 = inlined_call_operand.vmem [shape: f32[16,192], index: 2, kind: input, shape index: {}]   ;;  %s2181_s3 = inlined_call_operand.vmem [shape: f32[32,192], index: 3, kind: output, shape index: {}]  }
   0x1 LB: > { %s1538_s13 = sadd.s32 4294967295, %s1510_s12   ;;  %p1007_p0 = scmp.ge.s32.totalorder %s1510_s12, 1  ;;  %s1510_s12 = sphi %s1532_s12, %s13_s12  }
   0x2   : > { %p137_p1 = scmp.lt.s32.totalorder %s1510_s12, 3 }
   0x4   : > { %p138_p2 = pnand %p1007_p0, %p137_p1 }
   0x5   : > { %p162_p3 = scmp.lt.s32.totalorder (!%p138_p2), %s1538_s13, 1  ;;  %s1009_s29 = sshll.u32 (!%p138_p2), %s1538_s13, 1 }
   0x6   : > { %141 = sbr.rel (%p138_p2) target bundleno = 252 (0xfc), region = 32  ;;  %p168_p4 = scmp.lt.s32.totalorder (!%p138_p2), %s1009_s29, 3 }
   0xb   : > { %v1070_v0 = vld [vmem:[%s2179_s1 + $0x70] sm:$0xf]  ;;  %v1414_v1 = vld [vmem:[%s2179_s1 + $0x74] sm:$0xf0]  ;;  %v1062_v11 = vld [vmem:[%s2179_s1 + $0x60] sm:$0xf] }
   0xc   : > { %v1134_v2 = vld [vmem:[%s2179_s1 + $0xf0] sm:$0xf]  ;;  %v1071_v3 = vor.u32 %v1414_v1, %v1070_v0  ;;  %v1430_v4 = vld [vmem:[%s2179_s1 + $0xf4] sm:$0xf0]  ;;  %v1412_v13 = vld [vmem:[%s2179_s1 + $0x64] sm:$0xf0] }
   0xd   : > { %v1198_v5 = vld [vmem:[%s2179_s1 + $0x170] sm:$0xf]  ;;  %v1446_v6 = vld [vmem:[%s2179_s1 + $0x174] sm:$0xf0]  ;;  %v1135_v7 = vor.u32 %v1430_v4, %v1134_v2  ;;  %v1126_v14 = vld [vmem:[%s2179_s1 + $0xe0] sm:$0xf]  ;;  %v1063_v16 = vor.u32 %v1412_v13, %v1062_v11 }
   0xe   : > { %v1199_v8 = vor.u32 %v1446_v6, %v1198_v5  ;;  %v1262_v9 = vld [vmem:[%s2179_s1 + $0x1f0] sm:$0xf]  ;;  %v1462_v10 = vld [vmem:[%s2179_s1 + $0x1f4] sm:$0xf0]  ;;  %778 = vmatpush.bf16.msra.mxu0 %v1071_v3  ;;  %v1428_v15 = vld [vmem:[%s2179_s1 + $0xe4] sm:$0xf0] }
   0xf   : > { %v1263_v12 = vor.u32 %v1462_v10, %v1262_v9  ;;  %791 = vmatpush.bf16.msra.mxu1 %v1135_v7  ;;  %v1127_v17 = vor.u32 %v1428_v15, %v1126_v14  ;;  %v1190_v18 = vld [vmem:[%s2179_s1 + $0x160] sm:$0xf]  ;;  %v1444_v19 = vld [vmem:[%s2179_s1 + $0x164] sm:$0xf0]  ;;  %v1054_v23 = vld [vmem:[%s2179_s1 + $0x50] sm:$0xf] }
  0x10   : > { %804 = vmatpush.bf16.msra.mxu2 %v1199_v8  ;;  %v1254_v20 = vld [vmem:[%s2179_s1 + $0x1e0] sm:$0xf]  ;;  %v1191_v21 = vor.u32 %v1444_v19, %v1190_v18  ;;  %v1460_v22 = vld [vmem:[%s2179_s1 + $0x1e4] sm:$0xf0]  ;;  %v1410_v24 = vld [vmem:[%s2179_s1 + $0x54] sm:$0xf0] }
  0x11   : > { %817 = vmatpush.bf16.msra.mxu3 %v1263_v12  ;;  %v1255_v25 = vor.u32 %v1460_v22, %v1254_v20  ;;  %v1118_v26 = vld [vmem:[%s2179_s1 + $0xd0] sm:$0xf]  ;;  %v1426_v27 = vld [vmem:[%s2179_s1 + $0xd4] sm:$0xf0]  ;;  %v1055_v29 = vor.u32 %v1410_v24, %v1054_v23  ;;  %v1046_v35 = vld [vmem:[%s2179_s1 + $0x40] sm:$0xf] }
  0x12   : > { %v1182_v28 = vld [vmem:[%s2179_s1 + $0x150] sm:$0xf]  ;;  %779 = vmatpush.bf16.msra.mxu0 %v1063_v16  ;;  %v1442_v30 = vld [vmem:[%s2179_s1 + $0x154] sm:$0xf0]  ;;  %v1119_v33 = vor.u32 %v1426_v27, %v1118_v26  ;;  %v1408_v36 = vld [vmem:[%s2179_s1 + $0x44] sm:$0xf0] }
  0x13   : > { %v1246_v31 = vld [vmem:[%s2179_s1 + $0x1d0] sm:$0xf]  ;;  %v1458_v32 = vld [vmem:[%s2179_s1 + $0x1d4] sm:$0xf0]  ;;  %792 = vmatpush.bf16.msra.mxu1 %v1127_v17  ;;  %v1183_v34 = vor.u32 %v1442_v30, %v1182_v28  ;;  %v1110_v37 = vld [vmem:[%s2179_s1 + $0xc0] sm:$0xf]  ;;  %v1047_v44 = vor.u32 %v1408_v36, %v1046_v35 }
  0x14   : > { %805 = vmatpush.bf16.msra.mxu2 %v1191_v21  ;;  %v1247_v38 = vor.u32 %v1458_v32, %v1246_v31  ;;  %v1424_v39 = vld [vmem:[%s2179_s1 + $0xc4] sm:$0xf0]  ;;  %v1174_v40 = vld [vmem:[%s2179_s1 + $0x140] sm:$0xf]  ;;  %v1038_v47 = vld [vmem:[%s2179_s1 + $0x30] sm:$0xf] }
  0x15   : > { %818 = vmatpush.bf16.msra.mxu3 %v1255_v25  ;;  %v1440_v41 = vld [vmem:[%s2179_s1 + $0x144] sm:$0xf0]  ;;  %v1238_v42 = vld [vmem:[%s2179_s1 + $0x1c0] sm:$0xf]  ;;  %v1111_v45 = vor.u32 %v1424_v39, %v1110_v37  ;;  %v1406_v48 = vld [vmem:[%s2179_s1 + $0x34] sm:$0xf0] }
  0x16   : > { %v1456_v43 = vld [vmem:[%s2179_s1 + $0x1c4] sm:$0xf0]  ;;  %780 = vmatpush.bf16.msra.mxu0 %v1055_v29  ;;  %v1175_v46 = vor.u32 %v1440_v41, %v1174_v40  ;;  %v1102_v49 = vld [vmem:[%s2179_s1 + $0xb0] sm:$0xf]  ;;  %v1422_v51 = vld [vmem:[%s2179_s1 + $0xb4] sm:$0xf0]  ;;  %v1039_v56 = vor.u32 %v1406_v48, %v1038_v47 }
  0x17   : > { %793 = vmatpush.bf16.msra.mxu1 %v1119_v33  ;;  %v1239_v50 = vor.u32 %v1456_v43, %v1238_v42  ;;  %v1166_v52 = vld [vmem:[%s2179_s1 + $0x130] sm:$0xf]  ;;  %v1438_v53 = vld [vmem:[%s2179_s1 + $0x134] sm:$0xf0]  ;;  %v1103_v57 = vor.u32 %v1422_v51, %v1102_v49  ;;  %v1030_v59 = vld [vmem:[%s2179_s1 + $0x20] sm:$0xf] }
  0x18   : > { %806 = vmatpush.bf16.msra.mxu2 %v1183_v34  ;;  %v1230_v54 = vld [vmem:[%s2179_s1 + $0x1b0] sm:$0xf]  ;;  %v1454_v55 = vld [vmem:[%s2179_s1 + $0x1b4] sm:$0xf0]  ;;  %v1167_v58 = vor.u32 %v1438_v53, %v1166_v52  ;;  %v1404_v60 = vld [vmem:[%s2179_s1 + $0x24] sm:$0xf0] }
  0x19   : > { %819 = vmatpush.bf16.msra.mxu3 %v1247_v38  ;;  %v1094_v61 = vld [vmem:[%s2179_s1 + $0xa0] sm:$0xf]  ;;  %v1231_v62 = vor.u32 %v1454_v55, %v1230_v54  ;;  %v1420_v63 = vld [vmem:[%s2179_s1 + $0xa4] sm:$0xf0]  ;;  %v1031_v4 = vor.u32 %v1404_v60, %v1030_v59  ;;  %v1022_v7 = vld [vmem:[%s2179_s1 + $0x10] sm:$0xf] }
  0x1a   : > { %781 = vmatpush.bf16.msra.mxu0 %v1047_v44  ;;  %v1158_v0 = vld [vmem:[%s2179_s1 + $0x120] sm:$0xf]  ;;  %v1436_v1 = vld [vmem:[%s2179_s1 + $0x124] sm:$0xf0]  ;;  %v1095_v5 = vor.u32 %v1420_v63, %v1094_v61  ;;  %v1402_v8 = vld [vmem:[%s2179_s1 + $0x14] sm:$0xf0] }
  0x1b   : > { %794 = vmatpush.bf16.msra.mxu1 %v1111_v45  ;;  %v1222_v2 = vld [vmem:[%s2179_s1 + $0x1a0] sm:$0xf]  ;;  %v1452_v3 = vld [vmem:[%s2179_s1 + $0x1a4] sm:$0xf0]  ;;  %v1159_v6 = vor.u32 %v1436_v1, %v1158_v0  ;;  %v1086_v9 = vld [vmem:[%s2179_s1 + $0x90] sm:$0xf]  ;;  %v1023_v16 = vor.u32 %v1402_v8, %v1022_v7 }
  0x1c   : > { %807 = vmatpush.bf16.msra.mxu2 %v1175_v46  ;;  %v1223_v10 = vor.u32 %v1452_v3, %v1222_v2  ;;  %v1418_v11 = vld [vmem:[%s2179_s1 + $0x94] sm:$0xf0]  ;;  %v1150_v12 = vld [vmem:[%s2179_s1 + $0x110] sm:$0xf]  ;;  %v1014_v17 = vld [vmem:[%s2179_s1] sm:$0xf] }
  0x1d   : > { %820 = vmatpush.bf16.msra.mxu3 %v1239_v50  ;;  %v1434_v13 = vld [vmem:[%s2179_s1 + $0x114] sm:$0xf0]  ;;  %v1214_v14 = vld [vmem:[%s2179_s1 + $0x190] sm:$0xf]  ;;  %v1400_v18 = vld [vmem:[%s2179_s1 + $0x4] sm:$0xf0]  ;;  %v1087_v19 = vor.u32 %v1418_v11, %v1086_v9 }
  0x1e   : > { %782 = vmatpush.bf16.msra.mxu0 %v1039_v56  ;;  %v1450_v15 = vld [vmem:[%s2179_s1 + $0x194] sm:$0xf0]  ;;  %v1151_v20 = vor.u32 %v1434_v13, %v1150_v12  ;;  %v1078_v21 = vld [vmem:[%s2179_s1 + $0x80] sm:$0xf]  ;;  %v1416_v22 = vld [vmem:[%s2179_s1 + $0x84] sm:$0xf0]  ;;  %v1015_v31 = vor.u32 %v1400_v18, %v1014_v17 }
  0x1f   : > { %795 = vmatpush.bf16.msra.mxu1 %v1103_v57  ;;  %v1142_v23 = vld [vmem:[%s2179_s1 + $0x100] sm:$0xf]  ;;  %v1215_v24 = vor.u32 %v1450_v15, %v1214_v14  ;;  %v1432_v25 = vld [vmem:[%s2179_s1 + $0x104] sm:$0xf0]  ;;  %v1326_v28 = vld [vmem:[%s2179_s1 + $0x270] sm:$0xf]  ;;  %v1079_v35 = vor.u32 %v1416_v22, %v1078_v21 }
  0x20   : > { %808 = vmatpush.bf16.msra.mxu2 %v1167_v58  ;;  %v1206_v26 = vld [vmem:[%s2179_s1 + $0x180] sm:$0xf]  ;;  %v1448_v27 = vld [vmem:[%s2179_s1 + $0x184] sm:$0xf0]  ;;  %v1478_v29 = vld [vmem:[%s2179_s1 + $0x274] sm:$0xf0]  ;;  %v1143_v36 = vor.u32 %v1432_v25, %v1142_v23 }
  0x21   : > { %821 = vmatpush.bf16.msra.mxu3 %v1231_v62  ;;  %v1390_v30 = vld [vmem:[%s2179_s1 + $0x2f0] sm:$0xf]  ;;  %v1494_v32 = vld [vmem:[%s2179_s1 + $0x2f4] sm:$0xf0]  ;;  %v1413_v33 = vld [vmem:[%s2179_s1 + $0x74] sm:$0xf]  ;;  %v1207_v39 = vor.u32 %v1448_v27, %v1206_v26  ;;  %v1327_v40 = vor.u32 %v1478_v29, %v1326_v28 }
  0x22   : > { %783 = vmatpush.bf16.msra.mxu0 %v1031_v4  ;;  %v1072_v34 = vld [vmem:[%s2179_s1 + $0x78] sm:$0xf0]  ;;  %v1429_v37 = vld [vmem:[%s2179_s1 + $0xf4] sm:$0xf]  ;;  %v1391_v41 = vor.u32 %v1494_v32, %v1390_v30  ;;  %v1318_v43 = vld [vmem:[%s2179_s1 + $0x260] sm:$0xf] }
  0x23   : > { %796 = vmatpush.bf16.msra.mxu1 %v1095_v5  ;;  %v1136_v38 = vld [vmem:[%s2179_s1 + $0xf8] sm:$0xf0]  ;;  %v1075_v42 = vor.u32 %v1413_v33, %v1072_v34  ;;  %v1476_v44 = vld [vmem:[%s2179_s1 + $0x264] sm:$0xf0]  ;;  %v1382_v45 = vld [vmem:[%s2179_s1 + $0x2e0] sm:$0xf] }
  0x24   : > { %809 = vmatpush.bf16.msra.mxu2 %v1159_v6  ;;  %v1139_v46 = vor.u32 %v1429_v37, %v1136_v38  ;;  %v1492_v47 = vld [vmem:[%s2179_s1 + $0x2e4] sm:$0xf0]  ;;  %v1411_v48 = vld [vmem:[%s2179_s1 + $0x64] sm:$0xf]  ;;  %v1064_v49 = vld [vmem:[%s2179_s1 + $0x68] sm:$0xf0]  ;;  %v1319_v52 = vor.u32 %v1476_v44, %v1318_v43 }
  0x25   : > { %822 = vmatpush.bf16.msra.mxu3 %v1223_v10  ;;  %v1427_v50 = vld [vmem:[%s2179_s1 + $0xe4] sm:$0xf]  ;;  %v1128_v51 = vld [vmem:[%s2179_s1 + $0xe8] sm:$0xf0]  ;;  %v1310_v53 = vld [vmem:[%s2179_s1 + $0x250] sm:$0xf]  ;;  %v1383_v54 = vor.u32 %v1492_v47, %v1382_v45  ;;  %v1067_v55 = vor.u32 %v1411_v48, %v1064_v49 }
  0x26   : > { %784 = vmatpush.bf16.msra.mxu0 %v1023_v16  ;;  %v1474_v56 = vld [vmem:[%s2179_s1 + $0x254] sm:$0xf0]  ;;  %v1374_v57 = vld [vmem:[%s2179_s1 + $0x2d0] sm:$0xf]  ;;  %v1131_v58 = vor.u32 %v1427_v50, %v1128_v51  ;;  %v1409_v60 = vld [vmem:[%s2179_s1 + $0x54] sm:$0xf] }
  0x27   : > { %797 = vmatpush.bf16.msra.mxu1 %v1087_v19  ;;  %v1490_v59 = vld [vmem:[%s2179_s1 + $0x2d4] sm:$0xf0]  ;;  %v1056_v61 = vld [vmem:[%s2179_s1 + $0x58] sm:$0xf0]  ;;  %v1425_v62 = vld [vmem:[%s2179_s1 + $0xd4] sm:$0xf]  ;;  %v1311_v0 = vor.u32 %v1474_v56, %v1310_v53 }
  0x28   : > { %810 = vmatpush.bf16.msra.mxu2 %v1151_v20  ;;  %v1120_v63 = vld [vmem:[%s2179_s1 + $0xd8] sm:$0xf0]  ;;  %s163_s15 = scalar_select %p162_p3, %s1538_s13, 1  ;;  %v1302_v1 = vld [vmem:[%s2179_s1 + $0x240] sm:$0xf]  ;;  %v1375_v2 = vor.u32 %v1490_v59, %v1374_v57  ;;  %v1059_v3 = vor.u32 %v1409_v60, %v1056_v61  ;;  %vm179_vm0 = vcmask 523264  }
  0x29   : > { %823 = vmatpush.bf16.msra.mxu3 %v1215_v24  ;;  %v1472_v4 = vld [vmem:[%s2179_s1 + $0x244] sm:$0xf0]  ;;  %v1366_v5 = vld [vmem:[%s2179_s1 + $0x2c0] sm:$0xf]  ;;  %v1123_v6 = vor.u32 %v1425_v62, %v1120_v63  ;;  %v1407_v8 = vld [vmem:[%s2179_s1 + $0x44] sm:$0xf] }
  0x2a   : > { %785 = vmatpush.bf16.msra.mxu0 %v1015_v31  ;;  %s1495_s22 = smul.u32 12, %s163_s15  ;;  %v1488_v7 = vld [vmem:[%s2179_s1 + $0x2c4] sm:$0xf0]  ;;  %v1048_v9 = vld [vmem:[%s2179_s1 + $0x48] sm:$0xf0]  ;;  %v1303_v12 = vor.u32 %v1472_v4, %v1302_v1  ;;  %s2183_s29 = smov (!%p168_p4, %s1009_s29), 3 }
  0x2b   : > { %798 = vmatpush.bf16.msra.mxu1 %v1079_v35  ;;  %v1423_v10 = vld [vmem:[%s2179_s1 + $0xc4] sm:$0xf]  ;;  %v1112_v11 = vld [vmem:[%s2179_s1 + $0xc8] sm:$0xf0]  ;;  %v1294_v13 = vld [vmem:[%s2179_s1 + $0x230] sm:$0xf]  ;;  %v1367_v15 = vor.u32 %v1488_v7, %v1366_v5  ;;  %v1051_v16 = vor.u32 %v1407_v8, %v1048_v9 }
  0x2c   : > { %811 = vmatpush.bf16.msra.mxu2 %v1143_v36  ;;  %s1835_s8 = scalar_lea.vmem %s2178_s0, %s1495_s22  ;;  %v1470_v17 = vld [vmem:[%s2179_s1 + $0x234] sm:$0xf0]  ;;  %v1358_v18 = vld [vmem:[%s2179_s1 + $0x2b0] sm:$0xf]  ;;  %v1115_v19 = vor.u32 %v1423_v10, %v1112_v11  ;;  %v1405_v21 = vld [vmem:[%s2179_s1 + $0x34] sm:$0xf] }
  0x2d   : > { %824 = vmatpush.bf16.msra.mxu3 %v1207_v39  ;;  %v183_v14 = vld [vmem:[%s1835_s8] sm:$0xff]  ;;  %v1486_v20 = vld [vmem:[%s2179_s1 + $0x2b4] sm:$0xf0]  ;;  %v1040_v22 = vld [vmem:[%s2179_s1 + $0x38] sm:$0xf0]  ;;  %v1295_v25 = vor.u32 %v1470_v17, %v1294_v13  ;;  %s1398_s30 = sshll.u32 %s2183_s29, 4 }
  0x2e   : > { %830 = vmatpush.bf16.msrb.mxu0 %v1327_v40  ;;  %282 = vst [vmem:[#allocation1] ss:$4 sm:$0xff] %v183_v14  ;;  %v1421_v23 = vld [vmem:[%s2179_s1 + $0xb4] sm:$0xf]  ;;  %v1104_v24 = vld [vmem:[%s2179_s1 + $0xb8] sm:$0xf0]  ;;  %v1359_v27 = vor.u32 %v1486_v20, %v1358_v18  ;;  %v1043_v28 = vor.u32 %v1405_v21, %v1040_v22  ;;  %s2155_s6 = scalar_lea.vmem %s2181_s3, %s1398_s30 }
  0x2f   : > { %843 = vmatpush.bf16.msrb.mxu1 %v1391_v41  ;;  %v1286_v26 = vld [vmem:[%s2179_s1 + $0x220] sm:$0xf]  ;;  %v1468_v29 = vld [vmem:[%s2179_s1 + $0x224] sm:$0xf0]  ;;  %v1107_v32 = vor.u32 %v1421_v23, %v1104_v24  ;;  %v1403_v33 = vld [vmem:[%s2179_s1 + $0x24] sm:$0xf] }
  0x30   : > { %856 = vmatpush.bf16.msrb.mxu2 %v1075_v42  ;;  %v1350_v30 = vld [vmem:[%s2179_s1 + $0x2a0] sm:$0xf]  ;;  %v1484_v31 = vld [vmem:[%s2179_s1 + $0x2a4] sm:$0xf0]  ;;  %v1032_v34 = vld [vmem:[%s2179_s1 + $0x28] sm:$0xf0]  ;;  %v1287_v41 = vor.u32 %v1468_v29, %v1286_v26 }
  0x31   : > { %869 = vmatpush.bf16.msrb.mxu3 %v1139_v46  ;;  %v1419_v35 = vld [vmem:[%s2179_s1 + $0xa4] sm:$0xf]  ;;  %v1096_v36 = vld [vmem:[%s2179_s1 + $0xa8] sm:$0xf0]  ;;  %v1278_v37 = vld [vmem:[%s2179_s1 + $0x210] sm:$0xf]  ;;  %v1351_v44 = vor.u32 %v1484_v31, %v1350_v30  ;;  %v1035_v45 = vor.u32 %v1403_v33, %v1032_v34 }
  0x32   : > { %831 = vmatpush.bf16.msrb.mxu0 %v1319_v52  ;;  %v1466_v38 = vld [vmem:[%s2179_s1 + $0x214] sm:$0xf0]  ;;  %v1342_v42 = vld [vmem:[%s2179_s1 + $0x290] sm:$0xf]  ;;  %v1099_v48 = vor.u32 %v1419_v35, %v1096_v36  ;;  %v1401_v49 = vld [vmem:[%s2179_s1 + $0x14] sm:$0xf] }
  0x33   : > { %844 = vmatpush.bf16.msrb.mxu1 %v1383_v54  ;;  %v1482_v43 = vld [vmem:[%s2179_s1 + $0x294] sm:$0xf0]  ;;  %v1024_v50 = vld [vmem:[%s2179_s1 + $0x18] sm:$0xf0]  ;;  %v184_v51 = vld [vmem:[%s1835_s8 + $0x8] sm:$0xf]  ;;  %v1279_v54 = vor.u32 %v1466_v38, %v1278_v37 }
  0x34   : > { %857 = vmatpush.bf16.msrb.mxu2 %v1067_v55  ;;  %v1417_v52 = vld [vmem:[%s2179_s1 + $0x94] sm:$0xf]  ;;  %v1088_v53 = vld [vmem:[%s2179_s1 + $0x98] sm:$0xf0]  ;;  %285 = vst [vmem:[#allocation1 + $0x20] ss:$4 sm:$0xff] %v184_v51  ;;  %v1343_v57 = vor.u32 %v1482_v43, %v1342_v42 }
  0x35   : > { %870 = vmatpush.bf16.msrb.mxu3 %v1131_v58  ;;  %v1892_v39 = vld.sshfl [vmem:[#allocation1] sm:$0xff pattern:$0x73625140]  ;;  %v1894_v40 = vld.sshfl [vmem:[#allocation1 + $0x10] sm:$0xff pattern:$0x73625140]  ;;  %v1027_v58 = vor.u32 %v1401_v49, %v1024_v50  ;;  %v1091_v62 = vor.u32 %v1417_v52, %v1088_v53 }
  0x36   : > { %832 = vmatpush.bf16.msrb.mxu0 %v1311_v0  ;;  %v1902_v46 = vld.sshfl [vmem:[#allocation1 + $0x18] sm:$0xff pattern:$0x73625140]  ;;  %v1904_v47 = vld.sshfl [vmem:[#allocation1 + $0x8] sm:$0xff pattern:$0x73625140]  ;;  %812 = vmatmul.bf16.vlgmr.msra.gmra.mxu2 %v1894_v40 }
  0x37   : > { %845 = vmatpush.bf16.msrb.mxu1 %v1375_v2  ;;  %786 = vmatmul.bf16.vlgmr.msra.gmra.mxu0 %v1892_v39  ;;  %v1270_v55 = vld [vmem:[%s2179_s1 + $0x200] sm:$0xf]  ;;  %v1464_v56 = vld [vmem:[%s2179_s1 + $0x204] sm:$0xf0]  ;;  %v1399_v61 = vld [vmem:[%s2179_s1 + $0x4] sm:$0xf] }
  0x38   : > { %858 = vmatpush.bf16.msrb.mxu2 %v1059_v3  ;;  %825 = vmatmul.bf16.vlgmr.msra.gmra.mxu3 %v1902_v46  ;;  %v1334_v59 = vld [vmem:[%s2179_s1 + $0x280] sm:$0xf]  ;;  %v1480_v60 = vld [vmem:[%s2179_s1 + $0x284] sm:$0xf0]  ;;  %v1016_v63 = vld [vmem:[%s2179_s1 + $0x8] sm:$0xf0]  ;;  %v1271_v5 = vor.u32 %v1464_v56, %v1270_v55 }
  0x39   : > { %871 = vmatpush.bf16.msrb.mxu3 %v1123_v6  ;;  %799 = vmatmul.bf16.vlgmr.msra.gmra.mxu1 %v1904_v47  ;;  %v1415_v0 = vld [vmem:[%s2179_s1 + $0x84] sm:$0xf]  ;;  %v1080_v1 = vld [vmem:[%s2179_s1 + $0x88] sm:$0xf0]  ;;  %v1445_v2 = vld [vmem:[%s2179_s1 + $0x174] sm:$0xf]  ;;  %v1335_v9 = vor.u32 %v1480_v60, %v1334_v59  ;;  %v1019_v10 = vor.u32 %v1399_v61, %v1016_v63 }
  0x3a   : > { %833 = vmatpush.bf16.msrb.mxu0 %v1303_v12  ;;  %v1200_v3 = vld [vmem:[%s2179_s1 + $0x178] sm:$0xf0]  ;;  %v1461_v4 = vld [vmem:[%s2179_s1 + $0x1f4] sm:$0xf]  ;;  %v1083_v13 = vor.u32 %v1415_v0, %v1080_v1  ;;  %v1443_v17 = vld [vmem:[%s2179_s1 + $0x164] sm:$0xf] }
  0x3b   : > { %846 = vmatpush.bf16.msrb.mxu1 %v1367_v15  ;;  %v1264_v6 = vld [vmem:[%s2179_s1 + $0x1f8] sm:$0xf0]  ;;  %v1477_v7 = vld [vmem:[%s2179_s1 + $0x274] sm:$0xf]  ;;  %v1203_v14 = vor.u32 %v1445_v2, %v1200_v3  ;;  %v1192_v18 = vld [vmem:[%s2179_s1 + $0x168] sm:$0xf0] }
  0x3c   : > { %859 = vmatpush.bf16.msrb.mxu2 %v1051_v16  ;;  %v1328_v8 = vld [vmem:[%s2179_s1 + $0x278] sm:$0xf0]  ;;  %v1493_v11 = vld [vmem:[%s2179_s1 + $0x2f4] sm:$0xf]  ;;  %v1267_v15 = vor.u32 %v1461_v4, %v1264_v6  ;;  %v1256_v21 = vld [vmem:[%s2179_s1 + $0x1e8] sm:$0xf0]  ;;  %v1195_v26 = vor.u32 %v1443_v17, %v1192_v18 }
  0x3d   : > { %872 = vmatpush.bf16.msrb.mxu3 %v1115_v19  ;;  %v1392_v12 = vld [vmem:[%s2179_s1 + $0x2f8] sm:$0xf0]  ;;  %v1331_v16 = vor.u32 %v1477_v7, %v1328_v8  ;;  %v1459_v19 = vld [vmem:[%s2179_s1 + $0x1e4] sm:$0xf]  ;;  %v1320_v23 = vld [vmem:[%s2179_s1 + $0x268] sm:$0xf0] }
  0x3e   : > { %834 = vmatpush.bf16.msrb.mxu0 %v1295_v25  ;;  %v1395_v20 = vor.u32 %v1493_v11, %v1392_v12  ;;  %v1475_v22 = vld [vmem:[%s2179_s1 + $0x264] sm:$0xf]  ;;  %v1384_v25 = vld [vmem:[%s2179_s1 + $0x2e8] sm:$0xf0]  ;;  %v1184_v30 = vld [vmem:[%s2179_s1 + $0x158] sm:$0xf0] }
  0x3f   : > { %847 = vmatpush.bf16.msrb.mxu1 %v1359_v27  ;;  %v1491_v24 = vld [vmem:[%s2179_s1 + $0x2e4] sm:$0xf]  ;;  %v1441_v27 = vld [vmem:[%s2179_s1 + $0x154] sm:$0xf]  ;;  %v1323_v29 = vor.u32 %v1475_v22, %v1320_v23  ;;  %v1312_v35 = vld [vmem:[%s2179_s1 + $0x258] sm:$0xf0] }
  0x40   : > { %860 = vmatpush.bf16.msrb.mxu2 %v1043_v28  ;;  %v1259_v28 = vor.u32 %v1459_v19, %v1256_v21  ;;  %v1457_v31 = vld [vmem:[%s2179_s1 + $0x1d4] sm:$0xf]  ;;  %v1387_v33 = vor.u32 %v1491_v24, %v1384_v25  ;;  %v2016_v37 = vld.sshfl [vmem:[#allocation1 + $0x20] sm:$0xff pattern:$0x73625140]  ;;  %vm943_vm1 = vcmask 520193  }
  0x41   : > { %873 = vmatpush.bf16.msrb.mxu3 %v1107_v32  ;;  %v1248_v32 = vld [vmem:[%s2179_s1 + $0x1d8] sm:$0xf0]  ;;  %v1473_v34 = vld [vmem:[%s2179_s1 + $0x254] sm:$0xf]  ;;  %v1439_v42 = vld [vmem:[%s2179_s1 + $0x144] sm:$0xf] }
  0x42   : > { %835 = vmatpush.bf16.msrb.mxu0 %v1287_v41  ;;  %v1489_v36 = vld [vmem:[%s2179_s1 + $0x2d4] sm:$0xf]  ;;  %v1376_v38 = vld [vmem:[%s2179_s1 + $0x2d8] sm:$0xf0]  ;;  %v1187_v41 = vor.u32 %v1441_v27, %v1184_v30  ;;  %v1176_v43 = vld [vmem:[%s2179_s1 + $0x148] sm:$0xf0] }
  0x43   : > { %848 = vmatpush.bf16.msrb.mxu1 %v1351_v44  ;;  %v1251_v44 = vor.u32 %v1457_v31, %v1248_v32  ;;  %v1455_v49 = vld [vmem:[%s2179_s1 + $0x1c4] sm:$0xf]  ;;  %v1379_v50 = vor.u32 %v1489_v36, %v1376_v38  ;;  %v1240_v51 = vld [vmem:[%s2179_s1 + $0x1c8] sm:$0xf0]  ;;  %v1179_v56 = vor.u32 %v1439_v42, %v1176_v43  ;;  %v1453_v59 = vld [vmem:[%s2179_s1 + $0x1b4] sm:$0xf] }
  0x44   : > { %861 = vmatpush.bf16.msrb.mxu2 %v1035_v45  ;;  %v1315_v45 = vor.u32 %v1473_v34, %v1312_v35  ;;  %v1471_v52 = vld [vmem:[%s2179_s1 + $0x244] sm:$0xf]  ;;  %v1304_v53 = vld [vmem:[%s2179_s1 + $0x248] sm:$0xf0]  ;;  %v1232_v61 = vld [vmem:[%s2179_s1 + $0x1b8] sm:$0xf0] }
  0x45   : > { %874 = vmatpush.bf16.msrb.mxu3 %v1099_v48  ;;  %v2027_v48 = vld.sshfl [vmem:[#allocation1 + $0x28] sm:$0xff pattern:$0x73625140]  ;;  %v1296_v63 = vld [vmem:[%s2179_s1 + $0x238] sm:$0xf0]  ;;  %v1235_v3 = vor.u32 %v1453_v59, %v1232_v61 }
  0x46   : > { %836 = vmatpush.bf16.msrb.mxu0 %v1279_v54  ;;  %v1487_v54 = vld [vmem:[%s2179_s1 + $0x2c4] sm:$0xf]  ;;  %v1368_v55 = vld [vmem:[%s2179_s1 + $0x2c8] sm:$0xf0]  ;;  %v1485_v0 = vld [vmem:[%s2179_s1 + $0x2b4] sm:$0xf] }
  0x47   : > { %849 = vmatpush.bf16.msrb.mxu1 %v1343_v57  ;;  %v1243_v57 = vor.u32 %v1455_v49, %v1240_v51  ;;  %v1371_v60 = vor.u32 %v1487_v54, %v1368_v55  ;;  %v1360_v1 = vld [vmem:[%s2179_s1 + $0x2b8] sm:$0xf0]  ;;  %v1160_v6 = vld [vmem:[%s2179_s1 + $0x128] sm:$0xf0]  ;;  %v1451_v7 = vld [vmem:[%s2179_s1 + $0x1a4] sm:$0xf] }
  0x48   : > { %862 = vmatpush.bf16.msrb.mxu2 %v1027_v58  ;;  %v1307_v58 = vor.u32 %v1471_v52, %v1304_v53  ;;  %v1363_v8 = vor.u32 %v1485_v0, %v1360_v1  ;;  %v1288_v11 = vld [vmem:[%s2179_s1 + $0x228] sm:$0xf0]  ;;  %v1483_v12 = vld [vmem:[%s2179_s1 + $0x2a4] sm:$0xf]  ;;  %v1433_v17 = vld [vmem:[%s2179_s1 + $0x114] sm:$0xf] }
  0x49   : > { %875 = vmatpush.bf16.msrb.mxu3 %v1091_v62  ;;  %v1469_v62 = vld [vmem:[%s2179_s1 + $0x234] sm:$0xf]  ;;  %v1152_v18 = vld [vmem:[%s2179_s1 + $0x118] sm:$0xf0]  ;;  %v1144_v30 = vld [vmem:[%s2179_s1 + $0x108] sm:$0xf0] }
  0x4a   : > { %837 = vmatpush.bf16.msrb.mxu0 %v1271_v5  ;;  %v1299_v4 = vor.u32 %v1469_v62, %v1296_v63  ;;  %v1435_v5 = vld [vmem:[%s2179_s1 + $0x124] sm:$0xf]  ;;  %v1449_v19 = vld [vmem:[%s2179_s1 + $0x194] sm:$0xf]  ;;  %v1216_v21 = vld [vmem:[%s2179_s1 + $0x198] sm:$0xf0] }
  0x4b   : > { %850 = vmatpush.bf16.msrb.mxu1 %v1335_v9  ;;  %v1224_v9 = vld [vmem:[%s2179_s1 + $0x1a8] sm:$0xf0]  ;;  %v1465_v22 = vld [vmem:[%s2179_s1 + $0x214] sm:$0xf]  ;;  %v1280_v23 = vld [vmem:[%s2179_s1 + $0x218] sm:$0xf0]  ;;  %v1219_v27 = vor.u32 %v1449_v19, %v1216_v21 }
  0x4c   : > { %863 = vmatpush.bf16.msrb.mxu2 %v1019_v10  ;;  %v1467_v10 = vld [vmem:[%s2179_s1 + $0x224] sm:$0xf]  ;;  %v1481_v24 = vld [vmem:[%s2179_s1 + $0x294] sm:$0xf]  ;;  %v1344_v25 = vld [vmem:[%s2179_s1 + $0x298] sm:$0xf0] }
  0x4d   : > { %876 = vmatpush.bf16.msrb.mxu3 %v1083_v13  ;;  %838 = vmatmul.bf16.vlgmr.msrb.gmra.mxu0 %v2016_v37  ;;  %v1352_v13 = vld [vmem:[%s2179_s1 + $0x2a8] sm:$0xf0]  ;;  %v1447_v31 = vld [vmem:[%s2179_s1 + $0x184] sm:$0xf]  ;;  %v1347_v32 = vor.u32 %v1481_v24, %v1344_v25 }
  0x4e   : > { %882 = vmatpush.bf16.msra.mxu0 %v1203_v14  ;;  %851 = vmatmul.bf16.vlgmr.msrb.gmra.mxu1 %v2027_v48  ;;  %v1163_v14 = vor.u32 %v1435_v5, %v1160_v6  ;;  %v1463_v34 = vld [vmem:[%s2179_s1 + $0x204] sm:$0xf]  ;;  %v1272_v35 = vld [vmem:[%s2179_s1 + $0x208] sm:$0xf0] }
  0x4f   : > { %895 = vmatpush.bf16.msra.mxu1 %v1267_v15  ;;  %864 = vmatmul.bf16.vlgmr.msrb.gmra.mxu2 %v1892_v39  ;;  %v1437_v39 = vld [vmem:[%s2179_s1 + $0x134] sm:$0xf]  ;;  %v1227_v15 = vor.u32 %v1451_v7, %v1224_v9  ;;  %v1479_v36 = vld [vmem:[%s2179_s1 + $0x284] sm:$0xf]  ;;  %v1336_v38 = vld [vmem:[%s2179_s1 + $0x288] sm:$0xf0]  ;;  %v1275_v43 = vor.u32 %v1463_v34, %v1272_v35 }
  0x50   : > { %908 = vmatpush.bf16.msra.mxu2 %v1331_v16  ;;  %877 = vmatmul.bf16.vlgmr.msrb.gmra.mxu3 %v1904_v47  ;;  %v1168_v47 = vld [vmem:[%s2179_s1 + $0x138] sm:$0xf0]  ;;  %v1291_v16 = vor.u32 %v1467_v10, %v1288_v11 }
  0x51   : > { %921 = vmatpush.bf16.msra.mxu3 %v1395_v20  ;;  %v1171_v2 = vor.u32 %v1437_v39, %v1168_v47  ;;  %v1355_v20 = vor.u32 %v1483_v12, %v1352_v13  ;;  %v175_v39 = vld [vmem:[%s2180_s2 + $0x8] sm:$0xff]  ;;  %v177_v47 = vld [vmem:[%s2180_s2 + $0x18] sm:$0xff] }
  0x52   : > { %883 = vmatpush.bf16.msra.mxu0 %v1195_v26  ;;  %v1155_v26 = vor.u32 %v1433_v17, %v1152_v18  ;;  %180 = vst.msk [vmem:[%s2155_s6 + $0x8] sm:$0xff] %vm179_vm0, %v175_v39 }
  0x53   : > { %896 = vmatpush.bf16.msra.mxu1 %v1259_v28  ;;  %v1283_v28 = vor.u32 %v1465_v22, %v1280_v23  ;;  %182 = vst.msk [vmem:[%s2155_s6 + $0x18] sm:$0xff] %vm179_vm0, %v177_v47 }
  0x54   : > { %909 = vmatpush.bf16.msra.mxu2 %v1323_v29  ;;  %v1431_v29 = vld [vmem:[%s2179_s1 + $0x104] sm:$0xf] }
  0x55   : > { %922 = vmatpush.bf16.msra.mxu3 %v1387_v33  ;;  %v1208_v33 = vld [vmem:[%s2179_s1 + $0x188] sm:$0xf0] }
  0x56   : > { %884 = vmatpush.bf16.msra.mxu0 %v1187_v41  ;;  %v1147_v41 = vor.u32 %v1431_v29, %v1144_v30  ;;  %v1211_v42 = vor.u32 %v1447_v31, %v1208_v33 }
  0x57   : > { %897 = vmatpush.bf16.msra.mxu1 %v1251_v44  ;;  %v1339_v44 = vor.u32 %v1479_v36, %v1336_v38 }
  0x58   : > { %910 = vmatpush.bf16.msra.mxu2 %v1315_v45 }
  0x59   : > { %923 = vmatpush.bf16.msra.mxu3 %v1379_v50 }
  0x5a   : > { %885 = vmatpush.bf16.msra.mxu0 %v1179_v56 }
  0x5b   : > { %898 = vmatpush.bf16.msra.mxu1 %v1243_v57 }
  0x5c   : > { %911 = vmatpush.bf16.msra.mxu2 %v1307_v58 }
  0x5d   : > { %924 = vmatpush.bf16.msra.mxu3 %v1371_v60 }
  0x5e   : > { %886 = vmatpush.bf16.msra.mxu0 %v1171_v2 }
  0x5f   : > { %899 = vmatpush.bf16.msra.mxu1 %v1235_v3 }
  0x60   : > { %912 = vmatpush.bf16.msra.mxu2 %v1299_v4 }
  0x61   : > { %925 = vmatpush.bf16.msra.mxu3 %v1363_v8 }
  0x62   : > { %887 = vmatpush.bf16.msra.mxu0 %v1163_v14 }
  0x63   : > { %900 = vmatpush.bf16.msra.mxu1 %v1227_v15 }
  0x64   : > { %913 = vmatpush.bf16.msra.mxu2 %v1291_v16 }
  0x65   : > { %926 = vmatpush.bf16.msra.mxu3 %v1355_v20 }
  0x66   : > { %888 = vmatpush.bf16.msra.mxu0 %v1155_v26 }
  0x67   : > { %901 = vmatpush.bf16.msra.mxu1 %v1219_v27 }
  0x68   : > { %914 = vmatpush.bf16.msra.mxu2 %v1283_v28 }
  0x69   : > { %927 = vmatpush.bf16.msra.mxu3 %v1347_v32 }
  0x6a   : > { %889 = vmatpush.bf16.msra.mxu0 %v1147_v41 }
  0x6b   : > { %902 = vmatpush.bf16.msra.mxu1 %v1211_v42 }
  0x6c   : > { %915 = vmatpush.bf16.msra.mxu2 %v1275_v43 }
  0x6d   : > { %928 = vmatpush.bf16.msra.mxu3 %v1339_v44  ;;  %890 = vmatmul.bf16.vlgmr.msra.gmra.mxu0 %v1894_v40  ;;  %v174_v40 = vld [vmem:[%s2180_s2] sm:$0xff] }
  0x6e   : > { %903 = vmatmul.bf16.vlgmr.msra.gmra.mxu1 %v1902_v46  ;;  %v176_v46 = vld [vmem:[%s2180_s2 + $0x10] sm:$0xff]  ;;  %178 = vst [vmem:[%s2155_s6] sm:$0xff] %v174_v40 }
  0x6f   : > { %916 = vmatmul.bf16.vlgmr.msra.gmra.mxu2 %v2016_v37  ;;  %181 = vst [vmem:[%s2155_s6 + $0x10] sm:$0xff] %v176_v46 }
  0x70   : > { %929 = vmatmul.bf16.vlgmr.msra.gmra.mxu3 %v2027_v48 }
  0xb4   : > { %v787_v37 = vpop.f32.mrf.mxu0 }
  0xb6   : > { %v800_v45 = vpop.f32.mrf.mxu1 }
  0xb7   : > { %v801_v48 = vadd.f32 %v800_v45, %v787_v37 }
  0xb9   : > { %v813_v49 = vpop.f32.mrf.mxu2 }
  0xba   : > { %v814_v53 = vadd.f32 %v813_v49, %v801_v48 }
  0xbb   : > { %v826_v50 = vpop.f32.mrf.mxu3 }
  0xbc   : > { %v789_v51 = vpop.f32.mrf.mxu0  ;;  %v827_v54 = vadd.f32 %v826_v50, %v814_v53 }
  0xbe   : > { %v802_v52 = vpop.f32.mrf.mxu1 }
  0xc1   : > { %v815_v55 = vpop.f32.mrf.mxu2 }
  0xc3   : > { %v828_v56 = vpop.f32.mrf.mxu3 }
  0xca   : > { %v839_v57 = vpop.f32.mrf.mxu0 }
  0xcb   : > { %v840_v58 = vadd.f32 %v839_v57, %v827_v54  ;;  %v852_v59 = vpop.f32.mrf.mxu1 }
  0xcd   : > { %v853_v60 = vadd.f32 %v852_v59, %v840_v58 }
  0xcf   : > { %v936_v61 = vrot.slane %v853_v60, 7 }
  0xd1   : > { %v940_v62 = vadd.f32 %v936_v61, %v174_v40 }
  0xd2   : > { %v865_v63 = vpop.f32.mrf.mxu2  ;;  %v841_v1 = vpop.f32.mrf.mxu0 }
  0xd3   : > { %v878_v0 = vpop.f32.mrf.mxu3  ;;  %942 = vst [vmem:[%s2155_s6] sm:$0x1e] %v940_v62  ;;  %v854_v2 = vpop.f32.mrf.mxu1 }
  0xd4   : > { %v879_v5 = vadd.f32 %v878_v0, %v865_v63 }
  0xda   : > { %v867_v3 = vpop.f32.mrf.mxu2 }
  0xdb   : > { %v880_v4 = vpop.f32.mrf.mxu3 }
  0xea   : > { %v891_v6 = vpop.f32.mrf.mxu0 }
  0xeb   : > { %v904_v7 = vpop.f32.mrf.mxu1  ;;  %v892_v8 = vadd.f32 %v891_v6, %v879_v5 }
  0xed   : > { %v905_v9 = vadd.f32 %v904_v7, %v892_v8 }
  0xf2   : > { %v917_v10 = vpop.f32.mrf.mxu2  ;;  %v893_v13 = vpop.f32.mrf.mxu0 }
  0xf3   : > { %v918_v11 = vadd.f32 %v917_v10, %v905_v9  ;;  %v930_v12 = vpop.f32.mrf.mxu3  ;;  %v906_v14 = vpop.f32.mrf.mxu1 }
  0xf5   : > { %v931_v15 = vadd.f32 %v930_v12, %v918_v11 }
  0xf7   : > { %v937_v16 = vrot.slane %v931_v15, 7 }
  0xf9   : > { %v941_v17 = vadd.f32 %v937_v16, %v175_v39 }
  0xfa   : > { %v919_v18 = vpop.f32.mrf.mxu2 }
  0xfb   : > { %944 = vst.msk [vmem:[%s2155_s6 + $0x8] sm:$0x1e] %vm943_vm1, %v941_v17  ;;  %v932_v19 = vpop.f32.mrf.mxu3 }
  0xfc PF: > { %s13_s12 = sadd.s32 1, %s1510_s12  }
  0xfd   : > { %p10_p5 = scmp.ge.s32.totalorder %s13_s12, 4  }
  0xff   :  { %12 = sbr.rel (!%p10_p5) target bundleno = 1 (0x1), region = 63 }

// kernel: vit_tiny_forward.4
= control target key start
LH: loop header
LB: loop body
LE: loop exit
PB: predicated region body
PF: predicated region fallthrough
CT: control target
= control target key end

     0   :  { %s5113_s29 = smov 0   ;;  %s5115_s30 = smov 0   ;;  %s6062_s0 = inlined_call_operand.vmem [shape: f32[32,192], index: 0, kind: input, shape index: {}, may-alias: {0,14}]   ;;  %s6063_s1 = inlined_call_operand.vmem [shape: f32[1,16], index: 1, kind: input, shape index: {}]   ;;  %s6064_s2 = inlined_call_operand.vmem [shape: f32[12,1,192], index: 2, kind: input, shape index: {}]   ;;  %s6065_s3 = inlined_call_operand.vmem [shape: f32[12,1,192], index: 3, kind: input, shape index: {}]   ;;  %s6066_s4 = inlined_call_operand.vmem [shape: bf16[12,192,576], index: 4, kind: input, shape index: {}]   ;;  %s6067_s5 = inlined_call_operand.vmem [shape: f32[12,1,576], index: 5, kind: input, shape index: {}]   ;;  %s6068_s6 = inlined_call_operand.vmem [shape: bf16[12,192,192], index: 6, kind: input, shape index: {}]   ;;  %s6069_s7 = inlined_call_operand.vmem [shape: f32[12,1,192], index: 7, kind: input, shape index: {}]   ;;  %s6070_s8 = inlined_call_operand.vmem [shape: f32[12,1,192], index: 8, kind: input, shape index: {}]   ;;  %s6071_s9 = inlined_call_operand.vmem [shape: f32[12,1,192], index: 9, kind: input, shape index: {}]   ;;  %s6072_s10 = inlined_call_operand.vmem [shape: bf16[12,192,768], index: 10, kind: input, shape index: {}]   ;;  %s6073_s11 = inlined_call_operand.vmem [shape: f32[12,1,768], index: 11, kind: input, shape index: {}]   ;;  %s6074_s12 = inlined_call_operand.vmem [shape: bf16[12,768,192], index: 12, kind: input, shape index: {}]   ;;  %s6075_s13 = inlined_call_operand.vmem [shape: f32[12,1,192], index: 13, kind: input, shape index: {}]   ;;  %s6076_s14 = inlined_call_operand.vmem [shape: f32[32,192], index: 14, kind: output, shape index: {}, may-alias: {0,14}]  }
   0x1   :  { %6081 = sst [smem:[#allocation8_spill]] %s6062_s0  ;;  %s5117_s15 = smov 0  }
   0x2   :  { %6082 = sst [smem:[#allocation9_spill]] %s6063_s1  ;;  %s5119_s16 = smov 0  }
   0x3   :  { %6083 = sst [smem:[#allocation10_spill]] %s6066_s4  ;;  %s5121_s17 = smov 0  }
   0x4   :  { %6084 = sst [smem:[#allocation11_spill]] %s6067_s5 }
   0x5   :  { %6085 = sst [smem:[#allocation12_spill]] %s6068_s6 }
   0x6   :  { %6086 = sst [smem:[#allocation13_spill]] %s6071_s9 }
   0x7   :  { %6087 = sst [smem:[#allocation14_spill]] %s6072_s10 }
   0x8   :  { %6088 = sst [smem:[#allocation15_spill]] %s6073_s11 }
   0x9   :  { %6089 = sst [smem:[#allocation16_spill]] %s6074_s12 }
   0xa   :  { %6090 = sst [smem:[#allocation17_spill]] %s6075_s13 }
   0xb LB: > { %6091 = sst [smem:[#allocation2_spill]] %s5018_s29  ;;  %s33_s18 = sadd.s32 1, %s5026_s15  ;;  %s5034_s17 = sphi %s5121_s17, %s24_s17   ;;  %s5030_s16 = sphi %s5119_s16, %s6120_s16   ;;  %s5026_s15 = sphi %s5117_s15, %s6119_s15   ;;  %s5022_s30 = sphi %s5115_s30, %s6118_s30   ;;  %s5018_s29 = sphi %s5113_s29, %s6117_s29  }
   0xc   : > { %6092 = sst [smem:[#allocation3_spill]] %s5026_s15  ;;  %s36_s19 = sadd.s32 1, %s5030_s16 }
   0xd   : > { %6093 = sst [smem:[#allocation4_spill]] %s5030_s16  ;;  %p34_p0 = scmp.ge.s32.totalorder %s33_s18, 12 }
   0xe   : > { %6094 = sst [smem:[#allocation5_spill]] %s5034_s17  ;;  %p3579_p1 = scmp.ge.s32.totalorder %s5034_s17, 1 }
   0xf   : > { %p538_p2 = scmp.lt.s32.totalorder %s5034_s17, 25  ;;  %s6122_s18 = smov (%p34_p0, %s33_s18), 0 }
  0x10   : > { %6095 = sst [smem:[#allocation6_spill]] %s6122_s18  ;;  %s6124_s19 = smov (!%p34_p0, %s36_s19), %s5030_s16 }
  0x11   : > { %p539_p3 = pnand %p3579_p1, %p538_p2  ;;  %p38_p4 = scmp.ge.s32.totalorder %s6124_s19, 2 }
  0x12   : > { %s3580_s20 = sshll.u32 (!%p539_p3), %s5022_s30, 1  ;;  %p645_p5 = scmp.lt.s32.totalorder (!%p539_p3), %s5018_s29, 11 }
  0x13   : > { %s6126_s19 = smov (%p38_p4, %s6124_s19), 0  ;;  %542 = sbr.rel (%p539_p3) target bundleno = 1912 (0x778), region = 76 }
  0x14   : > { %6096 = sst [smem:[#allocation7_spill]] %s6126_s19  ;;  %p639_p6 = scmp.lt.s32.totalorder (!%p539_p3), %s3580_s20, 3 }
  0x15   : > { %s6097_s0 = sld [smem:[#allocation8_spill]] (!%p539_p3) }
  0x16   : > { %s6098_s4 = sld [smem:[#allocation10_spill]] (!%p539_p3) }
  0x17   : > { %s6099_s5 = sld [smem:[#allocation11_spill]] (!%p539_p3) }
  0x18   : > { %s646_s21 = scalar_select %p645_p5, %s5018_s29, 11 }
  0x19   : > { %s6128_s20 = smov (!%p639_p6, %s3580_s20), 3  ;;  %s6100_s6 = sld [smem:[#allocation12_spill]] }
  0x1a   : > { %s5147_s22 = sshll.u32 %s646_s21, 1  ;;  %s4880_s23 = smul.u32 480, %s646_s21 }
  0x1b   : > { %s4626_s24 = sshll.u32 %s6128_s20, 4  ;;  %s4881_s12 = smul.u32 5, %s646_s21 }
  0x1c   : > { %s643_s19 = scalar_lea.vmem %s6097_s0, %s4626_s24  ;;  %s5163_s29 = scalar_lea.vmem %s6098_s4, %s4880_s23 }
  0x1d   : > { %s4882_s11 = smul.u32 192, %s646_s21  ;;  %s5172_s28 = scalar_lea.vmem %s6099_s5, %s4881_s12 }
  0x1e   : > { %s4883_s10 = smul.u32 576, %s646_s21  ;;  %s5194_s0 = scalar_lea.vmem %s6076_s14, %s4626_s24 }
  0x1f   : > { %s5181_s1 = scalar_lea.vmem %s6100_s6, %s4882_s11  ;;  %s4884_s12 = smul.u32 6, %s646_s21 }
  0x20   : > { %s6103_s15 = sld [smem:[#allocation14_spill]]  ;;  %s4885_s18 = smul.u32 768, %s646_s21 }
  0x21   : > { %s6104_s23 = sld [smem:[#allocation15_spill]] }
  0x22   : > { %s6105_s20 = sld [smem:[#allocation16_spill]] }
  0x23   : > { %s6106_s13 = sld [smem:[#allocation2_spill]] }
  0x26   : > { %s5199_s11 = scalar_lea.vmem %s6103_s15, %s4883_s10 }
  0x27   : > { %s5204_s4 = scalar_lea.vmem %s6104_s23, %s4884_s12 }
  0x28   : > { %s5209_s27 = scalar_lea.vmem %s6105_s20, %s4885_s18 }
  0x29   : > { %p3596_p7 = scmp.ne.s32.totalorder %s6106_s13, 0 }
  0x2b   : > { %708 = sbr.rel (%p3596_p7) target bundleno = 60 (0x3c), region = 80 }
  0x30   : > { %v709_v0 = vld [vmem:[%s643_s19] sm:$0xff]  ;;  %v711_v1 = vld [vmem:[%s643_s19 + $0x10] sm:$0xff]  ;;  %v710_v2 = vld [vmem:[%s643_s19 + $0x8] sm:$0xff]  ;;  %vm714_vm0 = vcmask 523264  }
  0x31   : > { %713 = vst [vmem:[%s5194_s0] sm:$0xff] %v709_v0 }
  0x38   : > { %v712_v3 = vld [vmem:[%s643_s19 + $0x18] sm:$0xff] }
  0x39   : > { %716 = vst [vmem:[%s5194_s0 + $0x10] sm:$0xff] %v711_v1 }
  0x3a   : > { %715 = vst.msk [vmem:[%s5194_s0 + $0x8] sm:$0xff] %vm714_vm0, %v710_v2 }
  0x3b   : > { %717 = vst.msk [vmem:[%s5194_s0 + $0x18] sm:$0xff] %vm714_vm0, %v712_v3 }
  0x3c PF: > { %v718_v4 = vld [vmem:[%s5194_s0] sm:$0xff]  ;;  %vm725_vm1 = vcmask 523264   ;;  %v5036_v12 = vmov 192.0   ;;  %v3739_v16 = vld [vmem:[%s5163_s29 + $0x118] sm:$0xf]  ;;  %s6107_s9 = scalar_lea.vmem %s6064_s2, %s5147_s22  ;;  %s6108_s21 = scalar_lea.vmem %s6065_s3, %s5147_s22  ;;  %vm1387_vm9 = vcmask 130048  }
  0x3d   : > { %4934 = vrcp.f32 %v5036_v12  ;;  %v4665_v17 = vld [vmem:[%s5163_s29 + $0x128] sm:$0xf0]  ;;  %v3719_v18 = vld [vmem:[%s5163_s29 + $0xf0] sm:$0xf]  ;;  %v4660_v20 = vld [vmem:[%s5163_s29 + $0x100] sm:$0xf0]  ;;  %s6110_s12 = scalar_lea.vmem %s6069_s7, %s5147_s22  ;;  %s6111_s15 = scalar_lea.vmem %s6070_s8, %s5147_s22 }
  0x3e   : > { %v3740_v19 = vor.u32 %v4665_v17, %v3739_v16  ;;  %v3720_v21 = vor.u32 %v4660_v20, %v3719_v18  ;;  %v3699_v41 = vld [vmem:[%s5163_s29 + $0xc8] sm:$0xf]  ;;  %v4655_v42 = vld [vmem:[%s5163_s29 + $0xd8] sm:$0xf0]  ;;  %v3679_v44 = vld [vmem:[%s5163_s29 + $0xa0] sm:$0xf] }
  0x3f   : > { %v3700_v43 = vor.u32 %v4655_v42, %v3699_v41  ;;  %v4650_v45 = vld [vmem:[%s5163_s29 + $0xb0] sm:$0xf0]  ;;  %v4663_v47 = vld [vmem:[%s5163_s29 + $0x11c] sm:$0xf]  ;;  %v3741_v48 = vld [vmem:[%s5163_s29 + $0x12c] sm:$0xf0] }
  0x40   : > { %v720_v9 = vld [vmem:[%s5194_s0 + $0x10] sm:$0xff]  ;;  %1206 = vmatpush.bf16.msra.mxu0 %v3740_v19  ;;  %v3680_v46 = vor.u32 %v4650_v45, %v3679_v44  ;;  %v3744_v49 = vor.u32 %v4663_v47, %v3741_v48  ;;  %v3659_v50 = vld [vmem:[%s5163_s29 + $0x78] sm:$0xf]  ;;  %v4645_v51 = vld [vmem:[%s5163_s29 + $0x88] sm:$0xf0]  ;;  %s6109_s16 = sld [smem:[#allocation9_spill]] }
  0x41   : > { %v719_v5 = vld [vmem:[%s5194_s0 + $0x8] sm:$0xff]  ;;  %v3819_v52 = vld [vmem:[%s5163_s29 + $0x1b8] sm:$0xf]  ;;  %v3660_v53 = vor.u32 %v4645_v51, %v3659_v50  ;;  %v4658_v55 = vld [vmem:[%s5163_s29 + $0xf4] sm:$0xf]  ;;  %s6112_s23 = sld [smem:[#allocation13_spill]] }
  0x42   : > { %v726_v6 = vsel %vm725_vm1, %v719_v5, 0.0  ;;  %v721_v8 = vld [vmem:[%s5194_s0 + $0x18] sm:$0xff]  ;;  %1234 = vmatpush.bf16.msra.mxu2 %v3744_v49  ;;  %v4685_v54 = vld [vmem:[%s5163_s29 + $0x1c8] sm:$0xf0]  ;;  %v3721_v56 = vld [vmem:[%s5163_s29 + $0x104] sm:$0xf0] }
  0x43   : > { %v727_v7 = vadd.f32 %v726_v6, %v718_v4  ;;  %v730_v10 = vsel %vm725_vm1, %v721_v8, 0.0  ;;  %v4935_v13 = vpop.eup %4934  ;;  %v3820_v57 = vor.u32 %v4685_v54, %v3819_v52  ;;  %v3724_v58 = vor.u32 %v4658_v55, %v3721_v56  ;;  %v4683_v59 = vld [vmem:[%s5163_s29 + $0x1bc] sm:$0xf]  ;;  %v3821_v60 = vld [vmem:[%s5163_s29 + $0x1cc] sm:$0xf0]  ;;  %s6114_s20 = sld [smem:[#allocation17_spill]] }
  0x44   : > { %v731_v11 = vadd.f32 %v730_v10, %v720_v9  ;;  %v735_v14 = vmul.f32 192.0, %v4935_v13  ;;  %1207 = vmatpush.bf16.msra.mxu0 %v3720_v21  ;;  %vm739_vm2 = vweird.f32 %v4935_v13  ;;  %v3824_v61 = vor.u32 %v4683_v59, %v3821_v60  ;;  %v3639_v62 = vld [vmem:[%s5163_s29 + $0x50] sm:$0xf]  ;;  %v4640_v63 = vld [vmem:[%s5163_s29 + $0x60] sm:$0xf0] }
  0x45   : > { %728 = vadd.xlane.f32.xlu0 %v727_v7  ;;  %1224 = vmatpush.bf16.msra.mxu1 %v3820_v57  ;;  %v3799_v0 = vld [vmem:[%s5163_s29 + $0x190] sm:$0xf]  ;;  %v3640_v1 = vor.u32 %v4640_v63, %v3639_v62  ;;  %v4680_v2 = vld [vmem:[%s5163_s29 + $0x1a0] sm:$0xf0]  ;;  %v4653_v3 = vld [vmem:[%s5163_s29 + $0xcc] sm:$0xf] }
  0x46   : > { %v736_v15 = vsub.f32 1.0, %v735_v14  ;;  %1235 = vmatpush.bf16.msra.mxu2 %v3724_v58  ;;  %1252 = vmatpush.bf16.msra.mxu3 %v3824_v61  ;;  %v4678_v7 = vld [vmem:[%s5163_s29 + $0x194] sm:$0xf]  ;;  %v3619_v10 = vld [vmem:[%s5163_s29 + $0x28] sm:$0xf] }
  0x47   : > { %v3779_v12 = vld [vmem:[%s5163_s29 + $0x168] sm:$0xf]  ;;  %v4675_v14 = vld [vmem:[%s5163_s29 + $0x178] sm:$0xf0]  ;;  %v3681_v16 = vld [vmem:[%s5163_s29 + $0xb4] sm:$0xf0]  ;;  %s6113_s25 = scalar_lea.vmem %s6112_s23, %s5147_s22 }
  0x48   : > { %v737_v22 = vmul.f32 %v4935_v13, %v736_v15  ;;  %1208 = vmatpush.bf16.msra.mxu0 %v3700_v43  ;;  %v4648_v15 = vld [vmem:[%s5163_s29 + $0xa4] sm:$0xf]  ;;  %v3780_v17 = vor.u32 %v4675_v14, %v3779_v12  ;;  %v4673_v19 = vld [vmem:[%s5163_s29 + $0x16c] sm:$0xf]  ;;  %v3781_v20 = vld [vmem:[%s5163_s29 + $0x17c] sm:$0xf0] }
  0x49   : > { %v3684_v18 = vor.u32 %v4648_v15, %v3681_v16  ;;  %v3784_v21 = vor.u32 %v4673_v19, %v3781_v20  ;;  %v4668_v41 = vld [vmem:[%s5163_s29 + $0x144] sm:$0xf]  ;;  %v3761_v42 = vld [vmem:[%s5163_s29 + $0x154] sm:$0xf0]  ;;  %v3827_v45 = vld [vmem:[%s5163_s29 + $0x1c0] sm:$0xf]  ;;  %s6115_s5 = scalar_lea.vmem %s6114_s20, %s5147_s22 }
  0x4a   : > { %v738_v23 = vadd.f32 %v4935_v13, %v737_v22  ;;  %v3599_v22 = vld [vmem:[%s5163_s29] sm:$0xf]  ;;  %v3764_v44 = vor.u32 %v4668_v41, %v3761_v42  ;;  %v4638_v48 = vld [vmem:[%s5163_s29 + $0x54] sm:$0xf]  ;;  %v3641_v49 = vld [vmem:[%s5163_s29 + $0x64] sm:$0xf0] }
  0x4b   : > { %v3727_v50 = vld [vmem:[%s5163_s29 + $0xf8] sm:$0xf]  ;;  %v3644_v51 = vor.u32 %v4638_v48, %v3641_v49  ;;  %v4661_v52 = vld [vmem:[%s5163_s29 + $0x108] sm:$0xf0]  ;;  %v3729_v54 = vld [vmem:[%s5163_s29 + $0x10c] sm:$0xf0] }
  0x4c   : > { %v5226_v24 = vsel %vm739_vm2, %v4935_v13, %v738_v23  ;;  %1209 = vmatpush.bf16.msra.mxu0 %v3680_v46  ;;  %v4630_v23 = vld [vmem:[%s5163_s29 + $0x10] sm:$0xf0]  ;;  %v3728_v55 = vor.u32 %v4661_v52, %v3727_v50  ;;  %v3807_v57 = vld [vmem:[%s5163_s29 + $0x198] sm:$0xf]  ;;  %v4681_v58 = vld [vmem:[%s5163_s29 + $0x1a8] sm:$0xf0] }
  0x4d   : > { %732 = vadd.xlane.f32.xlu0 %v731_v11  ;;  %v4635_v11 = vld [vmem:[%s5163_s29 + $0x38] sm:$0xf0]  ;;  %v4686_v46 = vld [vmem:[%s5163_s29 + $0x1d0] sm:$0xf0]  ;;  %v3808_v59 = vor.u32 %v4681_v58, %v3807_v57  ;;  %v4633_v60 = vld [vmem:[%s5163_s29 + $0x2c] sm:$0xf] }
  0x4e   : > { %v3620_v13 = vor.u32 %v4635_v11, %v3619_v10  ;;  %v3828_v47 = vor.u32 %v4686_v46, %v3827_v45  ;;  %v3621_v61 = vld [vmem:[%s5163_s29 + $0x3c] sm:$0xf0]  ;;  %v3707_v62 = vld [vmem:[%s5163_s29 + $0xd0] sm:$0xf]  ;;  %v4628_v10 = vld [vmem:[%s5163_s29 + $0x4] sm:$0xf] }
  0x4f   : > { %v3624_v63 = vor.u32 %v4633_v60, %v3621_v61  ;;  %v3601_v11 = vld [vmem:[%s5163_s29 + $0x14] sm:$0xf0]  ;;  %v3687_v12 = vld [vmem:[%s5163_s29 + $0xa8] sm:$0xf]  ;;  %v4651_v14 = vld [vmem:[%s5163_s29 + $0xb8] sm:$0xf0] }
  0x50   : > { %1210 = vmatpush.bf16.msra.mxu0 %v3660_v53  ;;  %v4659_v53 = vld [vmem:[%s5163_s29 + $0xfc] sm:$0xf]  ;;  %v4649_v15 = vld [vmem:[%s5163_s29 + $0xac] sm:$0xf]  ;;  %v3689_v16 = vld [vmem:[%s5163_s29 + $0xbc] sm:$0xf0] }
  0x51   : > { %v3732_v56 = vor.u32 %v4659_v53, %v3729_v54  ;;  %v3692_v19 = vor.u32 %v4649_v15, %v3689_v16  ;;  %v3767_v20 = vld [vmem:[%s5163_s29 + $0x148] sm:$0xf]  ;;  %v4639_v41 = vld [vmem:[%s5163_s29 + $0x5c] sm:$0xf]  ;;  %v3809_v45 = vld [vmem:[%s5163_s29 + $0x1ac] sm:$0xf0] }
  0x52   : > { %v4636_v52 = vld [vmem:[%s5163_s29 + $0x40] sm:$0xf0]  ;;  %v4674_v57 = vld [vmem:[%s5163_s29 + $0x174] sm:$0xf]  ;;  %v724_v16 = vld [vmem:[%s6108_s21] sm:$0x3] }
  0x54   : > { %1211 = vmatpush.bf16.msra.mxu0 %v3640_v1  ;;  %v4654_v1 = vld [vmem:[%s5163_s29 + $0xd4] sm:$0xf] }
  0x58   : > { %1212 = vmatpush.bf16.msra.mxu0 %v3620_v13  ;;  %v3604_v13 = vor.u32 %v4628_v10, %v3601_v11 }
  0xb8   : > { %v729_v25 = vpop.xlane.xlu0 %728 }
  0xb9   : > { %v741_v26 = vmul.f32 %v5226_v24, %v729_v25  ;;  %v3759_v25 = vld [vmem:[%s5163_s29 + $0x140] sm:$0xf] }
  0xbb   : > { %v5229_v27 = vsub.f32 %v718_v4, %v741_v26  ;;  %v5231_v28 = vsub.f32 %v719_v5, %v741_v26  ;;  %v3701_v4 = vld [vmem:[%s5163_s29 + $0xdc] sm:$0xf0]  ;;  %v3800_v5 = vor.u32 %v4680_v2, %v3799_v0  ;;  %v3600_v26 = vor.u32 %v4630_v23, %v3599_v22  ;;  %v4656_v0 = vld [vmem:[%s5163_s29 + $0xe0] sm:$0xf0]  ;;  %v3709_v2 = vld [vmem:[%s5163_s29 + $0xe4] sm:$0xf0] }
  0xbc   : > { %v3704_v6 = vor.u32 %v4653_v3, %v3701_v4  ;;  %v3708_v3 = vor.u32 %v4656_v0, %v3707_v62  ;;  %v3712_v4 = vor.u32 %v4654_v1, %v3709_v2  ;;  %v3667_v23 = vld [vmem:[%s5163_s29 + $0x80] sm:$0xf]  ;;  %v3607_v62 = vld [vmem:[%s5163_s29 + $0x8] sm:$0xf]  ;;  %v4629_v0 = vld [vmem:[%s5163_s29 + $0xc] sm:$0xf] }
  0xbd   : > { %v747_v29 = vmul.f32 %v5229_v27, %v5229_v27  ;;  %v748_v30 = vmul.f32 %v5231_v28, %v5231_v28  ;;  %1225 = vmatpush.bf16.msra.mxu1 %v3800_v5  ;;  %1213 = vmatpush.bf16.msra.mxu0 %v3600_v26  ;;  %v4644_v26 = vld [vmem:[%s5163_s29 + $0x84] sm:$0xf] }
  0xbe   : > { %1236 = vmatpush.bf16.msra.mxu2 %v3704_v6  ;;  %v3787_v6 = vld [vmem:[%s5163_s29 + $0x170] sm:$0xf] }
  0xbf   : > { %v751_v31 = vsel %vm725_vm1, %v748_v30, 0.0  ;;  %v4643_v30 = vld [vmem:[%s5163_s29 + $0x7c] sm:$0xf] }
  0xc0   : > { %v733_v32 = vpop.xlane.xlu0 %732  ;;  %v752_v33 = vadd.f32 %v751_v31, %v747_v29  ;;  %v4670_v29 = vld [vmem:[%s5163_s29 + $0x150] sm:$0xf0]  ;;  %v3661_v31 = vld [vmem:[%s5163_s29 + $0x8c] sm:$0xf0] }
  0xc1   : > { %v742_v34 = vmul.f32 %v5226_v24, %v733_v32  ;;  %1226 = vmatpush.bf16.msra.mxu1 %v3780_v17  ;;  %v3760_v32 = vor.u32 %v4670_v29, %v3759_v25  ;;  %v4646_v25 = vld [vmem:[%s5163_s29 + $0x90] sm:$0xf0] }
  0xc2   : > { %753 = vadd.xlane.f32.xlu1 %v752_v33  ;;  %1237 = vmatpush.bf16.msra.mxu2 %v3684_v18  ;;  %v3664_v33 = vor.u32 %v4643_v30, %v3661_v31  ;;  %v3688_v18 = vor.u32 %v4651_v14, %v3687_v12  ;;  %v3668_v29 = vor.u32 %v4646_v25, %v3667_v23  ;;  %v3669_v30 = vld [vmem:[%s5163_s29 + $0x94] sm:$0xf0]  ;;  %v4684_v31 = vld [vmem:[%s5163_s29 + $0x1c4] sm:$0xf]  ;;  %v723_v12 = vld [vmem:[%s6107_s9] sm:$0x3] }
  0xc3   : > { %v5239_v35 = vsub.f32 %v720_v9, %v742_v34  ;;  %v5241_v36 = vsub.f32 %v721_v8, %v742_v34  ;;  %v3801_v8 = vld [vmem:[%s5163_s29 + $0x1a4] sm:$0xf0]  ;;  %v3747_v34 = vld [vmem:[%s5163_s29 + $0x120] sm:$0xf]  ;;  %v798_v23 = vperm.slane %v724_v16, 1 }
  0xc4   : > { %v3804_v9 = vor.u32 %v4678_v7, %v3801_v8  ;;  %v4676_v7 = vld [vmem:[%s5163_s29 + $0x180] sm:$0xf0] }
  0xc5   : > { %v749_v37 = vmul.f32 %v5239_v35, %v5239_v35  ;;  %v750_v38 = vmul.f32 %v5241_v36, %v5241_v36  ;;  %1227 = vmatpush.bf16.msra.mxu1 %v3760_v32  ;;  %v3829_v32 = vld [vmem:[%s5163_s29 + $0x1d4] sm:$0xf0] }
  0xc6   : > { %1253 = vmatpush.bf16.msra.mxu3 %v3804_v9  ;;  %1238 = vmatpush.bf16.msra.mxu2 %v3664_v33  ;;  %v3788_v9 = vor.u32 %v4676_v7, %v3787_v6  ;;  %v3769_v7 = vld [vmem:[%s5163_s29 + $0x15c] sm:$0xf0] }
  0xc7   : > { %v755_v39 = vsel %vm725_vm1, %v750_v38, 0.0  ;;  %v4664_v38 = vld [vmem:[%s5163_s29 + $0x124] sm:$0xf] }
  0xc8   : > { %v756_v40 = vadd.f32 %v755_v39, %v749_v37  ;;  %v4666_v37 = vld [vmem:[%s5163_s29 + $0x130] sm:$0xf0] }
  0xc9   : > { %v3748_v39 = vor.u32 %v4666_v37, %v3747_v34  ;;  %v3672_v34 = vor.u32 %v4644_v26, %v3669_v30  ;;  %v3832_v37 = vor.u32 %v4684_v31, %v3829_v32 }
  0xca   : > { %757 = vadd.xlane.f32.xlu1 %v756_v40  ;;  %1254 = vmatpush.bf16.msra.mxu3 %v3784_v21  ;;  %v3749_v40 = vld [vmem:[%s5163_s29 + $0x134] sm:$0xf0]  ;;  %v4671_v21 = vld [vmem:[%s5163_s29 + $0x158] sm:$0xf0] }
  0xcb   : > { %v3752_v43 = vor.u32 %v4664_v38, %v3749_v40  ;;  %1262 = vmatpush.bf16.msrb.mxu1 %v3748_v39  ;;  %1239 = vmatpush.bf16.msra.mxu2 %v3644_v51  ;;  %v3768_v22 = vor.u32 %v4671_v21, %v3767_v20  ;;  %v3647_v39 = vld [vmem:[%s5163_s29 + $0x58] sm:$0xf]  ;;  %v4641_v40 = vld [vmem:[%s5163_s29 + $0x68] sm:$0xf0]  ;;  %v3627_v51 = vld [vmem:[%s5163_s29 + $0x30] sm:$0xf] }
  0xcc   : > { %v3648_v42 = vor.u32 %v4641_v40, %v3647_v39  ;;  %v3628_v54 = vor.u32 %v4636_v52, %v3627_v51  ;;  %v4657_v51 = vld [vmem:[%s5163_s29 + $0xe8] sm:$0xf0]  ;;  %v3795_v52 = vld [vmem:[%s5163_s29 + $0x178] sm:$0xf] }
  0xcd   : > { %1290 = vmatpush.bf16.msrb.mxu0 %v3752_v43  ;;  %v3649_v43 = vld [vmem:[%s5163_s29 + $0x6c] sm:$0xf0] }
  0xce   : > { %1255 = vmatpush.bf16.msra.mxu3 %v3764_v44  ;;  %v4679_v44 = vld [vmem:[%s5163_s29 + $0x19c] sm:$0xf]  ;;  %v3652_v48 = vor.u32 %v4639_v41, %v3649_v43 }
  0xcf   : > { %1263 = vmatpush.bf16.msrb.mxu1 %v3728_v55  ;;  %1240 = vmatpush.bf16.msra.mxu2 %v3624_v63  ;;  %v3812_v49 = vor.u32 %v4679_v44, %v3809_v45  ;;  %v4634_v55 = vld [vmem:[%s5163_s29 + $0x34] sm:$0xf]  ;;  %v4631_v63 = vld [vmem:[%s5163_s29 + $0x18] sm:$0xf0] }
  0xd0   : > { %v3608_v2 = vor.u32 %v4631_v63, %v3607_v62  ;;  %v4662_v45 = vld [vmem:[%s5163_s29 + $0x110] sm:$0xf0]  ;;  %v3675_v62 = vld [vmem:[%s5163_s29 + $0x88] sm:$0xf]  ;;  %v4647_v63 = vld [vmem:[%s5163_s29 + $0x98] sm:$0xf0] }
  0xd1   : > { %1291 = vmatpush.bf16.msrb.mxu0 %v3732_v56  ;;  %v3629_v56 = vld [vmem:[%s5163_s29 + $0x44] sm:$0xf0] }
  0xd2   : > { %1280 = vmatpush.bf16.msrb.mxu3 %v3828_v47  ;;  %v3632_v58 = vor.u32 %v4634_v55, %v3629_v56  ;;  %v3695_v55 = vld [vmem:[%s5163_s29 + $0xb0] sm:$0xf] }
  0xd3   : > { %1264 = vmatpush.bf16.msrb.mxu1 %v3708_v3  ;;  %1241 = vmatpush.bf16.msra.mxu2 %v3604_v13  ;;  %v3609_v3 = vld [vmem:[%s5163_s29 + $0x1c] sm:$0xf0] }
  0xd4   : > { %v3612_v6 = vor.u32 %v4629_v0, %v3609_v3  ;;  %v3676_v0 = vor.u32 %v4647_v63, %v3675_v62 }
  0xd5   : > { %1292 = vmatpush.bf16.msrb.mxu0 %v3712_v4  ;;  %v4669_v4 = vld [vmem:[%s5163_s29 + $0x14c] sm:$0xf] }
  0xd6   : > { %1281 = vmatpush.bf16.msrb.mxu3 %v3808_v59  ;;  %v3789_v59 = vld [vmem:[%s5163_s29 + $0x184] sm:$0xf0]  ;;  %v3772_v10 = vor.u32 %v4669_v4, %v3769_v7  ;;  %v3635_v4 = vld [vmem:[%s5163_s29 + $0x38] sm:$0xf]  ;;  %v3615_v7 = vld [vmem:[%s5163_s29 + $0x10] sm:$0xf] }
  0xd7   : > { %1265 = vmatpush.bf16.msrb.mxu1 %v3688_v18  ;;  %1308 = vmatpush.bf16.msrb.mxu2 %v3832_v37  ;;  %v3792_v61 = vor.u32 %v4674_v57, %v3789_v59  ;;  %v788_v18 = vperm.slane %v723_v12, 0  ;;  %v4687_v37 = vld [vmem:[%s5163_s29 + $0x1d8] sm:$0xf0]  ;;  %v4652_v57 = vld [vmem:[%s5163_s29 + $0xc0] sm:$0xf0] }
  0xd8   : > { %v4672_v59 = vld [vmem:[%s5163_s29 + $0x160] sm:$0xf0] }
  0xd9   : > { %1293 = vmatpush.bf16.msrb.mxu0 %v3692_v19 }
  0xda   : > { %1282 = vmatpush.bf16.msrb.mxu3 %v3788_v9 }
  0xdb   : > { %1266 = vmatpush.bf16.msrb.mxu1 %v3668_v29  ;;  %1309 = vmatpush.bf16.msrb.mxu2 %v3812_v49  ;;  %v3715_v49 = vld [vmem:[%s5163_s29 + $0xd8] sm:$0xf] }
  0xdd   : > { %1294 = vmatpush.bf16.msrb.mxu0 %v3672_v34  ;;  %v3835_v34 = vld [vmem:[%s5163_s29 + $0x1c8] sm:$0xf] }
  0xde   : > { %1283 = vmatpush.bf16.msrb.mxu3 %v3768_v22  ;;  %v797_v22 = vperm.slane %v724_v16, 0  ;;  %v3836_v44 = vor.u32 %v4687_v37, %v3835_v34 }
  0xdf   : > { %1267 = vmatpush.bf16.msrb.mxu1 %v3648_v42  ;;  %1310 = vmatpush.bf16.msrb.mxu2 %v3792_v61 }
  0xe1   : > { %1295 = vmatpush.bf16.msrb.mxu0 %v3652_v48 }
  0xe3   : > { %1268 = vmatpush.bf16.msrb.mxu1 %v3628_v54  ;;  %1311 = vmatpush.bf16.msrb.mxu2 %v3772_v10  ;;  %v3716_v54 = vor.u32 %v4657_v51, %v3715_v49 }
  0xe5   : > { %1296 = vmatpush.bf16.msrb.mxu0 %v3632_v58  ;;  %v3775_v58 = vld [vmem:[%s5163_s29 + $0x150] sm:$0xf] }
  0xe6   : > { %v3776_v61 = vor.u32 %v4672_v59, %v3775_v58 }
  0xe7   : > { %1269 = vmatpush.bf16.msrb.mxu1 %v3608_v2  ;;  %v4642_v2 = vld [vmem:[%s5163_s29 + $0x70] sm:$0xf0] }
  0xe9   : > { %1297 = vmatpush.bf16.msrb.mxu0 %v3612_v6 }
 0x135   : > { %v754_v5 = vpop.xlane.xlu1 %753 }
 0x136   : > { %v759_v8 = vmul.f32 %v754_v5, %v5226_v24 }
 0x138   : > { %v5315_v17 = vadd.f32 1e-06, %v759_v8 }
 0x13a   : > { %4936 = vrsqrt.f32 %v5315_v17  ;;  %vm769_vm4 = vweird.f32 %v5315_v17 }
 0x13d   : > { %v758_v33 = vpop.xlane.xlu1 %757 }
 0x13e   : > { %v760_v38 = vmul.f32 %v758_v33, %v5226_v24  ;;  %v4667_v33 = vld [vmem:[%s5163_s29 + $0x138] sm:$0xf0] }
 0x140   : > { %v4937_v46 = vpop.eup %4936  ;;  %v762_v47 = vadd.f32 1e-06, %v760_v38 }
 0x141   : > { %v764_v50 = vmul.f32 %v4937_v46, %v5315_v17  ;;  %vm770_vm3 = vweird.f32 %v4937_v46  ;;  %v789_v17 = vperm.slane %v723_v12, 1  ;;  %v5391_v12 = vld [vmem:[%s5172_s28] sm:$0x1f] }
 0x142   : > { %4938 = vrsqrt.f32 %v762_v47  ;;  %vm771_vm5 = vmor %vm769_vm4, %vm770_vm3  ;;  %vm779_vm7 = vweird.f32 %v762_v47  ;;  %v881_v16 = vperm.slane %v5391_v12, 0 }
 0x143   : > { %v765_v53 = vmul.f32 %v4937_v46, %v764_v50 }
 0x145   : > { %v766_v60 = vmul.f32 0.5, %v765_v53  ;;  %v4677_v53 = vld [vmem:[%s5163_s29 + $0x188] sm:$0xf0] }
 0x146   : > { %v3796_v56 = vor.u32 %v4677_v53, %v3795_v52 }
 0x147   : > { %v767_v1 = vsub.f32 1.5, %v766_v60  ;;  %v3696_v60 = vor.u32 %v4652_v57, %v3695_v55  ;;  %v885_v55 = vperm.slane %v5391_v12, 4 }
 0x148   : > { %v4939_v5 = vpop.eup %4938 }
 0x149   : > { %v768_v8 = vmul.f32 %v4937_v46, %v767_v1  ;;  %v774_v9 = vmul.f32 %v4939_v5, %v762_v47  ;;  %vm780_vm6 = vweird.f32 %v4939_v5  ;;  %v4682_v47 = vld [vmem:[%s5163_s29 + $0x1b0] sm:$0xf0]  ;;  %v3655_v1 = vld [vmem:[%s5163_s29 + $0x60] sm:$0xf] }
 0x14a   : > { %vm781_vm8 = vmor %vm779_vm7, %vm780_vm6  ;;  %v3656_v3 = vor.u32 %v4642_v2, %v3655_v1 }
 0x14b   : > { %v775_v11 = vmul.f32 %v4939_v5, %v774_v9  ;;  %v772_v13 = vsel %vm771_vm5, %v4937_v46, %v768_v8  ;;  %v3815_v46 = vld [vmem:[%s5163_s29 + $0x1a0] sm:$0xf]  ;;  %v4632_v8 = vld [vmem:[%s5163_s29 + $0x20] sm:$0xf0] }
 0x14c   : > { %v783_v19 = vmul.f32 %v772_v13, %v5229_v27  ;;  %v784_v20 = vmul.f32 %v772_v13, %v5231_v28  ;;  %v3755_v28 = vld [vmem:[%s5163_s29 + $0x128] sm:$0xf]  ;;  %v3816_v50 = vor.u32 %v4682_v47, %v3815_v46  ;;  %v3616_v9 = vor.u32 %v4632_v8, %v3615_v7 }
 0x14d   : > { %v776_v14 = vmul.f32 0.5, %v775_v11  ;;  %v882_v13 = vperm.slane %v5391_v12, 1 }
 0x14e   : > { %v792_v26 = vmul.f32 %v788_v18, %v783_v19  ;;  %v793_v29 = vmul.f32 %v789_v17, %v784_v20 }
 0x14f   : > { %v777_v15 = vsub.f32 1.5, %v776_v14 }
 0x150   : > { %v801_v38 = vadd.f32 %v797_v22, %v792_v26  ;;  %v802_v39 = vadd.f32 %v798_v23, %v793_v29 }
 0x151   : > { %v778_v21 = vmul.f32 %v4939_v5, %v777_v15 }
 0x153   : > { %v782_v25 = vsel %vm781_vm8, %v4939_v5, %v778_v21  ;;  %v4637_v5 = vld [vmem:[%s5163_s29 + $0x48] sm:$0xf0] }
 0x154   : > { %v785_v30 = vmul.f32 %v782_v25, %v5239_v35  ;;  %v786_v31 = vmul.f32 %v782_v25, %v5241_v36  ;;  %v3756_v35 = vor.u32 %v4667_v33, %v3755_v28  ;;  %v3735_v36 = vld [vmem:[%s5163_s29 + $0x100] sm:$0xf]  ;;  %v3636_v6 = vor.u32 %v4637_v5, %v3635_v4  ;;  %s5037_s29 = smov 64  }
 0x155   : > { %v3736_v48 = vor.u32 %v4662_v45, %v3735_v36  ;;  %v883_v33 = vperm.slane %v5391_v12, 2 }
 0x156   : > { %v794_v32 = vmul.f32 %v788_v18, %v785_v30  ;;  %v795_v27 = vmul.f32 %v789_v17, %v786_v31 }
 0x158   : > { %v803_v40 = vadd.f32 %v797_v22, %v794_v32  ;;  %v804_v41 = vadd.f32 %v798_v23, %v795_v27 }
 0x15a   : > { %v805_v42 = vpack.c.bf16 %v803_v40, %v801_v38  ;;  %v806_v43 = vpack.c.bf16 %v804_v41, %v802_v39 }
 0x15c   : > { %1214 = vmatmul.bf16.vlgmr.msra.gmra.mxu0 %v805_v42  ;;  %3837 = vmatmul.msk.bf16.vlgmr.msra.gmra.mxu1 %vm725_vm1, %v806_v43 }
 0x15d   : > { %1242 = vmatmul.bf16.vlgmr.msra.gmra.mxu2 %v805_v42  ;;  %3838 = vmatmul.msk.bf16.vlgmr.msra.gmra.mxu3 %vm725_vm1, %v806_v43 }
 0x15e   : > { %1318 = vmatpush.bf16.msra.mxu3 %v3756_v35  ;;  %1336 = vmatpush.bf16.msra.mxu1 %v3836_v44 }
 0x162   : > { %1319 = vmatpush.bf16.msra.mxu3 %v3736_v48  ;;  %1337 = vmatpush.bf16.msra.mxu1 %v3816_v50 }
 0x166   : > { %1320 = vmatpush.bf16.msra.mxu3 %v3716_v54  ;;  %1338 = vmatpush.bf16.msra.mxu1 %v3796_v56 }
 0x16a   : > { %1321 = vmatpush.bf16.msra.mxu3 %v3696_v60  ;;  %1339 = vmatpush.bf16.msra.mxu1 %v3776_v61  ;;  %v884_v61 = vperm.slane %v5391_v12, 3 }
 0x16c   : > { %1270 = vmatmul.bf16.vlgmr.msrb.gmra.mxu1 %v805_v42  ;;  %1298 = vmatmul.bf16.vlgmr.msrb.gmra.mxu0 %v805_v42 }
 0x16d   : > { %3839 = vmatmul.msk.bf16.vlgmr.msrb.gmra.mxu3 %vm725_vm1, %v806_v43  ;;  %3840 = vmatmul.msk.bf16.vlgmr.msrb.gmra.mxu2 %vm725_vm1, %v806_v43 }
 0x16e   : > { %1322 = vmatpush.bf16.msra.mxu3 %v3676_v0 }
 0x172   : > { %1323 = vmatpush.bf16.msra.mxu3 %v3656_v3 }
 0x176   : > { %1324 = vmatpush.bf16.msra.mxu3 %v3636_v6 }
 0x17a   : > { %1325 = vmatpush.bf16.msra.mxu3 %v3616_v9 }
 0x17c   : > { %3841 = vmatmul.msk.bf16.vlgmr.msra.gmra.mxu1 %vm725_vm1, %v806_v43 }
 0x17d   : > { %1326 = vmatmul.bf16.vlgmr.msra.gmra.mxu3 %v805_v42 }
 0x1d9   : > { %v1229_v10 = vpop.f32.mrf.mxu1  ;;  %v1215_v11 = vpop.f32.mrf.mxu0 }
 0x1da   : > { %v1216_v20 = vadd.f32 %v1215_v11, %v881_v16 }
 0x1dc   : > { %v1230_v26 = vadd.f32 %v1229_v10, %v1216_v20 }
 0x1e0   : > { %v1243_v14 = vpop.f32.mrf.mxu2  ;;  %v1257_v15 = vpop.f32.mrf.mxu3 }
 0x1e1   : > { %v1231_v18 = vpop.f32.mrf.mxu1  ;;  %v1244_v17 = vadd.f32 %v1243_v14, %v882_v13  ;;  %v1217_v19 = vpop.f32.mrf.mxu0 }
 0x1e2   : > { %v1218_v22 = vadd.f32 %v1217_v19, %v881_v16 }
 0x1e3   : > { %v1258_v21 = vadd.f32 %v1257_v15, %v1244_v17 }
 0x1e4   : > { %v1232_v32 = vadd.f32 %v1231_v18, %v1218_v22 }
 0x1e5   : > { %v1346_v31 = vpack.c.bf16 %v1258_v21, %v1230_v26 }
 0x1e7   : > { %v1502_v34 = vunpack.c.h.b16 %v1346_v31  ;;  %v1357_v38 = vunpack.c.l.b16 %v1346_v31 }
 0x1e8   : > { %v1245_v23 = vpop.f32.mrf.mxu2  ;;  %v1259_v25 = vpop.f32.mrf.mxu3 }
 0x1e9   : > { %v1246_v29 = vadd.f32 %v1245_v23, %v882_v13  ;;  %v1271_v30 = vpop.f32.mrf.mxu1  ;;  %v1299_v49 = vpop.f32.mrf.mxu0  ;;  %v4933_v23 = vld [vmem:[%s6109_s16] ss:$0 sm:$0xff] }
 0x1ea   : > { %v1272_v43 = vadd.f32 %v1271_v30, %v883_v33  ;;  %v1300_v0 = vadd.f32 %v1299_v49, %v884_v61 }
 0x1eb   : > { %v1260_v27 = vadd.f32 %v1259_v25, %v1246_v29 }
 0x1ed   : > { %v1347_v28 = vpack.c.bf16 %v1260_v27, %v1232_v32 }
 0x1ef   : > { %v1503_v37 = vunpack.c.h.b16 %v1347_v28  ;;  %v1358_v39 = vunpack.c.l.b16 %v1347_v28 }
 0x1f0   : > { %v1285_v40 = vpop.f32.mrf.mxu3  ;;  %v1313_v54 = vpop.f32.mrf.mxu2 }
 0x1f1   : > { %v1504_v41 = vpack.c.b16 %v1503_v37, %v1502_v34  ;;  %v1359_v42 = vpack.c.b16 %v1358_v39, %v1357_v38  ;;  %v1273_v35 = vpop.f32.mrf.mxu1  ;;  %v1286_v36 = vadd.f32 %v1285_v40, %v1272_v43  ;;  %v1301_v63 = vpop.f32.mrf.mxu0  ;;  %v1314_v4 = vadd.f32 %v1313_v54, %v1300_v0 }
 0x1f2   : > { %v1274_v44 = vadd.f32 %v1273_v35, %v883_v33  ;;  %v1302_v5 = vadd.f32 %v1301_v63, %v884_v61 }
 0x1f3   : > { %1434 = vrot.lane.b32.xlu2 %v1359_v42, %s5037_s29  ;;  %v1348_v46 = vpack.c.bf16 %v1286_v36, %v1258_v21 }
 0x1f5   : > { %v1362_v50 = vunpack.c.l.b16 %v1348_v46  ;;  %v1436_v51 = vunpack.c.h.b16 %v1348_v46 }
 0x1f8   : > { %v1287_v45 = vpop.f32.mrf.mxu3  ;;  %v1315_v2 = vpop.f32.mrf.mxu2 }
 0x1f9   : > { %v1288_v47 = vadd.f32 %v1287_v45, %v1274_v44  ;;  %v1341_v58 = vpop.f32.mrf.mxu1  ;;  %v1316_v8 = vadd.f32 %v1315_v2, %v1302_v5 }
 0x1fb   : > { %v1349_v48 = vpack.c.bf16 %v1288_v47, %v1260_v27 }
 0x1fd   : > { %v1363_v52 = vunpack.c.l.b16 %v1349_v48  ;;  %v1437_v53 = vunpack.c.h.b16 %v1349_v48 }
 0x1ff   : > { %v1438_v56 = vpack.c.b16 %v1437_v53, %v1436_v51  ;;  %v1364_v57 = vpack.c.b16 %v1363_v52, %v1362_v50 }
 0x200   : > { %v1327_v59 = vpop.f32.mrf.mxu3 }
 0x201   : > { %1505 = vrot.lane.b32.xlu0 %v1438_v56, %s5037_s29  ;;  %1365 = vrot.lane.b32.xlu2 %v1364_v57, %s5037_s29  ;;  %v1443_v60 = vsel %vm725_vm1, %v1438_v56, 0  ;;  %v1328_v62 = vadd.f32 %v1327_v59, %v885_v55  ;;  %v1343_v7 = vpop.f32.mrf.mxu1 }
 0x202   : > { %1452 = vmatpush.bf16.xpose.msrb.mxu1 %v1443_v60 }
 0x203   : > { %v1342_v1 = vadd.f32 %v1341_v58, %v1328_v62 }
 0x205   : > { %v1350_v9 = vpack.c.bf16 %v1342_v1, %v1314_v4 }
 0x207   : > { %v1409_v13 = vunpack.c.l.b16 %v1350_v9  ;;  %v1546_v14 = vunpack.c.h.b16 %v1350_v9 }
 0x208   : > { %v1329_v3 = vpop.f32.mrf.mxu3 }
 0x209   : > { %v1330_v6 = vadd.f32 %v1329_v3, %v885_v55 }
 0x20b   : > { %v1344_v10 = vadd.f32 %v1343_v7, %v1330_v6 }
 0x20d   : > { %v1351_v11 = vpack.c.bf16 %v1344_v10, %v1316_v8 }
 0x20f   : > { %v1410_v15 = vunpack.c.l.b16 %v1351_v11  ;;  %v1547_v16 = vunpack.c.h.b16 %v1351_v11 }
 0x211   : > { %v1411_v18 = vpack.c.b16 %v1410_v15, %v1409_v13  ;;  %v1548_v12 = vpack.c.b16 %v1547_v16, %v1546_v14 }
 0x213   : > { %1423 = vmatpush.bf16.msra.mxu0 %v1411_v18 }
 0x217   : > { %1560 = vmatpush.bf16.msrb.mxu0 %v1548_v12 }
 0x24d   : > { %v1435_v17 = vpop.permute.xlu2 %1434 }
 0x24e   : > { %3844 = vmatmul.msk.bf16.vlgmr.msrb.gmra.mxu1 %vm725_vm1, %v1435_v17 }
 0x25b   : > { %v1366_v19 = vpop.permute.xlu2 %1365 }
 0x25c   : > { %v1371_v20 = vsel %vm725_vm1, %v1366_v19, 0 }
 0x25d   : > { %1380 = vmatpush.bf16.xpose.msra.mxu2 %v1371_v20 }
 0x264   : > { %3842 = vmatmul.msk.bf16.vlgmr.msra.gmra.mxu2 %vm725_vm1, %v1359_v42 }
 0x273   : > { %v1506_v21 = vpop.permute.xlu0 %1505 }
 0x274   : > { %v1511_v22 = vsel %vm725_vm1, %v1506_v21, 0 }
 0x275   : > { %1520 = vmatpush.bf16.xpose.msrb.mxu3 %v1511_v22  ;;  %v3938_v22 = vld [vmem:[%s5181_s1 + $0xb0] sm:$0xf] }
 0x27c   : > { %3846 = vmatmul.msk.bf16.vlgmr.msrb.gmra.mxu3 %vm725_vm1, %v1504_v41 }
 0x2cb   : > { %v1454_v25 = vpop.f32.mrf.mxu1 }
 0x2cc   : > { %v1455_v26 = vadd.f32 %v4933_v23, %v1454_v25  ;;  %v4710_v25 = vld [vmem:[%s5181_s1 + $0xb4] sm:$0xf] }
 0x2ce   : > { %v1459_v29 = vsel %vm1387_vm9, %v1455_v26, -inf }
 0x2cf   : > { %1460 = vmax.xlane.f32.xlu1 %v1459_v29  ;;  %v3940_v29 = vld [vmem:[%s5181_s1 + $0xb8] sm:$0xf0] }
 0x2d3   : > { %v1456_v30 = vpop.f32.mrf.mxu1 }
 0x2d4   : > { %v1457_v31 = vadd.f32 %v4933_v23, %v1456_v30  ;;  %v3943_v30 = vor.u32 %v4710_v25, %v3940_v29 }
 0x2d6   : > { %v1462_v32 = vsel %vm1387_vm9, %v1457_v31, -inf }
 0x2d7   : > { %1463 = vmax.xlane.f32.xlu2 %v1462_v32  ;;  %v4709_v32 = vld [vmem:[%s5181_s1 + $0xa4] sm:$0xf0] }
 0x2e7   : > { %v1382_v27 = vpop.f32.mrf.mxu2 }
 0x2e8   : > { %v1383_v28 = vadd.f32 %v4933_v23, %v1382_v27  ;;  %1478 = vrot.lane.b32.xlu1 %v1411_v18, %s5037_s29  ;;  %v4708_v27 = vld [vmem:[%s5181_s1 + $0xa4] sm:$0xf] }
 0x2ea   : > { %v1388_v33 = vsel %vm1387_vm9, %v1383_v28, -inf }
 0x2eb   : > { %1389 = vmax.xlane.f32.xlu0 %v1388_v33  ;;  %v3932_v33 = vld [vmem:[%s5181_s1 + $0xa8] sm:$0xf0] }
 0x2ef   : > { %v1384_v41 = vpop.f32.mrf.mxu2 }
 0x2f0   : > { %v1385_v43 = vadd.f32 %v4933_v23, %v1384_v41  ;;  %v3924_v41 = vld [vmem:[%s5181_s1 + $0x98] sm:$0xf0] }
 0x2f2   : > { %v1391_v35 = vsel %vm1387_vm9, %v1385_v43, -inf }
 0x2ff   : > { %v1522_v34 = vpop.f32.mrf.mxu3 }
 0x300   : > { %v1523_v37 = vadd.f32 %v4933_v23, %v1522_v34  ;;  %v3935_v34 = vor.u32 %v4708_v27, %v3932_v33  ;;  %v3860_v27 = vld [vmem:[%s5181_s1 + $0x18] sm:$0xf0] }
 0x302   : > { %v1527_v38 = vsel %vm1387_vm9, %v1523_v37, -inf }
 0x303   : > { %1528 = vmax.xlane.f32.xlu2 %v1527_v38  ;;  %v4707_v38 = vld [vmem:[%s5181_s1 + $0x94] sm:$0xf0] }
 0x307   : > { %v1524_v39 = vpop.f32.mrf.mxu3 }
 0x308   : > { %v1525_v40 = vadd.f32 %v4933_v23, %v1524_v39  ;;  %v4711_v23 = vld [vmem:[%s5181_s1 + $0xb4] sm:$0xf0]  ;;  %v4706_v39 = vld [vmem:[%s5181_s1 + $0x94] sm:$0xf] }
 0x30a   : > { %v1530_v42 = vsel %vm1387_vm9, %v1525_v40, -inf }
 0x30b   : > { %1531 = vmax.xlane.f32.xlu2 %v1530_v42  ;;  %v3927_v42 = vor.u32 %v4706_v39, %v3924_v41 }
 0x312   : > { %1392 = vmax.xlane.f32.xlu1 %v1391_v35  ;;  %v3914_v35 = vld [vmem:[%s5181_s1 + $0x80] sm:$0xf] }
 0x342   : > { %v1461_v36 = vpop.xlane.xlu1 %1460 }
 0x343   : > { %v1465_v44 = vsub.f32 %v1455_v26, %v1461_v36  ;;  %v3939_v26 = vor.u32 %v4711_v23, %v3938_v22  ;;  %v4705_v36 = vld [vmem:[%s5181_s1 + $0x84] sm:$0xf0]  ;;  %v3868_v22 = vld [vmem:[%s5181_s1 + $0x28] sm:$0xf0] }
 0x345   : > { %v1467_v45 = vmul.f32 1.442695, %v1465_v44  ;;  %v4704_v44 = vld [vmem:[%s5181_s1 + $0x84] sm:$0xf] }
 0x347   : > { %4940 = vpow2.f32 %v1467_v45  ;;  %v3915_v45 = vor.u32 %v4705_v36, %v3914_v35  ;;  %v4688_v35 = vld [vmem:[%s5181_s1 + $0x4] sm:$0xf] }
 0x34a   : > { %v1464_v46 = vpop.xlane.xlu2 %1463 }
 0x34b   : > { %v1466_v47 = vsub.f32 %v1457_v31, %v1464_v46  ;;  %v3930_v31 = vld [vmem:[%s5181_s1 + $0xa0] sm:$0xf]  ;;  %v3916_v46 = vld [vmem:[%s5181_s1 + $0x88] sm:$0xf0] }
 0x34d   : > { %v4941_v48 = vpop.eup %4940  ;;  %v1469_v49 = vmul.f32 1.442695, %v1466_v47  ;;  %v3919_v47 = vor.u32 %v4704_v44, %v3916_v46  ;;  %v3852_v44 = vld [vmem:[%s5181_s1 + $0x8] sm:$0xf0] }
 0x34e   : > { %v1471_v50 = vsel %vm1387_vm9, %v4941_v48, 0.0 }
 0x34f   : > { %4942 = vpow2.f32 %v1469_v49  ;;  %1472 = vadd.xlane.f32.xlu2 %v1471_v50  ;;  %v4703_v49 = vld [vmem:[%s5181_s1 + $0x74] sm:$0xf0]  ;;  %v4702_v50 = vld [vmem:[%s5181_s1 + $0x74] sm:$0xf] }
 0x355   : > { %v4943_v51 = vpop.eup %4942 }
 0x356   : > { %v1474_v52 = vsel %vm1387_vm9, %v4943_v51, 0.0  ;;  %v1477_v54 = vpack.c.bf16 %v4943_v51, %v4941_v48  ;;  %v3906_v48 = vld [vmem:[%s5181_s1 + $0x70] sm:$0xf] }
 0x357   : > { %1475 = vadd.xlane.f32.xlu0 %v1474_v52  ;;  %v3907_v51 = vor.u32 %v4703_v49, %v3906_v48  ;;  %v3908_v52 = vld [vmem:[%s5181_s1 + $0x78] sm:$0xf0] }
 0x359   : > { %1736 = vmatpush.bf16.msra.mxu1 %v3907_v51 }
 0x35a   : > { %v1479_v53 = vpop.permute.xlu1 %1478 }
 0x35b   : > { %1491 = vmatpush.bf16.msrb.mxu2 %v1479_v53  ;;  %v3898_v53 = vld [vmem:[%s5181_s1 + $0x60] sm:$0xf] }
 0x35e   : > { %v1390_v55 = vpop.xlane.xlu0 %1389  ;;  %3845 = vmatmul.msk.bf16.vlgmr.msrb.gmra.mxu2 %vm1387_vm9, %v1477_v54  ;;  %v4701_v54 = vld [vmem:[%s5181_s1 + $0x64] sm:$0xf0] }
 0x35f   : > { %v1394_v56 = vsub.f32 %v1383_v28, %v1390_v55  ;;  %1754 = vmatpush.bf16.msra.mxu2 %v3939_v26  ;;  %v3931_v28 = vor.u32 %v4709_v32, %v3930_v31  ;;  %v3911_v55 = vor.u32 %v4702_v50, %v3908_v52  ;;  %v4691_v31 = vld [vmem:[%s5181_s1 + $0x14] sm:$0xf0]  ;;  %v4690_v32 = vld [vmem:[%s5181_s1 + $0x14] sm:$0xf] }
 0x360   : > { %v3863_v33 = vor.u32 %v4690_v32, %v3860_v27 }
 0x361   : > { %v1396_v57 = vmul.f32 1.442695, %v1394_v56  ;;  %v4700_v56 = vld [vmem:[%s5181_s1 + $0x64] sm:$0xf]  ;;  %1764 = vmatpush.bf16.msra.mxu3 %v3911_v55  ;;  %v1607_v55 = vld [vmem:[%s6110_s12] sm:$0x3] }
 0x363   : > { %4944 = vpow2.f32 %v1396_v57  ;;  %1755 = vmatpush.bf16.msra.mxu2 %v3931_v28  ;;  %v3900_v57 = vld [vmem:[%s5181_s1 + $0x68] sm:$0xf0] }
 0x369   : > { %v4945_v58 = vpop.eup %4944 }
 0x36a   : > { %v1400_v59 = vsel %vm1387_vm9, %v4945_v58, 0.0 }
 0x36b   : > { %1401 = vadd.xlane.f32.xlu2 %v1400_v59 }
 0x376   : > { %v1529_v60 = vpop.xlane.xlu2 %1528 }
 0x377   : > { %v1533_v61 = vsub.f32 %v1523_v37, %v1529_v60  ;;  %v3922_v37 = vld [vmem:[%s5181_s1 + $0x90] sm:$0xf]  ;;  %v3899_v60 = vor.u32 %v4701_v54, %v3898_v53 }
 0x379   : > { %v1535_v62 = vmul.f32 1.442695, %v1533_v61  ;;  %1737 = vmatpush.bf16.msra.mxu1 %v3899_v60 }
 0x37b   : > { %4946 = vpow2.f32 %v1535_v62  ;;  %v3903_v62 = vor.u32 %v4700_v56, %v3900_v57  ;;  %v1609_v56 = vperm.slane %v1607_v55, 0 }
 0x37d   : > { %1765 = vmatpush.bf16.msra.mxu3 %v3903_v62 }
 0x37e   : > { %v1532_v63 = vpop.xlane.xlu2 %1531 }
 0x37f   : > { %v1534_v0 = vsub.f32 %v1525_v40, %v1532_v63  ;;  %v3923_v40 = vor.u32 %v4707_v38, %v3922_v37  ;;  %v3890_v63 = vld [vmem:[%s5181_s1 + $0x50] sm:$0xf] }
 0x381   : > { %v4947_v1 = vpop.eup %4946  ;;  %v1537_v2 = vmul.f32 1.442695, %v1534_v0  ;;  %1756 = vmatpush.bf16.msra.mxu2 %v3923_v40  ;;  %v4699_v0 = vld [vmem:[%s5181_s1 + $0x54] sm:$0xf0] }
 0x382   : > { %v1539_v3 = vsel %vm1387_vm9, %v4947_v1, 0.0 }
 0x383   : > { %4948 = vpow2.f32 %v1537_v2  ;;  %1540 = vadd.xlane.f32.xlu2 %v1539_v3  ;;  %v3892_v2 = vld [vmem:[%s5181_s1 + $0x58] sm:$0xf0]  ;;  %v3891_v3 = vor.u32 %v4699_v0, %v3890_v63 }
 0x385   : > { %v1393_v4 = vpop.xlane.xlu1 %1392  ;;  %1757 = vmatpush.bf16.msra.mxu2 %v3915_v45  ;;  %1738 = vmatpush.bf16.msra.mxu1 %v3891_v3  ;;  %v3855_v45 = vor.u32 %v4688_v35, %v3852_v44  ;;  %v4992_v3 = vld [vmem:[%s5194_s0 + $0x8] sm:$0xff] }
 0x386   : > { %v1395_v5 = vsub.f32 %v1385_v43, %v1393_v4 }
 0x388   : > { %v1398_v6 = vmul.f32 1.442695, %v1395_v5  ;;  %v3882_v5 = vld [vmem:[%s5181_s1 + $0x40] sm:$0xf] }
 0x389   : > { %v4949_v7 = vpop.eup %4948 }
 0x38a   : > { %4950 = vpow2.f32 %v1398_v6  ;;  %v1542_v8 = vsel %vm1387_vm9, %v4949_v7, 0.0  ;;  %v1545_v13 = vpack.c.bf16 %v4949_v7, %v4947_v1  ;;  %v4698_v1 = vld [vmem:[%s5181_s1 + $0x54] sm:$0xf]  ;;  %v4697_v6 = vld [vmem:[%s5181_s1 + $0x44] sm:$0xf0] }
 0x38b   : > { %1543 = vadd.xlane.f32.xlu1 %v1542_v8  ;;  %v3895_v4 = vor.u32 %v4698_v1, %v3892_v2  ;;  %v4696_v7 = vld [vmem:[%s5181_s1 + $0x44] sm:$0xf]  ;;  %v3884_v8 = vld [vmem:[%s5181_s1 + $0x48] sm:$0xf0] }
 0x38d   : > { %1766 = vmatpush.bf16.msra.mxu3 %v3895_v4 }
 0x390   : > { %v4951_v9 = vpop.eup %4950 }
 0x391   : > { %v1406_v10 = vpack.c.bf16 %v4951_v9, %v4945_v58  ;;  %v1403_v11 = vsel %vm1387_vm9, %v4951_v9, 0.0 }
 0x392   : > { %1404 = vadd.xlane.f32.xlu0 %v1403_v11  ;;  %v3887_v11 = vor.u32 %v4696_v7, %v3884_v8 }
 0x393   : > { %3843 = vmatmul.msk.bf16.vlgmr.msra.gmra.mxu0 %vm1387_vm9, %v1406_v10  ;;  %v3883_v10 = vor.u32 %v4697_v6, %v3882_v5  ;;  %v4993_v5 = vld [vmem:[%s5194_s0] sm:$0xff] }
 0x394   : > { %1782 = vmatpush.bf16.msra.mxu0 %v3943_v30  ;;  %1767 = vmatpush.bf16.msra.mxu3 %v3887_v11  ;;  %v3858_v30 = vld [vmem:[%s5181_s1 + $0x10] sm:$0xf] }
 0x395   : > { %1739 = vmatpush.bf16.msra.mxu1 %v3883_v10  ;;  %v3859_v28 = vor.u32 %v4691_v31, %v3858_v30 }
 0x398   : > { %1783 = vmatpush.bf16.msra.mxu0 %v3935_v34 }
 0x39c   : > { %1784 = vmatpush.bf16.msra.mxu0 %v3927_v42  ;;  %v3850_v42 = vld [vmem:[%s5181_s1] sm:$0xf] }
 0x3a0   : > { %1785 = vmatpush.bf16.msra.mxu0 %v3919_v47 }
 0x3a3   : > { %3847 = vmatmul.msk.bf16.vlgmr.msrb.gmra.mxu0 %vm1387_vm9, %v1545_v13  ;;  %v3874_v13 = vld [vmem:[%s5181_s1 + $0x30] sm:$0xf] }
 0x3c2   : > { %v1473_v14 = vpop.xlane.xlu2 %1472 }
 0x3c3   : > { %4952 = vrcp.f32 %v1473_v14  ;;  %v4695_v14 = vld [vmem:[%s5181_s1 + $0x34] sm:$0xf0] }
 0x3c9   : > { %v4953_v18 = vpop.eup %4952 }
 0x3ca   : > { %v1476_v15 = vpop.xlane.xlu0 %1475 }
 0x3cb   : > { %4954 = vrcp.f32 %v1476_v15  ;;  %v4694_v15 = vld [vmem:[%s5181_s1 + $0x34] sm:$0xf] }
 0x3d1   : > { %v4955_v12 = vpop.eup %4954 }
 0x3de   : > { %v1402_v43 = vpop.xlane.xlu2 %1401 }
 0x3df   : > { %4956 = vrcp.f32 %v1402_v43  ;;  %v4689_v43 = vld [vmem:[%s5181_s1 + $0x4] sm:$0xf0] }
 0x3e0   : > { %v3851_v36 = vor.u32 %v4689_v43, %v3850_v42 }
 0x3e1   : > { %v1493_v16 = vpop.f32.mrf.mxu2 }
 0x3e2   : > { %v1500_v19 = vmul.f32 %v4953_v18, %v1493_v16  ;;  %v3876_v16 = vld [vmem:[%s5181_s1 + $0x38] sm:$0xf0]  ;;  %v3875_v18 = vor.u32 %v4695_v14, %v3874_v13 }
 0x3e4   : > { %1740 = vmatpush.bf16.msra.mxu1 %v3875_v18  ;;  %v4994_v18 = vld [vmem:[%s5194_s0 + $0x18] sm:$0xff] }
 0x3e5   : > { %v4957_v58 = vpop.eup %4956 }
 0x3e9   : > { %v1495_v17 = vpop.f32.mrf.mxu2 }
 0x3ea   : > { %v1501_v20 = vmul.f32 %v4955_v12, %v1495_v17  ;;  %v3879_v12 = vor.u32 %v4694_v15, %v3876_v16  ;;  %v3866_v17 = vld [vmem:[%s5181_s1 + $0x20] sm:$0xf] }
 0x3ec   : > { %v4928_v21 = vpack.i.bf16 %v1501_v20, %v1500_v19  ;;  %v4693_v19 = vld [vmem:[%s5181_s1 + $0x24] sm:$0xf0]  ;;  %1768 = vmatpush.bf16.msra.mxu3 %v3879_v12 }
 0x3ed   : > { %v3867_v26 = vor.u32 %v4693_v19, %v3866_v17  ;;  %v4995_v17 = vld [vmem:[%s5194_s0 + $0x10] sm:$0xff] }
 0x3ee   : > { %4929 = vrot.lane.b32.xlu0 %v4928_v21, %s5037_s29  ;;  %v4692_v21 = vld [vmem:[%s5181_s1 + $0x24] sm:$0xf] }
 0x3ef   : > { %v3871_v29 = vor.u32 %v4692_v21, %v3868_v22  ;;  %1741 = vmatpush.bf16.msra.mxu1 %v3867_v26  ;;  %v4116_v22 = vld [vmem:[%s5199_s11 + $0x150] sm:$0xf] }
 0x3f1   : > { %1769 = vmatpush.bf16.msra.mxu3 %v3871_v29  ;;  %v4118_v29 = vld [vmem:[%s5199_s11 + $0x168] sm:$0xf0] }
 0x3f3   : > { %1742 = vmatpush.bf16.msra.mxu1 %v3859_v28 }
 0x3f5   : > { %1770 = vmatpush.bf16.msra.mxu3 %v3863_v33 }
 0x3f6   : > { %v1541_v20 = vpop.xlane.xlu2 %1540 }
 0x3f7   : > { %4958 = vrcp.f32 %v1541_v20  ;;  %1743 = vmatpush.bf16.msra.mxu1 %v3851_v36 }
 0x3f9   : > { %1771 = vmatpush.bf16.msra.mxu3 %v3855_v45  ;;  %v4092_v45 = vld [vmem:[%s5199_s11 + $0x120] sm:$0xf] }
 0x3fd   : > { %v4959_v34 = vpop.eup %4958 }
 0x3fe   : > { %v1544_v23 = vpop.xlane.xlu1 %1543 }
 0x3ff   : > { %4960 = vrcp.f32 %v1544_v23  ;;  %v4757_v23 = vld [vmem:[%s5199_s11 + $0x164] sm:$0xf0] }
 0x400   : > { %v4117_v26 = vor.u32 %v4757_v23, %v4116_v22  ;;  %v4727_v22 = vld [vmem:[%s5199_s11 + $0x74] sm:$0xf0]  ;;  %v4724_v23 = vld [vmem:[%s5199_s11 + $0x64] sm:$0xf] }
 0x402   : > { %2321 = vmatpush.bf16.msrb.mxu2 %v4117_v26  ;;  %v3998_v26 = vld [vmem:[%s5199_s11 + $0x78] sm:$0xf0] }
 0x405   : > { %v4961_v37 = vpop.eup %4960  ;;  %v1405_v46 = vpop.xlane.xlu0 %1404 }
 0x406   : > { %4962 = vrcp.f32 %v1405_v46  ;;  %v4751_v46 = vld [vmem:[%s5199_s11 + $0x134] sm:$0xf0] }
 0x40c   : > { %v4963_v47 = vpop.eup %4962 }
 0x410   : > { %v1425_v59 = vpop.f32.mrf.mxu0 }
 0x411   : > { %v5451_v61 = vmul.f32 %v4957_v58, %v1425_v59  ;;  %v1610_v58 = vperm.slane %v1607_v55, 1  ;;  %v4070_v55 = vld [vmem:[%s5199_s11 + $0x108] sm:$0xf0] }
 0x418   : > { %v1427_v9 = vpop.f32.mrf.mxu0 }
 0x419   : > { %v1433_v49 = vmul.f32 %v4963_v47, %v1427_v9  ;;  %v4748_v47 = vld [vmem:[%s5199_s11 + $0x124] sm:$0xf] }
 0x420   : > { %v1562_v25 = vpop.f32.mrf.mxu0 }
 0x421   : > { %v1569_v39 = vmul.f32 %v4959_v34, %v1562_v25  ;;  %v4754_v25 = vld [vmem:[%s5199_s11 + $0x154] sm:$0xf] }
 0x422   : > { %v4121_v30 = vor.u32 %v4754_v25, %v4118_v29  ;;  %v4164_v29 = vld [vmem:[%s5199_s11 + $0x1b0] sm:$0xf] }
 0x424   : > { %2349 = vmatpush.bf16.msrb.mxu1 %v4121_v30  ;;  %v4769_v30 = vld [vmem:[%s5199_s11 + $0x1c4] sm:$0xf0] }
 0x428   : > { %v1564_v38 = vpop.f32.mrf.mxu0 }
 0x429   : > { %v1570_v40 = vmul.f32 %v4961_v37, %v1564_v38 }
 0x42b   : > { %v1582_v41 = vpack.c.bf16 %v1570_v40, %v1569_v39 }
 0x42d   : > { %3944 = vmatmul.msk.bf16.vlgmr.msra.gmra.mxu2 %vm725_vm1, %v1582_v41  ;;  %3945 = vmatmul.msk.bf16.vlgmr.msra.gmra.mxu0 %vm725_vm1, %v1582_v41 }
 0x460   : > { %v4930_v48 = vpop.permute.xlu0 %4929 }
 0x461   : > { %v4932_v50 = vunpack.i.h.bf16 %v4930_v48  ;;  %v4931_v51 = vunpack.i.l.bf16 %v4930_v48  ;;  %v4093_v48 = vor.u32 %v4751_v46, %v4092_v45 }
 0x463   : > { %v1580_v52 = vsel %vm725_vm1, %v1433_v49, %v4932_v50  ;;  %v1579_v53 = vsel %vm725_vm1, %v5451_v61, %v4931_v51  ;;  %v4094_v49 = vld [vmem:[%s5199_s11 + $0x138] sm:$0xf0]  ;;  %2322 = vmatpush.bf16.msrb.mxu2 %v4093_v48  ;;  %v4068_v51 = vld [vmem:[%s5199_s11 + $0xf0] sm:$0xf] }
 0x464   : > { %v1581_v54 = vpack.c.bf16 %v1580_v52, %v1579_v53  ;;  %v4097_v50 = vor.u32 %v4748_v47, %v4094_v49  ;;  %v4745_v52 = vld [vmem:[%s5199_s11 + $0x104] sm:$0xf0]  ;;  %v4742_v53 = vld [vmem:[%s5199_s11 + $0xf4] sm:$0xf]  ;;  %v4760_v47 = vld [vmem:[%s5199_s11 + $0x184] sm:$0xf] }
 0x465   : > { %v4142_v48 = vld [vmem:[%s5199_s11 + $0x198] sm:$0xf0]  ;;  %v4124_v49 = vld [vmem:[%s5199_s11 + $0x158] sm:$0xf] }
 0x466   : > { %1744 = vmatmul.bf16.vlgmr.msra.gmra.mxu1 %v1581_v54  ;;  %1772 = vmatmul.bf16.vlgmr.msra.gmra.mxu3 %v1581_v54  ;;  %v4069_v54 = vor.u32 %v4745_v52, %v4068_v51  ;;  %v4758_v51 = vld [vmem:[%s5199_s11 + $0x16c] sm:$0xf0]  ;;  %v4755_v52 = vld [vmem:[%s5199_s11 + $0x15c] sm:$0xf] }
 0x467   : > { %2350 = vmatpush.bf16.msrb.mxu1 %v4097_v50  ;;  %v4145_v50 = vor.u32 %v4760_v47, %v4142_v48  ;;  %v4764_v47 = vld [vmem:[%s5199_s11 + $0x19c] sm:$0xf0]  ;;  %v4761_v48 = vld [vmem:[%s5199_s11 + $0x18c] sm:$0xf] }
 0x468   : > { %2323 = vmatpush.bf16.msrb.mxu2 %v4069_v54  ;;  %v4125_v54 = vor.u32 %v4758_v51, %v4124_v49  ;;  %v4028_v51 = vld [vmem:[%s5199_s11 + $0x98] sm:$0xf] }
 0x4aa   : > { %v1787_v62 = vpop.f32.mrf.mxu0 }
 0x4b0   : > { %v1759_v60 = vpop.f32.mrf.mxu2 }
 0x4b2   : > { %v1789_v14 = vpop.f32.mrf.mxu0 }
 0x4b8   : > { %v1761_v11 = vpop.f32.mrf.mxu2 }
 0x4e3   : > { %v1745_v57 = vpop.f32.mrf.mxu1 }
 0x4e4   : > { %v1746_v59 = vadd.f32 %v1745_v57, %v1609_v56  ;;  %v4044_v57 = vld [vmem:[%s5199_s11 + $0xc0] sm:$0xf] }
 0x4e6   : > { %v1760_v1 = vadd.f32 %v1759_v60, %v1746_v59  ;;  %v4736_v59 = vld [vmem:[%s5199_s11 + $0xc4] sm:$0xf] }
 0x4e8   : > { %v5491_v6 = vadd.f32 %v4993_v5, %v1760_v1 }
 0x4e9   : > { %v1773_v63 = vpop.f32.mrf.mxu3 }
 0x4ea   : > { %v1774_v0 = vadd.f32 %v1773_v63, %v1610_v58  ;;  %v4212_v63 = vld [vmem:[%s5199_s11 + $0x210] sm:$0xf] }
 0x4eb   : > { %v1747_v2 = vpop.f32.mrf.mxu1 }
 0x4ec   : > { %v1788_v61 = vadd.f32 %v1787_v62, %v1774_v0  ;;  %v1748_v7 = vadd.f32 %v1747_v2, %v1609_v56  ;;  %v4073_v56 = vor.u32 %v4742_v53, %v4070_v55  ;;  %v4046_v62 = vld [vmem:[%s5199_s11 + $0xd8] sm:$0xf0]  ;;  %v4781_v0 = vld [vmem:[%s5199_s11 + $0x224] sm:$0xf0]  ;;  %v4778_v2 = vld [vmem:[%s5199_s11 + $0x214] sm:$0xf] }
 0x4ed   : > { %v4049_v1 = vor.u32 %v4736_v59, %v4046_v62  ;;  %v4126_v53 = vld [vmem:[%s5199_s11 + $0x170] sm:$0xf0]  ;;  %v4220_v62 = vld [vmem:[%s5199_s11 + $0x218] sm:$0xf] }
 0x4ee   : > { %v5488_v4 = vadd.f32 %v4992_v3, %v1788_v61  ;;  %v1762_v15 = vadd.f32 %v1761_v11, %v1748_v7  ;;  %2351 = vmatpush.bf16.msrb.mxu1 %v4073_v56  ;;  %v4213_v61 = vor.u32 %v4781_v0, %v4212_v63  ;;  %v4214_v3 = vld [vmem:[%s5199_s11 + $0x228] sm:$0xf0]  ;;  %v4020_v7 = vld [vmem:[%s5199_s11 + $0x90] sm:$0xf]  ;;  %v4129_v55 = vor.u32 %v4755_v52, %v4126_v53  ;;  %v3948_v56 = vld [vmem:[%s5199_s11] sm:$0xf] }
 0x4ef   : > { %v4217_v5 = vor.u32 %v4778_v2, %v4214_v3  ;;  %v4022_v11 = vld [vmem:[%s5199_s11 + $0xa8] sm:$0xf0]  ;;  %v4782_v63 = vld [vmem:[%s5199_s11 + $0x22c] sm:$0xf0]  ;;  %v4222_v2 = vld [vmem:[%s5199_s11 + $0x230] sm:$0xf0] }
 0x4f0   : > { %v1798_v8 = vsel %vm725_vm1, %v5488_v4, 0.0  ;;  %v5500_v19 = vadd.f32 %v4995_v17, %v1762_v15  ;;  %2339 = vmatpush.bf16.msrb.mxu0 %v4213_v61  ;;  %v4190_v17 = vld [vmem:[%s5199_s11 + $0x1f8] sm:$0xf0]  ;;  %v4100_v3 = vld [vmem:[%s5199_s11 + $0x128] sm:$0xf] }
 0x4f1   : > { %v1775_v9 = vpop.f32.mrf.mxu3  ;;  %v1799_v10 = vadd.f32 %v1798_v8, %v5491_v6  ;;  %v4733_v8 = vld [vmem:[%s5199_s11 + $0xa4] sm:$0xf0]  ;;  %2367 = vmatpush.bf16.msrb.mxu3 %v4217_v5  ;;  %v4779_v61 = vld [vmem:[%s5199_s11 + $0x21c] sm:$0xf]  ;;  %v4734_v52 = vld [vmem:[%s5199_s11 + $0xac] sm:$0xf0] }
 0x4f2   : > { %v1776_v13 = vadd.f32 %v1775_v9, %v1610_v58  ;;  %v4739_v58 = vld [vmem:[%s5199_s11 + $0xd4] sm:$0xf0]  ;;  %2352 = vmatpush.bf16.msrb.mxu1 %v4049_v1  ;;  %v4730_v9 = vld [vmem:[%s5199_s11 + $0x94] sm:$0xf]  ;;  %v4221_v1 = vor.u32 %v4782_v63, %v4220_v62  ;;  %v4225_v5 = vor.u32 %v4779_v61, %v4222_v2  ;;  %v4728_v62 = vld [vmem:[%s5199_s11 + $0x7c] sm:$0xf0] }
 0x4f3   : > { %1800 = vadd.xlane.f32.xlu2 %v1799_v10  ;;  %v4045_v60 = vor.u32 %v4739_v58, %v4044_v57  ;;  %v4021_v10 = vor.u32 %v4733_v8, %v4020_v7  ;;  %v4025_v15 = vor.u32 %v4730_v9, %v4022_v11  ;;  %v4715_v57 = vld [vmem:[%s5199_s11 + $0x14] sm:$0xf0]  ;;  %v4712_v58 = vld [vmem:[%s5199_s11 + $0x4] sm:$0xf]  ;;  %v4752_v7 = vld [vmem:[%s5199_s11 + $0x13c] sm:$0xf0] }
 0x4f4   : > { %v1790_v16 = vadd.f32 %v1789_v14, %v1776_v13  ;;  %v4188_v13 = vld [vmem:[%s5199_s11 + $0x1e0] sm:$0xf]  ;;  %v4775_v14 = vld [vmem:[%s5199_s11 + $0x1f4] sm:$0xf0]  ;;  %v3949_v59 = vor.u32 %v4715_v57, %v3948_v56  ;;  %v4749_v8 = vld [vmem:[%s5199_s11 + $0x12c] sm:$0xf] }
 0x4f5   : > { %2324 = vmatpush.bf16.msrb.mxu2 %v4045_v60  ;;  %v3950_v60 = vld [vmem:[%s5199_s11 + $0x18] sm:$0xf0]  ;;  %v4102_v9 = vld [vmem:[%s5199_s11 + $0x140] sm:$0xf0]  ;;  %v4030_v56 = vld [vmem:[%s5199_s11 + $0xb0] sm:$0xf0] }
 0x4f6   : > { %v5497_v12 = vadd.f32 %v4994_v18, %v1790_v16  ;;  %v4189_v16 = vor.u32 %v4775_v14, %v4188_v13  ;;  %v4772_v18 = vld [vmem:[%s5199_s11 + $0x1e4] sm:$0xf]  ;;  %2353 = vmatpush.bf16.msrb.mxu1 %v4025_v15  ;;  %v3953_v0 = vor.u32 %v4712_v58, %v3950_v60  ;;  %v4105_v11 = vor.u32 %v4749_v8, %v4102_v9  ;;  %v4196_v13 = vld [vmem:[%s5199_s11 + $0x1e8] sm:$0xf]  ;;  %v4776_v14 = vld [vmem:[%s5199_s11 + $0x1fc] sm:$0xf0] }
 0x4f7   : > { %v4773_v15 = vld [vmem:[%s5199_s11 + $0x1ec] sm:$0xf]  ;;  %v4004_v60 = vld [vmem:[%s5199_s11 + $0x68] sm:$0xf] }
 0x4f8   : > { %v1802_v20 = vsel %vm725_vm1, %v5497_v12, 0.0  ;;  %2340 = vmatpush.bf16.msrb.mxu0 %v4189_v16  ;;  %v4197_v16 = vor.u32 %v4776_v14, %v4196_v13  ;;  %v4725_v63 = vld [vmem:[%s5199_s11 + $0x6c] sm:$0xf] }
 0x4f9   : > { %v1803_v21 = vadd.f32 %v1802_v20, %v5500_v19  ;;  %2325 = vmatpush.bf16.msrb.mxu2 %v4021_v10  ;;  %v4193_v20 = vor.u32 %v4772_v18, %v4190_v17  ;;  %v4101_v10 = vor.u32 %v4752_v7, %v4100_v3  ;;  %v4198_v18 = vld [vmem:[%s5199_s11 + $0x200] sm:$0xf0]  ;;  %v4076_v17 = vld [vmem:[%s5199_s11 + $0xf8] sm:$0xf]  ;;  %v4722_v7 = vld [vmem:[%s5199_s11 + $0x4c] sm:$0xf0] }
 0x4fb   : > { %1804 = vadd.xlane.f32.xlu1 %v1803_v21  ;;  %v3996_v21 = vld [vmem:[%s5199_s11 + $0x60] sm:$0xf]  ;;  %2368 = vmatpush.bf16.msrb.mxu3 %v4193_v20  ;;  %v4746_v20 = vld [vmem:[%s5199_s11 + $0x10c] sm:$0xf0] }
 0x4fc   : > { %v3997_v25 = vor.u32 %v4727_v22, %v3996_v21  ;;  %v4201_v21 = vor.u32 %v4773_v15, %v4198_v18  ;;  %v4077_v22 = vor.u32 %v4746_v20, %v4076_v17  ;;  %v3956_v15 = vld [vmem:[%s5199_s11 + $0x8] sm:$0xf]  ;;  %v4713_v18 = vld [vmem:[%s5199_s11 + $0xc] sm:$0xf] }
 0x4fe   : > { %2326 = vmatpush.bf16.msrb.mxu2 %v3997_v25  ;;  %v4078_v25 = vld [vmem:[%s5199_s11 + $0x110] sm:$0xf0] }
 0x566   : > { %v1801_v31 = vpop.xlane.xlu2 %1800 }
 0x567   : > { %v1806_v32 = vmul.f32 %v1801_v31, %v5226_v24  ;;  %v4001_v31 = vor.u32 %v4724_v23, %v3998_v26  ;;  %v4743_v23 = vld [vmem:[%s5199_s11 + $0xfc] sm:$0xf] }
 0x568   : > { %v4081_v26 = vor.u32 %v4743_v23, %v4078_v25 }
 0x569   : > { %v5511_v27 = vsub.f32 %v5491_v6, %v1806_v32  ;;  %v5514_v28 = vsub.f32 %v5488_v4, %v1806_v32  ;;  %v4165_v32 = vor.u32 %v4769_v30, %v4164_v29  ;;  %2354 = vmatpush.bf16.msrb.mxu1 %v4001_v31  ;;  %v4172_v30 = vld [vmem:[%s5199_s11 + $0x1b8] sm:$0xf]  ;;  %v4770_v31 = vld [vmem:[%s5199_s11 + $0x1cc] sm:$0xf0] }
 0x56b   : > { %v1812_v33 = vmul.f32 %v5511_v27, %v5511_v27  ;;  %v1813_v34 = vmul.f32 %v5514_v28, %v5514_v28  ;;  %2341 = vmatpush.bf16.msrb.mxu0 %v4165_v32  ;;  %v4767_v32 = vld [vmem:[%s5199_s11 + $0x1bc] sm:$0xf] }
 0x56d   : > { %v1816_v37 = vsel %vm725_vm1, %v1813_v34, 0.0  ;;  %v4166_v34 = vld [vmem:[%s5199_s11 + $0x1c8] sm:$0xf0] }
 0x56e   : > { %v1805_v38 = vpop.xlane.xlu1 %1804  ;;  %v1817_v39 = vadd.f32 %v1816_v37, %v1812_v33  ;;  %v4766_v33 = vld [vmem:[%s5199_s11 + $0x1b4] sm:$0xf] }
 0x56f   : > { %v1807_v40 = vmul.f32 %v1805_v38, %v5226_v24  ;;  %v4169_v37 = vor.u32 %v4766_v33, %v4166_v34  ;;  %v3972_v38 = vld [vmem:[%s5199_s11 + $0x30] sm:$0xf]  ;;  %v4173_v34 = vor.u32 %v4770_v31, %v4172_v30  ;;  %v1796_v30 = vld [vmem:[%s6111_s15] sm:$0x3] }
 0x570   : > { %1818 = vadd.xlane.f32.xlu2 %v1817_v39  ;;  %v4721_v39 = vld [vmem:[%s5199_s11 + $0x44] sm:$0xf0] }
 0x571   : > { %v5523_v41 = vsub.f32 %v5500_v19, %v1807_v40  ;;  %v5526_v42 = vsub.f32 %v5497_v12, %v1807_v40  ;;  %v4718_v40 = vld [vmem:[%s5199_s11 + $0x34] sm:$0xf]  ;;  %2369 = vmatpush.bf16.msrb.mxu3 %v4169_v37 }
 0x572   : > { %v4174_v37 = vld [vmem:[%s5199_s11 + $0x1d0] sm:$0xf0] }
 0x573   : > { %v1814_v43 = vmul.f32 %v5523_v41, %v5523_v41  ;;  %v1815_v35 = vmul.f32 %v5526_v42, %v5526_v42 }
 0x575   : > { %v1820_v36 = vsel %vm725_vm1, %v1815_v35, 0.0  ;;  %v3974_v35 = vld [vmem:[%s5199_s11 + $0x48] sm:$0xf0]  ;;  %2370 = vmatpush.bf16.msrb.mxu3 %v4145_v50  ;;  %v4150_v50 = vld [vmem:[%s5199_s11 + $0x1a0] sm:$0xf0] }
 0x576   : > { %v1821_v44 = vadd.f32 %v1820_v36, %v1814_v43  ;;  %v3973_v43 = vor.u32 %v4721_v39, %v3972_v38  ;;  %v4140_v36 = vld [vmem:[%s5199_s11 + $0x180] sm:$0xf]  ;;  %v3977_v45 = vor.u32 %v4718_v40, %v3974_v35  ;;  %v4052_v38 = vld [vmem:[%s5199_s11 + $0xc8] sm:$0xf]  ;;  %v4177_v40 = vor.u32 %v4767_v32, %v4174_v37  ;;  %v4737_v35 = vld [vmem:[%s5199_s11 + $0xcc] sm:$0xf] }
 0x577   : > { %v4740_v39 = vld [vmem:[%s5199_s11 + $0xdc] sm:$0xf0]  ;;  %v4153_v53 = vor.u32 %v4761_v48, %v4150_v50  ;;  %v1853_v37 = vperm.slane %v1796_v30, 0  ;;  %v4759_v50 = vld [vmem:[%s5199_s11 + $0x174] sm:$0xf0] }
 0x578   : > { %1822 = vadd.xlane.f32.xlu1 %v1821_v44  ;;  %v4763_v44 = vld [vmem:[%s5199_s11 + $0x194] sm:$0xf0]  ;;  %2327 = vmatpush.bf16.msrb.mxu2 %v3973_v43  ;;  %v4053_v43 = vor.u32 %v4740_v39, %v4052_v38  ;;  %v1854_v38 = vperm.slane %v1796_v30, 1  ;;  %v4741_v30 = vld [vmem:[%s5199_s11 + $0xe4] sm:$0xf0] }
 0x579   : > { %v4141_v46 = vor.u32 %v4763_v44, %v4140_v36  ;;  %2355 = vmatpush.bf16.msrb.mxu1 %v3977_v45  ;;  %2405 = vmatpush.bf16.msra.mxu3 %v4129_v55  ;;  %v4054_v36 = vld [vmem:[%s5199_s11 + $0xe0] sm:$0xf0]  ;;  %v4731_v55 = vld [vmem:[%s5199_s11 + $0x9c] sm:$0xf] }
 0x57a   : > { %v4057_v45 = vor.u32 %v4737_v35, %v4054_v36  ;;  %v4033_v58 = vor.u32 %v4731_v55, %v4030_v56 }
 0x57b   : > { %2342 = vmatpush.bf16.msrb.mxu0 %v4141_v46  ;;  %v4148_v46 = vld [vmem:[%s5199_s11 + $0x188] sm:$0xf] }
 0x57c   : > { %2328 = vmatpush.bf16.msrb.mxu2 %v3949_v59  ;;  %v4149_v49 = vor.u32 %v4764_v47, %v4148_v46 }
 0x57d   : > { %2356 = vmatpush.bf16.msrb.mxu1 %v3953_v0  ;;  %2406 = vmatpush.bf16.msra.mxu3 %v4105_v11  ;;  %v4005_v0 = vor.u32 %v4728_v62, %v4004_v60  ;;  %v3982_v11 = vld [vmem:[%s5199_s11 + $0x50] sm:$0xf0] }
 0x57f   : > { %2377 = vmatpush.bf16.msra.mxu0 %v4125_v54  ;;  %v4029_v54 = vor.u32 %v4734_v52, %v4028_v51  ;;  %v4756_v51 = vld [vmem:[%s5199_s11 + $0x164] sm:$0xf]  ;;  %v4134_v52 = vld [vmem:[%s5199_s11 + $0x178] sm:$0xf0] }
 0x580   : > { %2395 = vmatpush.bf16.msra.mxu2 %v4221_v1  ;;  %v4006_v1 = vld [vmem:[%s5199_s11 + $0x80] sm:$0xf0] }
 0x581   : > { %2423 = vmatpush.bf16.msra.mxu1 %v4225_v5  ;;  %2407 = vmatpush.bf16.msra.mxu3 %v4081_v26  ;;  %v4009_v3 = vor.u32 %v4725_v63, %v4006_v1  ;;  %v4137_v63 = vor.u32 %v4756_v51, %v4134_v52  ;;  %v4753_v1 = vld [vmem:[%s5199_s11 + $0x144] sm:$0xf0]  ;;  %v4726_v51 = vld [vmem:[%s5199_s11 + $0x74] sm:$0xf]  ;;  %v4014_v52 = vld [vmem:[%s5199_s11 + $0x88] sm:$0xf0] }
 0x583   : > { %2378 = vmatpush.bf16.msra.mxu0 %v4101_v10  ;;  %v4719_v10 = vld [vmem:[%s5199_s11 + $0x3c] sm:$0xf] }
 0x584   : > { %2396 = vmatpush.bf16.msra.mxu2 %v4197_v16  ;;  %v3985_v13 = vor.u32 %v4719_v10, %v3982_v11  ;;  %v4716_v16 = vld [vmem:[%s5199_s11 + $0x1c] sm:$0xf0] }
 0x585   : > { %2424 = vmatpush.bf16.msra.mxu1 %v4201_v21  ;;  %2408 = vmatpush.bf16.msra.mxu3 %v4057_v45  ;;  %v3957_v20 = vor.u32 %v4716_v16, %v3956_v15  ;;  %v3958_v21 = vld [vmem:[%s5199_s11 + $0x20] sm:$0xf0]  ;;  %v4086_v16 = vld [vmem:[%s5199_s11 + $0x118] sm:$0xf0] }
 0x586   : > { %v3961_v23 = vor.u32 %v4713_v18, %v3958_v21  ;;  %v4744_v15 = vld [vmem:[%s5199_s11 + $0x104] sm:$0xf]  ;;  %v4771_v21 = vld [vmem:[%s5199_s11 + $0x1d4] sm:$0xf0] }
 0x587   : > { %2379 = vmatpush.bf16.msra.mxu0 %v4077_v22 }
 0x588   : > { %2397 = vmatpush.bf16.msra.mxu2 %v4173_v34  ;;  %v1797_v34 = vld [vmem:[%s6113_s25] sm:$0x3] }
 0x589   : > { %2425 = vmatpush.bf16.msra.mxu1 %v4177_v40  ;;  %2409 = vmatpush.bf16.msra.mxu3 %v4033_v58  ;;  %v1862_v35 = vperm.slane %v1797_v34, 0  ;;  %v1863_v36 = vperm.slane %v1797_v34, 1  ;;  %v4783_v58 = vld [vmem:[%s5199_s11 + $0x234] sm:$0xf0] }
 0x58b   : > { %2380 = vmatpush.bf16.msra.mxu0 %v4053_v43 }
 0x58c   : > { %2398 = vmatpush.bf16.msra.mxu2 %v4149_v49 }
 0x58d   : > { %2426 = vmatpush.bf16.msra.mxu1 %v4153_v53  ;;  %2410 = vmatpush.bf16.msra.mxu3 %v4009_v3  ;;  %v4228_v53 = vld [vmem:[%s5199_s11 + $0x220] sm:$0xf] }
 0x58e   : > { %v4229_v3 = vor.u32 %v4783_v58, %v4228_v53  ;;  %v3990_v58 = vld [vmem:[%s5199_s11 + $0x58] sm:$0xf0] }
 0x58f   : > { %2381 = vmatpush.bf16.msra.mxu0 %v4029_v54 }
 0x591   : > { %2411 = vmatpush.bf16.msra.mxu3 %v3985_v13  ;;  %v4084_v13 = vld [vmem:[%s5199_s11 + $0x100] sm:$0xf] }
 0x593   : > { %2382 = vmatpush.bf16.msra.mxu0 %v4005_v0  ;;  %v4108_v0 = vld [vmem:[%s5199_s11 + $0x130] sm:$0xf] }
 0x594   : > { %v4109_v10 = vor.u32 %v4753_v1, %v4108_v0  ;;  %v4714_v0 = vld [vmem:[%s5199_s11 + $0x14] sm:$0xf]  ;;  %v3966_v1 = vld [vmem:[%s5199_s11 + $0x28] sm:$0xf0] }
 0x595   : > { %2412 = vmatpush.bf16.msra.mxu3 %v3961_v23  ;;  %v4182_v23 = vld [vmem:[%s5199_s11 + $0x1d8] sm:$0xf0] }
 0x5e3   : > { %v1819_v29 = vpop.xlane.xlu2 %1818 }
 0x5e4   : > { %v1824_v33 = vmul.f32 %v1819_v29, %v5226_v24 }
 0x5e6   : > { %v1826_v44 = vadd.f32 1e-06, %v1824_v33 }
 0x5e8   : > { %4964 = vrsqrt.f32 %v1826_v44  ;;  %vm1834_vm11 = vweird.f32 %v1826_v44 }
 0x5eb   : > { %v1823_v57 = vpop.xlane.xlu1 %1822 }
 0x5ec   : > { %v1825_v59 = vmul.f32 %v1823_v57, %v5226_v24  ;;  %v3980_v24 = vld [vmem:[%s5199_s11 + $0x38] sm:$0xf] }
 0x5ed   : > { %v3981_v9 = vor.u32 %v4722_v7, %v3980_v24  ;;  %v4204_v24 = vld [vmem:[%s5199_s11 + $0x1f0] sm:$0xf]  ;;  %v4777_v7 = vld [vmem:[%s5199_s11 + $0x204] sm:$0xf0] }
 0x5ee   : > { %v4965_v61 = vpop.eup %4964  ;;  %v1827_v2 = vadd.f32 1e-06, %v1825_v59  ;;  %v4205_v18 = vor.u32 %v4777_v7, %v4204_v24  ;;  %v4426_v7 = vld [vmem:[%s5209_s27 + $0x170] sm:$0xf] }
 0x5ef   : > { %v1829_v5 = vmul.f32 %v4965_v61, %v1826_v44  ;;  %2383 = vmatpush.bf16.msra.mxu0 %v3981_v9  ;;  %vm1835_vm10 = vweird.f32 %v4965_v61  ;;  %v4206_v9 = vld [vmem:[%s5199_s11 + $0x208] sm:$0xf0] }
 0x5f0   : > { %4966 = vrsqrt.f32 %v1827_v2  ;;  %vm1836_vm12 = vmor %vm1834_vm11, %vm1835_vm10  ;;  %vm1844_vm14 = vweird.f32 %v1827_v2 }
 0x5f1   : > { %v1830_v8 = vmul.f32 %v4965_v61, %v1829_v5 }
 0x5f3   : > { %v1831_v14 = vmul.f32 0.5, %v1830_v8  ;;  %2384 = vmatpush.bf16.msra.mxu0 %v3957_v20  ;;  %v4774_v8 = vld [vmem:[%s5199_s11 + $0x1f4] sm:$0xf]  ;;  %v4180_v20 = vld [vmem:[%s5199_s11 + $0x1c0] sm:$0xf] }
 0x5f5   : > { %v1832_v17 = vsub.f32 1.5, %v1831_v14  ;;  %v4747_v14 = vld [vmem:[%s5199_s11 + $0x114] sm:$0xf0] }
 0x5f6   : > { %v4967_v22 = vpop.eup %4966 }
 0x5f7   : > { %v1833_v25 = vmul.f32 %v4965_v61, %v1832_v17  ;;  %v1839_v26 = vmul.f32 %v4967_v22, %v1827_v2  ;;  %vm1845_vm13 = vweird.f32 %v4967_v22  ;;  %v4110_v2 = vld [vmem:[%s5199_s11 + $0x148] sm:$0xf0]  ;;  %v4209_v17 = vor.u32 %v4774_v8, %v4206_v9  ;;  %v4831_v8 = vld [vmem:[%s5209_s27 + $0x174] sm:$0xf0] }
 0x5f8   : > { %vm1846_vm15 = vmor %vm1844_vm14, %vm1845_vm13  ;;  %v4427_v9 = vor.u32 %v4831_v8, %v4426_v7  ;;  %v4821_v8 = vld [vmem:[%s5209_s27 + $0x124] sm:$0xf0] }
 0x5f9   : > { %v1840_v29 = vmul.f32 %v4967_v22, %v1839_v26  ;;  %v1837_v31 = vsel %vm1836_vm12, %v4965_v61, %v1833_v25  ;;  %v4750_v61 = vld [vmem:[%s5199_s11 + $0x134] sm:$0xf]  ;;  %v4085_v25 = vor.u32 %v4747_v14, %v4084_v13  ;;  %v4089_v26 = vor.u32 %v4744_v15, %v4086_v16  ;;  %v4490_v13 = vld [vmem:[%s5209_s27 + $0x1f0] sm:$0xf]  ;;  %v4354_v15 = vld [vmem:[%s5209_s27 + $0xe0] sm:$0xf] }
 0x5fa   : > { %v1848_v39 = vmul.f32 %v1837_v31, %v5511_v27  ;;  %v1849_v40 = vmul.f32 %v1837_v31, %v5514_v28  ;;  %v4132_v28 = vld [vmem:[%s5199_s11 + $0x160] sm:$0xf]  ;;  %v4113_v11 = vor.u32 %v4750_v61, %v4110_v2  ;;  %v4738_v31 = vld [vmem:[%s5199_s11 + $0xd4] sm:$0xf]  ;;  %v3969_v2 = vor.u32 %v4714_v0, %v3966_v1  ;;  %v4458_v0 = vld [vmem:[%s5209_s27 + $0x1b0] sm:$0xf] }
 0x5fb   : > { %v1841_v32 = vmul.f32 0.5, %v1840_v29  ;;  %v4133_v62 = vor.u32 %v4759_v50, %v4132_v28  ;;  %v4060_v29 = vld [vmem:[%s5199_s11 + $0xd0] sm:$0xf]  ;;  %v4729_v50 = vld [vmem:[%s5199_s11 + $0x84] sm:$0xf0] }
 0x5fc   : > { %v1857_v45 = vmul.f32 %v1853_v37, %v1848_v39  ;;  %v1858_v46 = vmul.f32 %v1854_v38, %v1849_v40  ;;  %v4762_v39 = vld [vmem:[%s5199_s11 + $0x194] sm:$0xf]  ;;  %v4158_v40 = vld [vmem:[%s5199_s11 + $0x1a8] sm:$0xf0]  ;;  %v4012_v28 = vld [vmem:[%s5199_s11 + $0x70] sm:$0xf] }
 0x5fd   : > { %v1842_v33 = vsub.f32 1.5, %v1841_v32  ;;  %v4062_v32 = vld [vmem:[%s5199_s11 + $0xe8] sm:$0xf0]  ;;  %v4013_v53 = vor.u32 %v4729_v50, %v4012_v28  ;;  %v4274_v28 = vld [vmem:[%s5209_s27 + $0x40] sm:$0xf] }
 0x5fe   : > { %v1866_v54 = vadd.f32 %v1862_v35, %v1857_v45  ;;  %v1867_v55 = vadd.f32 %v1863_v36, %v1858_v46  ;;  %v4732_v45 = vld [vmem:[%s5199_s11 + $0xa4] sm:$0xf]  ;;  %v4038_v46 = vld [vmem:[%s5199_s11 + $0xb8] sm:$0xf0]  ;;  %v4793_v50 = vld [vmem:[%s5209_s27 + $0x44] sm:$0xf0] }
 0x5ff   : > { %v1843_v43 = vmul.f32 %v4967_v22, %v1842_v33  ;;  %v4181_v33 = vor.u32 %v4771_v21, %v4180_v20  ;;  %v4829_v20 = vld [vmem:[%s5209_s27 + $0x164] sm:$0xf0] }
 0x601   : > { %v1847_v44 = vsel %vm1846_vm15, %v4967_v22, %v1843_v43  ;;  %v4768_v22 = vld [vmem:[%s5199_s11 + $0x1c4] sm:$0xf]  ;;  %v4061_v43 = vor.u32 %v4741_v30, %v4060_v29  ;;  %v4845_v29 = vld [vmem:[%s5209_s27 + $0x1e4] sm:$0xf0] }
 0x602   : > { %v1850_v47 = vmul.f32 %v1847_v44, %v5523_v41  ;;  %v1851_v27 = vmul.f32 %v1847_v44, %v5526_v42  ;;  %v4780_v41 = vld [vmem:[%s5199_s11 + $0x224] sm:$0xf]  ;;  %v4230_v42 = vld [vmem:[%s5199_s11 + $0x238] sm:$0xf0]  ;;  %v4185_v34 = vor.u32 %v4768_v22, %v4182_v23  ;;  %v4735_v44 = vld [vmem:[%s5199_s11 + $0xb4] sm:$0xf0] }
 0x603   : > { %v4233_v5 = vor.u32 %v4780_v41, %v4230_v42  ;;  %v4290_v22 = vld [vmem:[%s5209_s27 + $0x60] sm:$0xf]  ;;  %v4797_v23 = vld [vmem:[%s5209_s27 + $0x64] sm:$0xf0] }
 0x604   : > { %v1859_v48 = vmul.f32 %v1853_v37, %v1850_v47  ;;  %v1860_v49 = vmul.f32 %v1854_v38, %v1851_v27  ;;  %v4156_v37 = vld [vmem:[%s5199_s11 + $0x190] sm:$0xf]  ;;  %v4765_v38 = vld [vmem:[%s5199_s11 + $0x1a4] sm:$0xf0]  ;;  %v4161_v27 = vor.u32 %v4762_v39, %v4158_v40  ;;  %v4795_v40 = vld [vmem:[%s5209_s27 + $0x54] sm:$0xf0] }
 0x605   : > { %v4157_v47 = vor.u32 %v4765_v38, %v4156_v37  ;;  %v4827_v37 = vld [vmem:[%s5209_s27 + $0x154] sm:$0xf0]  ;;  %v4282_v39 = vld [vmem:[%s5209_s27 + $0x50] sm:$0xf] }
 0x606   : > { %v1868_v56 = vadd.f32 %v1862_v35, %v1859_v48  ;;  %v1869_v57 = vadd.f32 %v1863_v36, %v1860_v49  ;;  %v4065_v35 = vor.u32 %v4738_v31, %v4062_v32  ;;  %v4036_v36 = vld [vmem:[%s5199_s11 + $0xa0] sm:$0xf]  ;;  %v4041_v49 = vor.u32 %v4732_v45, %v4038_v46  ;;  %v4346_v31 = vld [vmem:[%s5209_s27 + $0xd0] sm:$0xf]  ;;  %v4811_v32 = vld [vmem:[%s5209_s27 + $0xd4] sm:$0xf0] }
 0x607   : > { %v4037_v48 = vor.u32 %v4735_v44, %v4036_v36  ;;  %v4843_v36 = vld [vmem:[%s5209_s27 + $0x1d4] sm:$0xf0]  ;;  %v4338_v45 = vld [vmem:[%s5209_s27 + $0xc0] sm:$0xf]  ;;  %v4809_v46 = vld [vmem:[%s5209_s27 + $0xc4] sm:$0xf0] }
 0x608   : > { %v5649_v59 = vpack.c.bf16 %v1868_v56, %v1866_v54  ;;  %v5651_v60 = vpack.c.bf16 %v1869_v57, %v1867_v55  ;;  %v4017_v54 = vor.u32 %v4726_v51, %v4014_v52  ;;  %v3988_v55 = vld [vmem:[%s5199_s11 + $0x40] sm:$0xf]  ;;  %v4723_v56 = vld [vmem:[%s5199_s11 + $0x54] sm:$0xf0]  ;;  %v4720_v57 = vld [vmem:[%s5199_s11 + $0x44] sm:$0xf]  ;;  %v4275_v52 = vor.u32 %v4793_v50, %v4274_v28 }
 0x609   : > { %v3989_v41 = vor.u32 %v4723_v56, %v3988_v55  ;;  %v3993_v42 = vor.u32 %v4720_v57, %v3990_v58  ;;  %v4466_v51 = vld [vmem:[%s5209_s27 + $0x1c0] sm:$0xf]  ;;  %v4330_v55 = vld [vmem:[%s5209_s27 + $0xb0] sm:$0xf]  ;;  %v4807_v56 = vld [vmem:[%s5209_s27 + $0xb4] sm:$0xf0] }
 0x60a   : > { %2329 = vmatmul.bf16.vlgmr.msrb.gmra.mxu2 %v5649_v59  ;;  %4234 = vmatmul.msk.bf16.vlgmr.msrb.gmra.mxu0 %vm725_vm1, %v5651_v60  ;;  %v4394_v57 = vld [vmem:[%s5209_s27 + $0x130] sm:$0xf]  ;;  %v4331_v58 = vor.u32 %v4807_v56, %v4330_v55 }
 0x60b   : > { %2357 = vmatmul.bf16.vlgmr.msrb.gmra.mxu1 %v5649_v59  ;;  %4235 = vmatmul.msk.bf16.vlgmr.msrb.gmra.mxu3 %vm725_vm1, %v5651_v60 }
 0x60c   : > { %2433 = vmatpush.bf16.msrb.mxu2 %v4133_v62  ;;  %2461 = vmatpush.bf16.msrb.mxu1 %v4137_v63  ;;  %v3964_v62 = vld [vmem:[%s5199_s11 + $0x10] sm:$0xf]  ;;  %v4717_v63 = vld [vmem:[%s5199_s11 + $0x24] sm:$0xf0] }
 0x60d   : > { %2451 = vmatpush.bf16.msrb.mxu0 %v4229_v3  ;;  %2479 = vmatpush.bf16.msrb.mxu3 %v4233_v5  ;;  %v3965_v61 = vor.u32 %v4717_v63, %v3964_v62  ;;  %v4362_v3 = vld [vmem:[%s5209_s27 + $0xf0] sm:$0xf]  ;;  %v4815_v5 = vld [vmem:[%s5209_s27 + $0xf4] sm:$0xf0] }
 0x60e   : > { %v4363_v24 = vor.u32 %v4815_v5, %v4362_v3  ;;  %v4266_v62 = vld [vmem:[%s5209_s27 + $0x30] sm:$0xf]  ;;  %v4791_v63 = vld [vmem:[%s5209_s27 + $0x34] sm:$0xf0]  ;;  %v4322_v3 = vld [vmem:[%s5209_s27 + $0xa0] sm:$0xf] }
 0x60f   : > { %v4267_v1 = vor.u32 %v4791_v63, %v4266_v62  ;;  %v4805_v5 = vld [vmem:[%s5209_s27 + $0xa4] sm:$0xf0]  ;;  %v4796_v63 = vld [vmem:[%s5209_s27 + $0x64] sm:$0xf] }
 0x610   : > { %2434 = vmatpush.bf16.msrb.mxu2 %v4109_v10  ;;  %2462 = vmatpush.bf16.msrb.mxu1 %v4113_v11  ;;  %v4298_v10 = vld [vmem:[%s5209_s27 + $0x70] sm:$0xf]  ;;  %v4799_v11 = vld [vmem:[%s5209_s27 + $0x74] sm:$0xf0]  ;;  %v4323_v7 = vor.u32 %v4805_v5, %v4322_v3  ;;  %v4877_v62 = vld [vmem:[%s5209_s27 + $0x2e4] sm:$0xf0] }
 0x611   : > { %2452 = vmatpush.bf16.msrb.mxu0 %v4205_v18  ;;  %2480 = vmatpush.bf16.msrb.mxu3 %v4209_v17  ;;  %v4299_v14 = vor.u32 %v4799_v11, %v4298_v10  ;;  %v4418_v17 = vld [vmem:[%s5209_s27 + $0x160] sm:$0xf]  ;;  %v4789_v11 = vld [vmem:[%s5209_s27 + $0x24] sm:$0xf0]  ;;  %v4812_v5 = vld [vmem:[%s5209_s27 + $0xe4] sm:$0xf] }
 0x612   : > { %v4419_v21 = vor.u32 %v4829_v20, %v4418_v17  ;;  %v4258_v10 = vld [vmem:[%s5209_s27 + $0x20] sm:$0xf]  ;;  %v4819_v20 = vld [vmem:[%s5209_s27 + $0x114] sm:$0xf0]  ;;  %v4861_v3 = vld [vmem:[%s5209_s27 + $0x264] sm:$0xf0] }
 0x614   : > { %2435 = vmatpush.bf16.msrb.mxu2 %v4085_v25  ;;  %2463 = vmatpush.bf16.msrb.mxu1 %v4089_v26  ;;  %v4482_v25 = vld [vmem:[%s5209_s27 + $0x1e0] sm:$0xf]  ;;  %v4291_v26 = vor.u32 %v4797_v23, %v4290_v22  ;;  %v4250_v22 = vld [vmem:[%s5209_s27 + $0x10] sm:$0xf]  ;;  %v4787_v23 = vld [vmem:[%s5209_s27 + $0x14] sm:$0xf0] }
 0x615   : > { %2453 = vmatpush.bf16.msrb.mxu0 %v4181_v33  ;;  %2481 = vmatpush.bf16.msrb.mxu3 %v4185_v34  ;;  %v4483_v30 = vor.u32 %v4845_v29, %v4482_v25  ;;  %v4410_v33 = vld [vmem:[%s5209_s27 + $0x150] sm:$0xf]  ;;  %v4347_v34 = vor.u32 %v4811_v32, %v4346_v31  ;;  %v4835_v29 = vld [vmem:[%s5209_s27 + $0x194] sm:$0xf0]  ;;  %v4306_v32 = vld [vmem:[%s5209_s27 + $0x80] sm:$0xf] }
 0x616   : > { %v4411_v38 = vor.u32 %v4827_v37, %v4410_v33  ;;  %v4442_v25 = vld [vmem:[%s5209_s27 + $0x190] sm:$0xf]  ;;  %v4801_v33 = vld [vmem:[%s5209_s27 + $0x84] sm:$0xf0] }
 0x617   : > { %v4443_v31 = vor.u32 %v4835_v29, %v4442_v25  ;;  %v4307_v37 = vor.u32 %v4801_v33, %v4306_v32  ;;  %v4810_v25 = vld [vmem:[%s5209_s27 + $0xd4] sm:$0xf]  ;;  %v4594_v33 = vld [vmem:[%s5209_s27 + $0x2c0] sm:$0xf] }
 0x618   : > { %2436 = vmatpush.bf16.msrb.mxu2 %v4061_v43  ;;  %2464 = vmatpush.bf16.msrb.mxu1 %v4065_v35  ;;  %v4474_v43 = vld [vmem:[%s5209_s27 + $0x1d0] sm:$0xf]  ;;  %v4283_v35 = vor.u32 %v4795_v40, %v4282_v39  ;;  %v4879_v40 = vld [vmem:[%s5209_s27 + $0x2f4] sm:$0xf0] }
 0x619   : > { %2454 = vmatpush.bf16.msrb.mxu0 %v4157_v47  ;;  %2482 = vmatpush.bf16.msrb.mxu3 %v4161_v27  ;;  %v4475_v44 = vor.u32 %v4843_v36, %v4474_v43  ;;  %v4402_v47 = vld [vmem:[%s5209_s27 + $0x140] sm:$0xf]  ;;  %v4339_v27 = vor.u32 %v4809_v46, %v4338_v45  ;;  %v4618_v39 = vld [vmem:[%s5209_s27 + $0x2f0] sm:$0xf]  ;;  %v4798_v36 = vld [vmem:[%s5209_s27 + $0x74] sm:$0xf] }
 0x61a   : > { %2385 = vmatmul.bf16.vlgmr.msra.gmra.mxu0 %v5649_v59  ;;  %4236 = vmatmul.msk.bf16.vlgmr.msra.gmra.mxu2 %vm725_vm1, %v5651_v60  ;;  %v4242_v45 = vld [vmem:[%s5209_s27] sm:$0xf] }
 0x61b   : > { %2413 = vmatmul.bf16.vlgmr.msra.gmra.mxu3 %v5649_v59  ;;  %4237 = vmatmul.msk.bf16.vlgmr.msra.gmra.mxu1 %vm725_vm1, %v5651_v60 }
 0x61c   : > { %2437 = vmatpush.bf16.msrb.mxu2 %v4037_v48  ;;  %2465 = vmatpush.bf16.msrb.mxu1 %v4041_v49  ;;  %v4825_v48 = vld [vmem:[%s5209_s27 + $0x144] sm:$0xf0] }
 0x61d   : > { %3213 = vmatpush.bf16.msra.mxu3 %v4427_v9  ;;  %3185 = vmatpush.bf16.msra.mxu0 %v4299_v14  ;;  %v4403_v49 = vor.u32 %v4825_v48, %v4402_v47  ;;  %v4259_v14 = vor.u32 %v4789_v11, %v4258_v10  ;;  %v4785_v47 = vld [vmem:[%s5209_s27 + $0x4] sm:$0xf0]  ;;  %v4875_v10 = vld [vmem:[%s5209_s27 + $0x2d4] sm:$0xf0]  ;;  %v4794_v11 = vld [vmem:[%s5209_s27 + $0x54] sm:$0xf] }
 0x61e   : > { %v4833_v48 = vld [vmem:[%s5209_s27 + $0x184] sm:$0xf0]  ;;  %v4243_v28 = vor.u32 %v4785_v47, %v4242_v45  ;;  %v4808_v45 = vld [vmem:[%s5209_s27 + $0xc4] sm:$0xf] }
 0x620   : > { %2438 = vmatpush.bf16.msrb.mxu2 %v4013_v53  ;;  %2466 = vmatpush.bf16.msrb.mxu1 %v4017_v54  ;;  %v4841_v53 = vld [vmem:[%s5209_s27 + $0x1c4] sm:$0xf0] }
 0x621   : > { %3214 = vmatpush.bf16.msra.mxu3 %v4419_v21  ;;  %3186 = vmatpush.bf16.msra.mxu0 %v4291_v26  ;;  %v4467_v54 = vor.u32 %v4841_v53, %v4466_v51  ;;  %v4251_v26 = vor.u32 %v4787_v23, %v4250_v22  ;;  %v4554_v51 = vld [vmem:[%s5209_s27 + $0x270] sm:$0xf]  ;;  %v4814_v53 = vld [vmem:[%s5209_s27 + $0xf4] sm:$0xf] }
 0x624   : > { %2439 = vmatpush.bf16.msrb.mxu2 %v3989_v41  ;;  %2467 = vmatpush.bf16.msrb.mxu1 %v3993_v42  ;;  %v4823_v41 = vld [vmem:[%s5209_s27 + $0x134] sm:$0xf0] }
 0x625   : > { %3215 = vmatpush.bf16.msra.mxu3 %v4411_v38  ;;  %3187 = vmatpush.bf16.msra.mxu0 %v4283_v35  ;;  %v4395_v42 = vor.u32 %v4823_v41, %v4394_v57  ;;  %v4817_v38 = vld [vmem:[%s5209_s27 + $0x104] sm:$0xf0]  ;;  %v4619_v35 = vor.u32 %v4879_v40, %v4618_v39  ;;  %v4610_v41 = vld [vmem:[%s5209_s27 + $0x2e0] sm:$0xf]  ;;  %v4276_v40 = vld [vmem:[%s5209_s27 + $0x48] sm:$0xf0] }
 0x628   : > { %2440 = vmatpush.bf16.msrb.mxu2 %v3965_v61  ;;  %2468 = vmatpush.bf16.msrb.mxu1 %v3969_v2  ;;  %v4839_v61 = vld [vmem:[%s5209_s27 + $0x1b4] sm:$0xf0] }
 0x629   : > { %3216 = vmatpush.bf16.msra.mxu3 %v4403_v49  ;;  %3188 = vmatpush.bf16.msra.mxu0 %v4275_v52  ;;  %v4459_v2 = vor.u32 %v4839_v61, %v4458_v0  ;;  %v4863_v52 = vld [vmem:[%s5209_s27 + $0x274] sm:$0xf0]  ;;  %v4292_v0 = vld [vmem:[%s5209_s27 + $0x68] sm:$0xf0] }
 0x62a   : > { %4238 = vmatmul.msk.bf16.vlgmr.msrb.gmra.mxu0 %vm725_vm1, %v5651_v60  ;;  %v4555_v57 = vor.u32 %v4863_v52, %v4554_v51  ;;  %v4295_v61 = vor.u32 %v4796_v63, %v4292_v0  ;;  %v4790_v51 = vld [vmem:[%s5209_s27 + $0x34] sm:$0xf]  ;;  %v4522_v0 = vld [vmem:[%s5209_s27 + $0x230] sm:$0xf] }
 0x62b   : > { %2441 = vmatmul.bf16.vlgmr.msrb.gmra.mxu2 %v5649_v59  ;;  %2469 = vmatmul.bf16.vlgmr.msrb.gmra.mxu1 %v5649_v59  ;;  %v4847_v59 = vld [vmem:[%s5209_s27 + $0x1f4] sm:$0xf0] }
 0x62c   : > { %4239 = vmatmul.msk.bf16.vlgmr.msrb.gmra.mxu3 %vm725_vm1, %v5651_v60  ;;  %3199 = vmatpush.bf16.msra.mxu2 %v4363_v24  ;;  %v4813_v60 = vld [vmem:[%s5209_s27 + $0xe4] sm:$0xf0]  ;;  %v4491_v16 = vor.u32 %v4847_v59, %v4490_v13  ;;  %v4386_v24 = vld [vmem:[%s5209_s27 + $0x120] sm:$0xf] }
 0x62d   : > { %v4355_v18 = vor.u32 %v4813_v60, %v4354_v15  ;;  %3217 = vmatpush.bf16.msra.mxu3 %v4395_v42  ;;  %3189 = vmatpush.bf16.msra.mxu0 %v4267_v1  ;;  %v4387_v9 = vor.u32 %v4821_v8, %v4386_v24  ;;  %v4450_v13 = vld [vmem:[%s5209_s27 + $0x1a0] sm:$0xf]  ;;  %v4837_v59 = vld [vmem:[%s5209_s27 + $0x1a4] sm:$0xf0]  ;;  %v4314_v60 = vld [vmem:[%s5209_s27 + $0x90] sm:$0xf]  ;;  %v4611_v1 = vor.u32 %v4877_v62, %v4610_v41 }
 0x62e   : > { %3227 = vmatpush.bf16.msra.mxu1 %v4491_v16  ;;  %v4451_v15 = vor.u32 %v4837_v59, %v4450_v13  ;;  %v4803_v16 = vld [vmem:[%s5209_s27 + $0x94] sm:$0xf0] }
 0x62f   : > { %v4315_v17 = vor.u32 %v4803_v16, %v4314_v60 }
 0x630   : > { %3200 = vmatpush.bf16.msra.mxu2 %v4355_v18  ;;  %v4378_v18 = vld [vmem:[%s5209_s27 + $0x110] sm:$0xf] }
 0x631   : > { %3218 = vmatpush.bf16.msra.mxu3 %v4387_v9  ;;  %3190 = vmatpush.bf16.msra.mxu0 %v4259_v14  ;;  %v4379_v21 = vor.u32 %v4819_v20, %v4378_v18  ;;  %v4602_v9 = vld [vmem:[%s5209_s27 + $0x2d0] sm:$0xf]  ;;  %v4859_v20 = vld [vmem:[%s5209_s27 + $0x254] sm:$0xf0] }
 0x632   : > { %3228 = vmatpush.bf16.msra.mxu1 %v4483_v30  ;;  %v5768_v30 = vld [vmem:[%s5204_s4] sm:$0x3f]  ;;  %v4603_v59 = vor.u32 %v4875_v10, %v4602_v9 }
 0x633   : > { %v1946_v56 = vperm.slane %v5768_v30, 0  ;;  %v4578_v10 = vld [vmem:[%s5209_s27 + $0x2a0] sm:$0xf] }
 0x634   : > { %3201 = vmatpush.bf16.msra.mxu2 %v4347_v34  ;;  %v4370_v34 = vld [vmem:[%s5209_s27 + $0x100] sm:$0xf] }
 0x635   : > { %3219 = vmatpush.bf16.msra.mxu3 %v4379_v21  ;;  %3191 = vmatpush.bf16.msra.mxu0 %v4251_v26  ;;  %v4371_v43 = vor.u32 %v4817_v38, %v4370_v34  ;;  %v4348_v26 = vld [vmem:[%s5209_s27 + $0xd8] sm:$0xf0]  ;;  %v4873_v34 = vld [vmem:[%s5209_s27 + $0x2c4] sm:$0xf0] }
 0x636   : > { %3229 = vmatpush.bf16.msra.mxu1 %v4475_v44  ;;  %v4300_v44 = vld [vmem:[%s5209_s27 + $0x78] sm:$0xf0]  ;;  %v4351_v32 = vor.u32 %v4810_v25, %v4348_v26  ;;  %v4595_v39 = vor.u32 %v4873_v34, %v4594_v33  ;;  %v4324_v33 = vld [vmem:[%s5209_s27 + $0xa8] sm:$0xf0] }
 0x637   : > { %v4303_v46 = vor.u32 %v4798_v36, %v4300_v44  ;;  %v4530_v36 = vld [vmem:[%s5209_s27 + $0x240] sm:$0xf]  ;;  %v4857_v44 = vld [vmem:[%s5209_s27 + $0x244] sm:$0xf0] }
 0x638   : > { %3202 = vmatpush.bf16.msra.mxu2 %v4339_v27  ;;  %v4434_v27 = vld [vmem:[%s5209_s27 + $0x180] sm:$0xf]  ;;  %v4531_v47 = vor.u32 %v4857_v44, %v4530_v36 }
 0x639   : > { %3220 = vmatpush.bf16.msra.mxu3 %v4371_v43  ;;  %v4435_v50 = vor.u32 %v4833_v48, %v4434_v27  ;;  %3192 = vmatpush.bf16.msra.mxu0 %v4243_v28  ;;  %v4340_v27 = vld [vmem:[%s5209_s27 + $0xc8] sm:$0xf0]  ;;  %v4586_v28 = vld [vmem:[%s5209_s27 + $0x2b0] sm:$0xf] }
 0x63a   : > { %3230 = vmatpush.bf16.msra.mxu1 %v4467_v54  ;;  %v1947_v54 = vperm.slane %v5768_v30, 1 }
 0x63c   : > { %3203 = vmatpush.bf16.msra.mxu2 %v4331_v58  ;;  %v4364_v58 = vld [vmem:[%s5209_s27 + $0xf8] sm:$0xf0] }
 0x63d   : > { %3269 = vmatpush.bf16.msrb.mxu3 %v4303_v46  ;;  %v4367_v42 = vor.u32 %v4814_v53, %v4364_v58  ;;  %3241 = vmatpush.bf16.msrb.mxu0 %v4555_v57  ;;  %v4268_v58 = vld [vmem:[%s5209_s27 + $0x38] sm:$0xf0] }
 0x63e   : > { %3231 = vmatpush.bf16.msra.mxu1 %v4459_v2  ;;  %v4546_v2 = vld [vmem:[%s5209_s27 + $0x260] sm:$0xf]  ;;  %v4271_v63 = vor.u32 %v4790_v51, %v4268_v58 }
 0x63f   : > { %v4547_v24 = vor.u32 %v4861_v3, %v4546_v2  ;;  %v1948_v2 = vperm.slane %v5768_v30, 2 }
 0x640   : > { %3204 = vmatpush.bf16.msra.mxu2 %v4323_v7  ;;  %v4356_v7 = vld [vmem:[%s5209_s27 + $0xe8] sm:$0xf0] }
 0x641   : > { %3270 = vmatpush.bf16.msrb.mxu3 %v4295_v61  ;;  %v4359_v8 = vor.u32 %v4812_v5, %v4356_v7  ;;  %3242 = vmatpush.bf16.msrb.mxu0 %v4547_v24  ;;  %v4806_v24 = vld [vmem:[%s5209_s27 + $0xb4] sm:$0xf] }
 0x642   : > { %3232 = vmatpush.bf16.msra.mxu1 %v4451_v15  ;;  %v4284_v15 = vld [vmem:[%s5209_s27 + $0x58] sm:$0xf0] }
 0x643   : > { %v4287_v18 = vor.u32 %v4794_v11, %v4284_v15  ;;  %v4869_v11 = vld [vmem:[%s5209_s27 + $0x2a4] sm:$0xf0] }
 0x644   : > { %3205 = vmatpush.bf16.msra.mxu2 %v4315_v17  ;;  %v4538_v17 = vld [vmem:[%s5209_s27 + $0x250] sm:$0xf] }
 0x645   : > { %v4539_v23 = vor.u32 %v4859_v20, %v4538_v17  ;;  %3271 = vmatpush.bf16.msrb.mxu3 %v4287_v18  ;;  %v1949_v17 = vperm.slane %v5768_v30, 3 }
 0x646   : > { %3233 = vmatpush.bf16.msra.mxu1 %v4443_v31 }
 0x647   : > { %3243 = vmatpush.bf16.msrb.mxu0 %v4539_v23  ;;  %v4853_v23 = vld [vmem:[%s5209_s27 + $0x224] sm:$0xf0] }
 0x648   : > { %3206 = vmatpush.bf16.msra.mxu2 %v4307_v37  ;;  %v4792_v37 = vld [vmem:[%s5209_s27 + $0x44] sm:$0xf] }
 0x64a   : > { %3234 = vmatpush.bf16.msra.mxu1 %v4435_v50  ;;  %v4871_v50 = vld [vmem:[%s5209_s27 + $0x2b4] sm:$0xf0] }
 0x64b   : > { %v4587_v57 = vor.u32 %v4871_v50, %v4586_v28  ;;  %3244 = vmatpush.bf16.msrb.mxu0 %v4531_v47  ;;  %v4851_v28 = vld [vmem:[%s5209_s27 + $0x214] sm:$0xf0] }
 0x64c   : > { %3255 = vmatpush.bf16.msrb.mxu2 %v4619_v35  ;;  %v4279_v35 = vor.u32 %v4792_v37, %v4276_v40  ;;  %v4867_v40 = vld [vmem:[%s5209_s27 + $0x294] sm:$0xf0] }
 0x64e   : > { %3283 = vmatpush.bf16.msrb.mxu1 %v4367_v42  ;;  %3272 = vmatpush.bf16.msrb.mxu3 %v4279_v35 }
 0x650   : > { %3256 = vmatpush.bf16.msrb.mxu2 %v4611_v1  ;;  %v4855_v1 = vld [vmem:[%s5209_s27 + $0x234] sm:$0xf0] }
 0x651   : > { %v4523_v5 = vor.u32 %v4855_v1, %v4522_v0 }
 0x652   : > { %3284 = vmatpush.bf16.msrb.mxu1 %v4359_v8  ;;  %3273 = vmatpush.bf16.msrb.mxu3 %v4271_v63  ;;  %v4784_v63 = vld [vmem:[%s5209_s27 + $0x4] sm:$0xf] }
 0x653   : > { %3245 = vmatpush.bf16.msrb.mxu0 %v4523_v5 }
 0x654   : > { %3257 = vmatpush.bf16.msrb.mxu2 %v4603_v59 }
 0x656   : > { %3285 = vmatpush.bf16.msrb.mxu1 %v4351_v32  ;;  %v4804_v32 = vld [vmem:[%s5209_s27 + $0xa4] sm:$0xf] }
 0x658   : > { %3258 = vmatpush.bf16.msrb.mxu2 %v4595_v39  ;;  %v4570_v39 = vld [vmem:[%s5209_s27 + $0x290] sm:$0xf] }
 0x659   : > { %v4571_v44 = vor.u32 %v4867_v40, %v4570_v39 }
 0x65c   : > { %3259 = vmatpush.bf16.msrb.mxu2 %v4587_v57 }
 0x687   : > { %v2344_v49 = vpop.f32.mrf.mxu0 }
 0x688   : > { %v2358_v55 = vpop.f32.mrf.mxu1 }
 0x689   : > { %v2359_v13 = vadd.f32 %v2358_v55, %v1947_v54 }
 0x68d   : > { %v2330_v14 = vpop.f32.mrf.mxu2 }
 0x68e   : > { %v2331_v60 = vadd.f32 %v2330_v14, %v1946_v56  ;;  %v2372_v16 = vpop.f32.mrf.mxu3 }
 0x68f   : > { %v5806_v21 = vadd.f32 %v2372_v16, %v2359_v13  ;;  %v2346_v22 = vpop.f32.mrf.mxu0  ;;  %v4788_v13 = vld [vmem:[%s5209_s27 + $0x24] sm:$0xf]  ;;  %v4260_v16 = vld [vmem:[%s5209_s27 + $0x28] sm:$0xf0] }
 0x690   : > { %v5810_v29 = vadd.f32 %v2344_v49, %v2331_v60  ;;  %v2360_v31 = vpop.f32.mrf.mxu1  ;;  %v4343_v49 = vor.u32 %v4808_v45, %v4340_v27  ;;  %v4579_v60 = vor.u32 %v4869_v11, %v4578_v10  ;;  %v4263_v20 = vor.u32 %v4788_v13, %v4260_v16  ;;  %v4252_v45 = vld [vmem:[%s5209_s27 + $0x18] sm:$0xf0] }
 0x691   : > { %v2490_v38 = vmul.f32 %v5806_v21, %v5806_v21  ;;  %v2361_v53 = vadd.f32 %v2360_v31, %v1947_v54 }
 0x692   : > { %v2489_v43 = vmul.f32 %v5810_v29, %v5810_v29  ;;  %3286 = vmatpush.bf16.msrb.mxu1 %v4343_v49  ;;  %3260 = vmatpush.bf16.msrb.mxu2 %v4579_v60  ;;  %v4506_v49 = vld [vmem:[%s5209_s27 + $0x210] sm:$0xf] }
 0x693   : > { %v2502_v46 = vmul.f32 %v2490_v38, %v5806_v21  ;;  %3274 = vmatpush.bf16.msrb.mxu3 %v4263_v20  ;;  %v4327_v38 = vor.u32 %v4804_v32, %v4324_v33  ;;  %v4800_v20 = vld [vmem:[%s5209_s27 + $0x84] sm:$0xf]  ;;  %v4308_v32 = vld [vmem:[%s5209_s27 + $0x88] sm:$0xf0] }
 0x694   : > { %v2501_v48 = vmul.f32 %v2489_v43, %v5810_v29  ;;  %v4786_v43 = vld [vmem:[%s5209_s27 + $0x14] sm:$0xf] }
 0x695   : > { %v2514_v52 = vmul.f32 0.044715, %v2502_v46  ;;  %v2332_v55 = vpop.f32.mrf.mxu2 }
 0x696   : > { %v2513_v41 = vmul.f32 0.044715, %v2501_v48  ;;  %v2333_v42 = vadd.f32 %v2332_v55, %v1946_v56  ;;  %v2374_v62 = vpop.f32.mrf.mxu3  ;;  %v4332_v56 = vld [vmem:[%s5209_s27 + $0xb8] sm:$0xf0]  ;;  %v4255_v48 = vor.u32 %v4786_v43, %v4252_v45  ;;  %3261 = vmatpush.bf16.msrb.mxu2 %v4571_v44 }
 0x697   : > { %v2526_v61 = vadd.f32 %v2514_v52, %v5806_v21  ;;  %v5837_v54 = vadd.f32 %v2374_v62, %v2361_v53  ;;  %v2386_v3 = vpop.f32.mrf.mxu0  ;;  %v4335_v15 = vor.u32 %v4806_v24, %v4332_v56  ;;  %v4507_v52 = vor.u32 %v4851_v28, %v4506_v49  ;;  %v4802_v53 = vld [vmem:[%s5209_s27 + $0x94] sm:$0xf]  ;;  %v4316_v55 = vld [vmem:[%s5209_s27 + $0x98] sm:$0xf0]  ;;  %v4865_v62 = vld [vmem:[%s5209_s27 + $0x284] sm:$0xf0] }
 0x698   : > { %v2525_v7 = vadd.f32 %v2513_v41, %v5810_v29  ;;  %v5843_v8 = vadd.f32 %v2346_v22, %v2333_v42  ;;  %v2428_v9 = vpop.f32.mrf.mxu1  ;;  %v4514_v22 = vld [vmem:[%s5209_s27 + $0x220] sm:$0xf]  ;;  %v2387_v37 = vadd.f32 %v2386_v3, %v1948_v2  ;;  %3275 = vmatpush.bf16.msrb.mxu3 %v4255_v48  ;;  %v4319_v3 = vor.u32 %v4802_v53, %v4316_v55  ;;  %v4244_v24 = vld [vmem:[%s5209_s27 + $0x8] sm:$0xf0]  ;;  %v4846_v48 = vld [vmem:[%s5209_s27 + $0x1f4] sm:$0xf] }
 0x699   : > { %v2538_v14 = vmul.f32 0.7978846, %v2526_v61  ;;  %v2496_v59 = vmul.f32 %v5837_v54, %v5837_v54  ;;  %3287 = vmatpush.bf16.msrb.mxu1 %v4335_v15  ;;  %v4515_v31 = vor.u32 %v4853_v23, %v4514_v22  ;;  %v4562_v42 = vld [vmem:[%s5209_s27 + $0x280] sm:$0xf]  ;;  %v4247_v10 = vor.u32 %v4784_v63, %v4244_v24  ;;  %v4492_v49 = vld [vmem:[%s5209_s27 + $0x1f8] sm:$0xf0] }
 0x69a   : > { %v2495_v18 = vmul.f32 %v5843_v8, %v5843_v8  ;;  %v2537_v25 = vmul.f32 0.7978846, %v2525_v7  ;;  %v4563_v5 = vor.u32 %v4865_v62, %v4562_v42  ;;  %v4495_v42 = vor.u32 %v4846_v48, %v4492_v49  ;;  %v4830_v24 = vld [vmem:[%s5209_s27 + $0x174] sm:$0xf] }
 0x69b   : > { %v2508_v26 = vmul.f32 %v2496_v59, %v5837_v54  ;;  %4968 = vtanh.f32 %v2538_v14  ;;  %3246 = vmatpush.bf16.msrb.mxu0 %v4515_v31  ;;  %v4498_v59 = vld [vmem:[%s5209_s27 + $0x200] sm:$0xf] }
 0x69c   : > { %v2507_v34 = vmul.f32 %v2495_v18, %v5843_v8  ;;  %4970 = vtanh.f32 %v2537_v25  ;;  %3262 = vmatpush.bf16.msrb.mxu2 %v4563_v5  ;;  %3276 = vmatpush.bf16.msrb.mxu3 %v4247_v10  ;;  %v4849_v18 = vld [vmem:[%s5209_s27 + $0x204] sm:$0xf0] }
 0x69d   : > { %v2520_v35 = vmul.f32 0.044715, %v2508_v26  ;;  %v2400_v36 = vpop.f32.mrf.mxu2  ;;  %3288 = vmatpush.bf16.msrb.mxu1 %v4327_v38  ;;  %v4499_v31 = vor.u32 %v4849_v18, %v4498_v59  ;;  %v4844_v59 = vld [vmem:[%s5209_s27 + $0x1e4] sm:$0xf] }
 0x69e   : > { %v2519_v46 = vmul.f32 0.044715, %v2507_v34  ;;  %v5866_v47 = vadd.f32 %v2400_v36, %v2387_v37  ;;  %v2414_v27 = vpop.f32.mrf.mxu3  ;;  %v4311_v34 = vor.u32 %v4800_v20, %v4308_v32  ;;  %v1951_v36 = vperm.slane %v5768_v30, 5 }
 0x69f   : > { %v2532_v50 = vadd.f32 %v2520_v35, %v5837_v54  ;;  %v2415_v51 = vadd.f32 %v2414_v27, %v1949_v17  ;;  %v2388_v61 = vpop.f32.mrf.mxu0  ;;  %3247 = vmatpush.bf16.msrb.mxu0 %v4507_v52 }
 0x6a0   : > { %v2531_v57 = vadd.f32 %v2519_v46, %v5843_v8  ;;  %v2491_v58 = vmul.f32 %v5866_v47, %v5866_v47  ;;  %v2430_v41 = vpop.f32.mrf.mxu1  ;;  %v2389_v14 = vadd.f32 %v2388_v61, %v1948_v2 }
 0x6a1   : > { %v2544_v0 = vmul.f32 0.7978846, %v2532_v50  ;;  %v5881_v1 = vadd.f32 %v2428_v9, %v2415_v51  ;;  %v4969_v11 = vpop.eup %4968  ;;  %3289 = vmatpush.bf16.msrb.mxu1 %v4319_v3  ;;  %v1950_v51 = vperm.slane %v5768_v30, 4  ;;  %v4468_v30 = vld [vmem:[%s5209_s27 + $0x1c8] sm:$0xf0] }
 0x6a2   : > { %v2543_v56 = vmul.f32 0.7978846, %v2531_v57  ;;  %v2503_v7 = vmul.f32 %v2491_v58, %v5866_v47  ;;  %v4971_v15 = vpop.eup %4970  ;;  %v2562_v22 = vadd.f32 1.0, %v4969_v11 }
 0x6a3   : > { %4972 = vtanh.f32 %v2544_v0  ;;  %v2492_v13 = vmul.f32 %v5881_v1, %v5881_v1  ;;  %v2561_v39 = vadd.f32 1.0, %v4971_v15  ;;  %3248 = vmatpush.bf16.msrb.mxu0 %v4499_v31  ;;  %v4484_v15 = vld [vmem:[%s5209_s27 + $0x1e8] sm:$0xf0] }
 0x6a4   : > { %4974 = vtanh.f32 %v2543_v56  ;;  %v2515_v9 = vmul.f32 0.044715, %v2503_v7  ;;  %v4428_v56 = vld [vmem:[%s5209_s27 + $0x178] sm:$0xf0] }
 0x6a5   : > { %v2504_v60 = vmul.f32 %v2492_v13, %v5881_v1  ;;  %v2402_v16 = vpop.f32.mrf.mxu2  ;;  %3290 = vmatpush.bf16.msrb.mxu1 %v4311_v34  ;;  %v2573_v57 = vmul.f32 0.5, %v2561_v39  ;;  %v4431_v18 = vor.u32 %v4830_v24, %v4428_v56  ;;  %v4842_v34 = vld [vmem:[%s5209_s27 + $0x1d4] sm:$0xf]  ;;  %v4404_v24 = vld [vmem:[%s5209_s27 + $0x148] sm:$0xf0] }
 0x6a6   : > { %v2527_v23 = vadd.f32 %v2515_v9, %v5866_v47  ;;  %v5894_v25 = vadd.f32 %v2402_v16, %v2389_v14  ;;  %v2416_v26 = vpop.f32.mrf.mxu3 }
 0x6a7   : > { %v2516_v33 = vmul.f32 0.044715, %v2504_v60  ;;  %v2417_v2 = vadd.f32 %v2416_v26, %v1949_v17  ;;  %v2574_v17 = vmul.f32 0.5, %v2562_v22  ;;  %v2456_v61 = vpop.f32.mrf.mxu0  ;;  %v2585_v14 = vmul.f32 %v2573_v57, %v5810_v29  ;;  %v4420_v29 = vld [vmem:[%s5209_s27 + $0x168] sm:$0xf0] }
 0x6a8   : > { %v2539_v37 = vmul.f32 0.7978846, %v2527_v23  ;;  %v2497_v38 = vmul.f32 %v5894_v25, %v5894_v25  ;;  %v2470_v44 = vpop.f32.mrf.mxu1  ;;  %v4828_v23 = vld [vmem:[%s5209_s27 + $0x164] sm:$0xf] }
 0x6a9   : > { %v4973_v40 = vpop.eup %4972  ;;  %v2528_v43 = vadd.f32 %v2516_v33, %v5881_v1  ;;  %v5902_v35 = vadd.f32 %v2430_v41, %v2417_v2  ;;  %v2586_v62 = vmul.f32 %v2574_v17, %v5806_v21  ;;  %v2471_v3 = vadd.f32 %v2470_v44, %v1951_v36  ;;  %v4826_v44 = vld [vmem:[%s5209_s27 + $0x154] sm:$0xf] }
 0x6aa   : > { %v4975_v45 = vpop.eup %4974  ;;  %v2568_v46 = vadd.f32 1.0, %v4973_v40  ;;  %v2509_v27 = vmul.f32 %v2497_v38, %v5894_v25  ;;  %4976 = vtanh.f32 %v2539_v37  ;;  %v4487_v33 = vor.u32 %v4844_v59, %v4484_v15  ;;  %v4476_v37 = vld [vmem:[%s5209_s27 + $0x1d8] sm:$0xf0] }
 0x6ab   : > { %v2540_v28 = vmul.f32 0.7978846, %v2528_v43  ;;  %v2498_v50 = vmul.f32 %v5902_v35, %v5902_v35  ;;  %v2567_v52 = vadd.f32 1.0, %v4975_v45  ;;  %v4423_v43 = vor.u32 %v4828_v23, %v4420_v29  ;;  %v4412_v45 = vld [vmem:[%s5209_s27 + $0x158] sm:$0xf0] }
 0x6ac   : > { %v2580_v53 = vmul.f32 0.5, %v2568_v46  ;;  %v2521_v55 = vmul.f32 0.044715, %v2509_v27  ;;  %v4878_v29 = vld [vmem:[%s5209_s27 + $0x2f4] sm:$0xf] }
 0x6ad   : > { %v2510_v58 = vmul.f32 %v2498_v50, %v5902_v35  ;;  %v2579_v41 = vmul.f32 0.5, %v2567_v52  ;;  %4978 = vtanh.f32 %v2540_v28  ;;  %v4479_v50 = vor.u32 %v4842_v34, %v4476_v37  ;;  %v4396_v37 = vld [vmem:[%s5209_s27 + $0x138] sm:$0xf0] }
 0x6ae   : > { %v2592_v63 = vmul.f32 %v2580_v53, %v5837_v54  ;;  %v2533_v0 = vadd.f32 %v2521_v55, %v5894_v25  ;;  %v2442_v5 = vpop.f32.mrf.mxu2 }
 0x6af   : > { %v2522_v7 = vmul.f32 0.044715, %v2510_v58  ;;  %v2443_v10 = vadd.f32 %v2442_v5, %v1950_v51  ;;  %v2484_v11 = vpop.f32.mrf.mxu3  ;;  %v2591_v21 = vmul.f32 %v2579_v41, %v5843_v8  ;;  %v2458_v55 = vpop.f32.mrf.mxu0  ;;  %v4415_v41 = vor.u32 %v4826_v44, %v4412_v45  ;;  %v4824_v5 = vld [vmem:[%s5209_s27 + $0x144] sm:$0xf] }
 0x6b0   : > { %v2545_v54 = vmul.f32 0.7978846, %v2533_v0  ;;  %v5920_v13 = vadd.f32 %v2484_v11, %v2471_v3  ;;  %v5922_v9 = vpack.c.bf16 %v2592_v63, %v2586_v62  ;;  %v4977_v20 = vpop.eup %4976  ;;  %v2472_v32 = vpop.f32.mrf.mxu1  ;;  %v4862_v0 = vld [vmem:[%s5209_s27 + $0x274] sm:$0xf] }
 0x6b1   : > { %v2534_v60 = vadd.f32 %v2522_v7, %v5902_v35  ;;  %v5928_v16 = vadd.f32 %v2456_v61, %v2443_v10  ;;  %v5933_v22 = vpack.c.bf16 %v2591_v21, %v2585_v14  ;;  %v2563_v39 = vadd.f32 1.0, %v4977_v20  ;;  %v4556_v21 = vld [vmem:[%s5209_s27 + $0x278] sm:$0xf0] }
 0x6b2   : > { %4980 = vtanh.f32 %v2545_v54  ;;  %v2494_v8 = vmul.f32 %v5920_v13, %v5920_v13  ;;  %3207 = vmatmul.bf16.vlgmr.msra.gmra.mxu2 %v5922_v9  ;;  %v2473_v46 = vadd.f32 %v2472_v32, %v1951_v36  ;;  %v4822_v32 = vld [vmem:[%s5209_s27 + $0x134] sm:$0xf] }
 0x6b3   : > { %v2546_v26 = vmul.f32 0.7978846, %v2534_v60  ;;  %v2493_v31 = vmul.f32 %v5928_v16, %v5928_v16  ;;  %3311 = vmatpush.bf16.msra.mxu2 %v4495_v42  ;;  %3193 = vmatmul.bf16.vlgmr.msra.gmra.mxu0 %v5933_v22  ;;  %v4979_v38 = vpop.eup %4978  ;;  %v4840_v42 = vld [vmem:[%s5209_s27 + $0x1c4] sm:$0xf]  ;;  %v2575_v36 = vmul.f32 0.5, %v2563_v39 }
 0x6b4   : > { %v2506_v2 = vmul.f32 %v2494_v8, %v5920_v13  ;;  %3297 = vmatpush.bf16.msra.mxu0 %v4431_v18  ;;  %v2564_v58 = vadd.f32 1.0, %v4979_v38  ;;  %v4471_v54 = vor.u32 %v4840_v42, %v4468_v30  ;;  %v4838_v60 = vld [vmem:[%s5209_s27 + $0x1b4] sm:$0xf]  ;;  %v4460_v18 = vld [vmem:[%s5209_s27 + $0x1b8] sm:$0xf0] }
 0x6b5   : > { %4982 = vtanh.f32 %v2546_v26  ;;  %v2505_v40 = vmul.f32 %v2493_v31, %v5928_v16  ;;  %v2587_v20 = vmul.f32 %v2575_v36, %v5866_v47  ;;  %v4620_v26 = vld [vmem:[%s5209_s27 + $0x2f8] sm:$0xf0]  ;;  %v4407_v31 = vor.u32 %v4824_v5, %v4404_v24  ;;  %v4860_v38 = vld [vmem:[%s5209_s27 + $0x264] sm:$0xf]  ;;  %v4548_v39 = vld [vmem:[%s5209_s27 + $0x268] sm:$0xf0] }
 0x6b6   : > { %v2518_v17 = vmul.f32 0.044715, %v2506_v2  ;;  %v2444_v27 = vpop.f32.mrf.mxu2  ;;  %v2576_v15 = vmul.f32 0.5, %v2564_v58  ;;  %v4559_v2 = vor.u32 %v4862_v0, %v4556_v21  ;;  %v4540_v42 = vld [vmem:[%s5209_s27 + $0x258] sm:$0xf0] }
 0x6b7   : > { %v2517_v48 = vmul.f32 0.044715, %v2505_v40  ;;  %v2445_v49 = vadd.f32 %v2444_v27, %v1950_v51  ;;  %v2486_v28 = vpop.f32.mrf.mxu3  ;;  %3312 = vmatpush.bf16.msra.mxu2 %v4487_v33  ;;  %v4463_v40 = vor.u32 %v4838_v60, %v4460_v18  ;;  %v4856_v21 = vld [vmem:[%s5209_s27 + $0x244] sm:$0xf]  ;;  %v4436_v60 = vld [vmem:[%s5209_s27 + $0x188] sm:$0xf0] }
 0x6b8   : > { %v4981_v52 = vpop.eup %4980  ;;  %v2530_v53 = vadd.f32 %v2518_v17, %v5920_v13  ;;  %v5949_v57 = vadd.f32 %v2486_v28, %v2473_v46  ;;  %3298 = vmatpush.bf16.msra.mxu0 %v4423_v43  ;;  %v2588_v44 = vmul.f32 %v2576_v15, %v5881_v1  ;;  %v4836_v17 = vld [vmem:[%s5209_s27 + $0x1a4] sm:$0xf]  ;;  %v4452_v46 = vld [vmem:[%s5209_s27 + $0x1a8] sm:$0xf0] }
 0x6b9   : > { %v2569_v62 = vadd.f32 1.0, %v4981_v52  ;;  %v2529_v51 = vadd.f32 %v2517_v48, %v5928_v16  ;;  %v5954_v63 = vadd.f32 %v2458_v55, %v2445_v49  ;;  %v4623_v48 = vor.u32 %v4878_v29, %v4620_v26  ;;  %v4876_v49 = vld [vmem:[%s5209_s27 + $0x2e4] sm:$0xf]  ;;  %v4612_v28 = vld [vmem:[%s5209_s27 + $0x2e8] sm:$0xf0] }
 0x6ba   : > { %v2542_v61 = vmul.f32 0.7978846, %v2530_v53  ;;  %v2500_v3 = vmul.f32 %v5949_v57, %v5949_v57  ;;  %v4820_v53 = vld [vmem:[%s5209_s27 + $0x124] sm:$0xf]  ;;  %v4388_v55 = vld [vmem:[%s5209_s27 + $0x128] sm:$0xf0]  ;;  %v4455_v30 = vor.u32 %v4836_v17, %v4452_v46 }
 0x6bb   : > { %v4983_v56 = vpop.eup %4982  ;;  %v2581_v7 = vmul.f32 0.5, %v2569_v62  ;;  %v2541_v10 = vmul.f32 0.7978846, %v2529_v51  ;;  %v2499_v11 = vmul.f32 %v5954_v63, %v5954_v63  ;;  %3313 = vmatpush.bf16.msra.mxu2 %v4479_v50  ;;  %v4399_v50 = vor.u32 %v4822_v32, %v4396_v37  ;;  %v4834_v62 = vld [vmem:[%s5209_s27 + $0x194] sm:$0xf] }
 0x6bc   : > { %v2512_v14 = vmul.f32 %v2500_v3, %v5949_v57  ;;  %v2570_v59 = vadd.f32 1.0, %v4983_v56  ;;  %3299 = vmatpush.bf16.msra.mxu0 %v4415_v41  ;;  %4984 = vtanh.f32 %v2542_v61  ;;  %v4858_v41 = vld [vmem:[%s5209_s27 + $0x254] sm:$0xf]  ;;  %v4444_v51 = vld [vmem:[%s5209_s27 + $0x198] sm:$0xf0]  ;;  %v4615_v61 = vor.u32 %v4876_v49, %v4612_v28 }
 0x6bd   : > { %v2593_v8 = vmul.f32 %v2581_v7, %v5894_v25  ;;  %v2511_v23 = vmul.f32 %v2499_v11, %v5954_v63  ;;  %4986 = vtanh.f32 %v2541_v10  ;;  %v4874_v3 = vld [vmem:[%s5209_s27 + $0x2d4] sm:$0xf]  ;;  %v4391_v5 = vor.u32 %v4820_v53, %v4388_v55  ;;  %v4604_v56 = vld [vmem:[%s5209_s27 + $0x2d8] sm:$0xf0]  ;;  %v4832_v15 = vld [vmem:[%s5209_s27 + $0x184] sm:$0xf] }
 0x6be   : > { %v2524_v33 = vmul.f32 0.044715, %v2512_v14  ;;  %v2582_v34 = vmul.f32 0.5, %v2570_v59  ;;  %v4543_v24 = vor.u32 %v4858_v41, %v4540_v42  ;;  %v4818_v7 = vld [vmem:[%s5209_s27 + $0x114] sm:$0xf]  ;;  %v4447_v14 = vor.u32 %v4834_v62, %v4444_v51 }
 0x6bf   : > { %v2523_v47 = vmul.f32 0.044715, %v2511_v23  ;;  %v5974_v25 = vpack.c.bf16 %v2593_v8, %v2587_v20  ;;  %3314 = vmatpush.bf16.msra.mxu2 %v4471_v54  ;;  %v4380_v10 = vld [vmem:[%s5209_s27 + $0x118] sm:$0xf0]  ;;  %v4532_v54 = vld [vmem:[%s5209_s27 + $0x248] sm:$0xf0]  ;;  %v4607_v18 = vor.u32 %v4874_v3, %v4604_v56  ;;  %v4439_v37 = vor.u32 %v4832_v15, %v4436_v60 }
 0x6c0   : > { %v2536_v43 = vadd.f32 %v2524_v33, %v5949_v57  ;;  %v2594_v45 = vmul.f32 %v2582_v34, %v5902_v35  ;;  %3300 = vmatpush.bf16.msra.mxu0 %v4407_v31  ;;  %v4551_v35 = vor.u32 %v4860_v38, %v4548_v39  ;;  %v4872_v20 = vld [vmem:[%s5209_s27 + $0x2c4] sm:$0xf]  ;;  %v4383_v8 = vor.u32 %v4818_v7, %v4380_v10  ;;  %v4596_v26 = vld [vmem:[%s5209_s27 + $0x2c8] sm:$0xf0]  ;;  %v4854_v31 = vld [vmem:[%s5209_s27 + $0x234] sm:$0xf] }
 0x6c1   : > { %v2535_v27 = vadd.f32 %v2523_v47, %v5954_v63  ;;  %3221 = vmatmul.bf16.vlgmr.msra.gmra.mxu3 %v5974_v25  ;;  %v4535_v29 = vor.u32 %v4856_v21, %v4532_v54  ;;  %v4524_v32 = vld [vmem:[%s5209_s27 + $0x238] sm:$0xf0]  ;;  %v4816_v47 = vld [vmem:[%s5209_s27 + $0x104] sm:$0xf]  ;;  %v4372_v38 = vld [vmem:[%s5209_s27 + $0x108] sm:$0xf0] }
 0x6c2   : > { %v2548_v52 = vmul.f32 0.7978846, %v2536_v43  ;;  %3325 = vmatpush.bf16.msra.mxu3 %v4559_v2  ;;  %v5987_v1 = vpack.c.bf16 %v2594_v45, %v2588_v44  ;;  %v4985_v36 = vpop.eup %4984  ;;  %v4599_v44 = vor.u32 %v4872_v20, %v4596_v26  ;;  %v4527_v45 = vor.u32 %v4854_v31, %v4524_v32  ;;  %v4870_v46 = vld [vmem:[%s5209_s27 + $0x2b4] sm:$0xf]  ;;  %v4868_v41 = vld [vmem:[%s5209_s27 + $0x2a4] sm:$0xf] }
 0x6c3   : > { %v2547_v58 = vmul.f32 0.7978846, %v2535_v27  ;;  %3315 = vmatpush.bf16.msra.mxu2 %v4463_v40  ;;  %v4987_v0 = vpop.eup %4986  ;;  %v2566_v11 = vadd.f32 1.0, %v4985_v36  ;;  %v4588_v27 = vld [vmem:[%s5209_s27 + $0x2b8] sm:$0xf0] }
 0x6c4   : > { %4988 = vtanh.f32 %v2548_v52  ;;  %3235 = vmatmul.bf16.vlgmr.msra.gmra.mxu1 %v5987_v1  ;;  %3301 = vmatpush.bf16.msra.mxu0 %v4399_v50  ;;  %v2565_v59 = vadd.f32 1.0, %v4987_v0  ;;  %v4852_v50 = vld [vmem:[%s5209_s27 + $0x224] sm:$0xf]  ;;  %v4516_v52 = vld [vmem:[%s5209_s27 + $0x228] sm:$0xf0] }
 0x6c5   : > { %4990 = vtanh.f32 %v2547_v58  ;;  %3339 = vmatpush.bf16.msra.mxu1 %v4623_v48  ;;  %v2578_v2 = vmul.f32 0.5, %v2566_v11  ;;  %v4375_v48 = vor.u32 %v4816_v47, %v4372_v38  ;;  %v4591_v58 = vor.u32 %v4870_v46, %v4588_v27  ;;  %v4580_v42 = vld [vmem:[%s5209_s27 + $0x2a8] sm:$0xf0]  ;;  %v4866_v36 = vld [vmem:[%s5209_s27 + $0x294] sm:$0xf] }
 0x6c6   : > { %3326 = vmatpush.bf16.msra.mxu3 %v4551_v35  ;;  %v2577_v40 = vmul.f32 0.5, %v2565_v59  ;;  %v4572_v62 = vld [vmem:[%s5209_s27 + $0x298] sm:$0xf0]  ;;  %v4848_v51 = vld [vmem:[%s5209_s27 + $0x204] sm:$0xf] }
 0x6c7   : > { %3316 = vmatpush.bf16.msra.mxu2 %v4455_v30  ;;  %v2590_v49 = vmul.f32 %v2578_v2, %v5920_v13  ;;  %v4850_v30 = vld [vmem:[%s5209_s27 + $0x214] sm:$0xf]  ;;  %v4500_v0 = vld [vmem:[%s5209_s27 + $0x208] sm:$0xf0]  ;;  %v2699_v10 = vld [vmem:[%s6115_s5] sm:$0x3] }
 0x6c8   : > { %3302 = vmatpush.bf16.msra.mxu0 %v4391_v5  ;;  %v2589_v35 = vmul.f32 %v2577_v40, %v5928_v16  ;;  %v4508_v16 = vld [vmem:[%s5209_s27 + $0x218] sm:$0xf0]  ;;  %v4503_v3 = vor.u32 %v4848_v51, %v4500_v0  ;;  %v4864_v5 = vld [vmem:[%s5209_s27 + $0x284] sm:$0xf]  ;;  %v2701_v54 = vperm.slane %v2699_v10, 0  ;;  %v2702_v38 = vperm.slane %v2699_v10, 1 }
 0x6c9   : > { %3340 = vmatpush.bf16.msra.mxu1 %v4615_v61  ;;  %v4575_v61 = vor.u32 %v4866_v36, %v4572_v62 }
 0x6ca   : > { %v4989_v23 = vpop.eup %4988  ;;  %3327 = vmatpush.bf16.msra.mxu3 %v4543_v24  ;;  %v4564_v24 = vld [vmem:[%s5209_s27 + $0x288] sm:$0xf0] }
 0x6cb   : > { %v4991_v33 = vpop.eup %4990  ;;  %v2572_v34 = vadd.f32 1.0, %v4989_v23  ;;  %3317 = vmatpush.bf16.msra.mxu2 %v4447_v14  ;;  %v4567_v56 = vor.u32 %v4864_v5, %v4564_v24 }
 0x6cc   : > { %v2571_v39 = vadd.f32 1.0, %v4991_v33  ;;  %3303 = vmatpush.bf16.msra.mxu0 %v4383_v8 }
 0x6cd   : > { %v2584_v43 = vmul.f32 0.5, %v2572_v34  ;;  %3341 = vmatpush.bf16.msra.mxu1 %v4607_v18 }
 0x6ce   : > { %3328 = vmatpush.bf16.msra.mxu3 %v4535_v29  ;;  %v2583_v17 = vmul.f32 0.5, %v2571_v39 }
 0x6cf   : > { %v2596_v28 = vmul.f32 %v2584_v43, %v5949_v57  ;;  %3318 = vmatpush.bf16.msra.mxu2 %v4439_v37  ;;  %v4519_v57 = vor.u32 %v4852_v50, %v4516_v52 }
 0x6d0   : > { %v2595_v53 = vmul.f32 %v2583_v17, %v5954_v63  ;;  %3304 = vmatpush.bf16.msra.mxu0 %v4375_v48  ;;  %v4511_v63 = vor.u32 %v4850_v30, %v4508_v16 }
 0x6d1   : > { %3342 = vmatpush.bf16.msra.mxu1 %v4599_v44  ;;  %v2602_v55 = vpack.c.bf16 %v2596_v28, %v2590_v49  ;;  %3277 = vmatmul.bf16.vlgmr.msrb.gmra.mxu3 %v5933_v22  ;;  %v4583_v22 = vor.u32 %v4868_v41, %v4580_v42 }
 0x6d2   : > { %3329 = vmatpush.bf16.msra.mxu3 %v4527_v45  ;;  %v2601_v13 = vpack.c.bf16 %v2595_v53, %v2589_v35 }
 0x6d3   : > { %3263 = vmatmul.bf16.vlgmr.msrb.gmra.mxu2 %v2602_v55 }
 0x6d4   : > { %3249 = vmatmul.bf16.vlgmr.msrb.gmra.mxu0 %v2601_v13  ;;  %3291 = vmatmul.bf16.vlgmr.msrb.gmra.mxu1 %v5922_v9 }
 0x6d5   : > { %3343 = vmatpush.bf16.msra.mxu1 %v4591_v58 }
 0x6d6   : > { %3330 = vmatpush.bf16.msra.mxu3 %v4519_v57 }
 0x6d9   : > { %3344 = vmatpush.bf16.msra.mxu1 %v4583_v22 }
 0x6da   : > { %3331 = vmatpush.bf16.msra.mxu3 %v4511_v63 }
 0x6dd   : > { %3345 = vmatpush.bf16.msra.mxu1 %v4575_v61 }
 0x6de   : > { %3332 = vmatpush.bf16.msra.mxu3 %v4503_v3 }
 0x6e1   : > { %3346 = vmatpush.bf16.msra.mxu1 %v4567_v56  ;;  %3333 = vmatmul.bf16.vlgmr.msra.gmra.mxu3 %v2601_v13 }
 0x6e3   : > { %3319 = vmatmul.bf16.vlgmr.msra.gmra.mxu2 %v5987_v1 }
 0x6e4   : > { %3305 = vmatmul.bf16.vlgmr.msra.gmra.mxu0 %v5974_v25  ;;  %3347 = vmatmul.bf16.vlgmr.msra.gmra.mxu1 %v2602_v55 }
 0x730   : > { %v3194_v9 = vpop.f32.mrf.mxu0 }
 0x731   : > { %v3195_v15 = vadd.f32 %v3194_v9, %v2701_v54 }
 0x735   : > { %v3208_v11 = vpop.f32.mrf.mxu2 }
 0x736   : > { %v3209_v18 = vadd.f32 %v3208_v11, %v3195_v15 }
 0x738   : > { %v3196_v14 = vpop.f32.mrf.mxu0 }
 0x739   : > { %v3197_v8 = vadd.f32 %v3196_v14, %v2701_v54 }
 0x73d   : > { %v3210_v1 = vpop.f32.mrf.mxu2 }
 0x73e   : > { %v3211_v31 = vadd.f32 %v3210_v1, %v3197_v8 }
 0x741   : > { %v3236_v7 = vpop.f32.mrf.mxu1 }
 0x744   : > { %v3222_v21 = vpop.f32.mrf.mxu3 }
 0x745   : > { %v3223_v20 = vadd.f32 %v3222_v21, %v3209_v18 }
 0x747   : > { %v3237_v23 = vadd.f32 %v3236_v7, %v3223_v20 }
 0x749   : > { %v3238_v59 = vpop.f32.mrf.mxu1 }
 0x74c   : > { %v3224_v60 = vpop.f32.mrf.mxu3 }
 0x74d   : > { %v3225_v2 = vadd.f32 %v3224_v60, %v3211_v31 }
 0x74f   : > { %v3239_v39 = vadd.f32 %v3238_v59, %v3225_v2 }
 0x751   : > { %v3250_v25 = vpop.f32.mrf.mxu0  ;;  %v3292_v29 = vpop.f32.mrf.mxu1 }
 0x752   : > { %v3251_v32 = vadd.f32 %v3250_v25, %v3237_v23 }
 0x754   : > { %v3278_v26 = vpop.f32.mrf.mxu3 }
 0x755   : > { %v3279_v17 = vadd.f32 %v3278_v26, %v2702_v38 }
 0x756   : > { %v3264_v33 = vpop.f32.mrf.mxu2 }
 0x757   : > { %v3265_v34 = vadd.f32 %v3264_v33, %v3251_v32  ;;  %v3293_v49 = vadd.f32 %v3292_v29, %v3279_v17 }
 0x759   : > { %v3353_v37 = vadd.f32 %v3265_v34, %v5491_v6  ;;  %v3252_v47 = vpop.f32.mrf.mxu0  ;;  %v3294_v44 = vpop.f32.mrf.mxu1 }
 0x75a   : > { %v3253_v43 = vadd.f32 %v3252_v47, %v3239_v39 }
 0x75b   : > { %3357 = vst [vmem:[%s5194_s0] sm:$0xff] %v3353_v37 }
 0x75c   : > { %v3280_v40 = vpop.f32.mrf.mxu3 }
 0x75d   : > { %v3281_v6 = vadd.f32 %v3280_v40, %v2702_v38 }
 0x75e   : > { %v3266_v45 = vpop.f32.mrf.mxu2 }
 0x75f   : > { %v3267_v46 = vadd.f32 %v3266_v45, %v3253_v43  ;;  %v3295_v57 = vadd.f32 %v3294_v44, %v3281_v6 }
 0x761   : > { %v3355_v27 = vadd.f32 %v3267_v46, %v5500_v19  ;;  %v3306_v48 = vpop.f32.mrf.mxu0  ;;  %v3348_v53 = vpop.f32.mrf.mxu1 }
 0x762   : > { %v3307_v28 = vadd.f32 %v3306_v48, %v3293_v49 }
 0x763   : > { %3359 = vst [vmem:[%s5194_s0 + $0x10] sm:$0xff] %v3355_v27 }
 0x764   : > { %v3334_v52 = vpop.f32.mrf.mxu3 }
 0x766   : > { %v3320_v50 = vpop.f32.mrf.mxu2 }
 0x767   : > { %v3321_v35 = vadd.f32 %v3320_v50, %v3307_v28 }
 0x769   : > { %v3335_v55 = vadd.f32 %v3334_v52, %v3321_v35  ;;  %v3308_v58 = vpop.f32.mrf.mxu0  ;;  %v3350_v63 = vpop.f32.mrf.mxu1 }
 0x76a   : > { %v3309_v42 = vadd.f32 %v3308_v58, %v3295_v57 }
 0x76b   : > { %v3349_v13 = vadd.f32 %v3348_v53, %v3335_v55 }
 0x76c   : > { %v3336_v16 = vpop.f32.mrf.mxu3 }
 0x76d   : > { %v3354_v41 = vadd.f32 %v3349_v13, %v5488_v4 }
 0x76e   : > { %v3322_v30 = vpop.f32.mrf.mxu2 }
 0x76f   : > { %3358 = vst.msk [vmem:[%s5194_s0 + $0x8] sm:$0xff] %vm725_vm1, %v3354_v41  ;;  %v3323_v19 = vadd.f32 %v3322_v30, %v3309_v42 }
 0x771   : > { %v3337_v22 = vadd.f32 %v3336_v16, %v3323_v19 }
 0x773   : > { %v3351_v36 = vadd.f32 %v3350_v63, %v3337_v22 }
 0x775   : > { %v3356_v62 = vadd.f32 %v3351_v36, %v5497_v12 }
 0x777   : > { %3360 = vst.msk [vmem:[%s5194_s0 + $0x18] sm:$0xff] %vm725_vm1, %v3356_v62 }
 0x778 PF: > { %s6116_s22 = sld [smem:[#allocation5_spill]] }
 0x779   : > { %s6117_s29 = sld [smem:[#allocation3_spill]] }
 0x77a   : > { %s6118_s30 = sld [smem:[#allocation4_spill]] }
 0x77b   : > { %s6119_s15 = sld [smem:[#allocation6_spill]] }
 0x77c   : > { %s6120_s16 = sld [smem:[#allocation7_spill]] }
 0x77e   : > { %s24_s17 = sadd.s32 1, %s6116_s22  }
 0x77f   : > { %p21_p8 = scmp.ge.s32.totalorder %s24_s17, 26  }
 0x781   :  { %23 = sbr.rel (!%p21_p8) target bundleno = 11 (0xb), region = 146 }

</bundles_post_ra>
